<compile_context>
chip_gen: v7x
topology: tpu7x:2x2x1
jax: 0.10.0
libtpu: 0.0.40
codegen_flags: <defaults>
</compile_context>

<pallas_src>
import functools

import jax
import jax.numpy as jnp
from jax.experimental import pallas as pl
from jax.experimental.pallas import tpu as pltpu

HIDDEN_SIZE = 128
INPUT_SIZE = 28
NUM_CLASSES = 10
NUM_LAYERS = 2       # fused explicitly (layer0 -> layer1) inside the kernel
PAD_IN = 128         # input feature dim zero-padded to a full lane
PAD_OUT = 128        # class dim zero-padded to a full lane


def _lstm_fc_kernel(x2_ref, wih0_ref, whh0_ref, b0_ref,
                    wih1_ref, whh1_ref, b1_ref, wfc_ref, bfc_ref,
                    out_ref, *, T, B):
    """Full 2-layer LSTM over time + final Linear, everything resident in VMEM.

    x2_ref : (T*B, 128) bf16   time-major, batch fastest-varying, zero-padded I
    wih0   : (128, 4H)  bf16   whh0 : (H, 4H) bf16   b0 : (1, 4H) f32 (b_ih+b_hh)
    wih1   : (H, 4H)    bf16   whh1 : (H, 4H) bf16   b1 : (1, 4H) f32
    wfc    : (H, 128)   bf16   bfc  : (1, 128) f32   (classes zero-padded)
    out    : (B, 128)   f32
    """
    H = whh0_ref.shape[0]
    bf16 = jnp.bfloat16

    whh0 = whh0_ref[...]                                   # (H, 4H) bf16
    wih1 = wih1_ref[...]                                   # (H, 4H) bf16
    whh1 = whh1_ref[...]                                   # (H, 4H) bf16
    # Hoisted bias broadcast (JAX does not CSE broadcast_in_dim inside loops).
    b1 = jnp.broadcast_to(b1_ref[...], (B, 4 * H))         # (B, 4H) f32

    # --- Layer-0 input projection for ALL timesteps in one MXU call ---------
    # Bias b0 folded in: removes a per-step matmul AND a per-step add from the
    # serial recurrence.  bf16 operands -> single-pass MXU, f32 accumulate.
    xp = (jnp.dot(x2_ref[...], wih0_ref[...],
                  preferred_element_type=jnp.float32)
          + b0_ref[...])                                   # (T*B, 4H) f32

    def gates_to_hc(gates, c):
        i = jax.nn.sigmoid(gates[:, 0 * H:1 * H])
        f = jax.nn.sigmoid(gates[:, 1 * H:2 * H])
        g = jnp.tanh(gates[:, 2 * H:3 * H])
        o = jax.nn.sigmoid(gates[:, 3 * H:4 * H])
        c_new = f * c + i * g
        h_new = o * jnp.tanh(c_new)
        return h_new, c_new

    def gates_to_hc_init(gates):
        # c_prev == 0 exactly -> f * c_prev == 0, so skip the f gate entirely.
        i = jax.nn.sigmoid(gates[:, 0 * H:1 * H])
        g = jnp.tanh(gates[:, 2 * H:3 * H])
        o = jax.nn.sigmoid(gates[:, 3 * H:4 * H])
        c_new = i * g
        h_new = o * jnp.tanh(c_new)
        return h_new, c_new

    # --- t = 0 peeled: h0 = c0 = 0 -> recurrent matmuls are exactly zero -----
    g0 = xp[0:B, :]                                        # (B, 4H)
    h1, c1 = gates_to_hc_init(g0)
    g1 = jnp.dot(h1.astype(bf16), wih1,
                 preferred_element_type=jnp.float32) + b1
    h2, c2 = gates_to_hc_init(g1)

    # T is a small compile-time constant: fully unroll so the scheduler can
    # overlap layer-1 of step t with layer-0 of step t+1 and every xp slice
    # is static.  (Revisit with lax.fori_loop at production batch sizes.)
    for t in range(1, T):
        # Layer 0: only the recurrent K=128 matmul is on the critical path.
        g0 = xp[t * B:(t + 1) * B, :] + jnp.dot(
            h1.astype(bf16), whh0, preferred_element_type=jnp.float32)
        h1, c1 = gates_to_hc(g0, c1)
        # Layer 1: two K=128 matmuls (no concat); the h2-term only depends on
        # the previous step so it can issue while layer-0 above is running.
        g1 = (jnp.dot(h1.astype(bf16), wih1, preferred_element_type=jnp.float32)
              + jnp.dot(h2.astype(bf16), whh1, preferred_element_type=jnp.float32)
              + b1)
        h2, c2 = gates_to_hc(g1, c2)

    # fc(out[:, -1, :]) — last layer's hidden state at the final timestep.
    out_ref[...] = (jnp.dot(h2.astype(bf16), wfc_ref[...],
                            preferred_element_type=jnp.float32)
                    + bfc_ref[...])


@jax.jit
def rnn_forward(x, params):
    """x: (B, T, I) float32 (batch_first, like the PyTorch module)."""
    B, T, I = x.shape
    C = params["fc_w"].shape[0]
    bf16 = jnp.bfloat16

    # --- JAX glue: layout plumbing only (no compute hidden here) ------------
    x2 = jnp.transpose(x, (1, 0, 2)).reshape(T * B, I)               # (T*B, I)
    x2p = jnp.pad(x2, ((0, 0), (0, PAD_IN - I))).astype(bf16)        # (T*B, 128)
    wih0 = jnp.pad(params["w_ih_l0"].T,
                   ((0, PAD_IN - I), (0, 0))).astype(bf16)           # (128, 4H)
    whh0 = params["w_hh_l0"].T.astype(bf16)                          # (H, 4H)
    b0 = (params["b_ih_l0"] + params["b_hh_l0"])[None, :]            # (1, 4H) f32
    wih1 = params["w_ih_l1"].T.astype(bf16)                          # (H, 4H)
    whh1 = params["w_hh_l1"].T.astype(bf16)                          # (H, 4H)
    b1 = (params["b_ih_l1"] + params["b_hh_l1"])[None, :]            # (1, 4H) f32
    wfc = jnp.pad(params["fc_w"].T,
                  ((0, 0), (0, PAD_OUT - C))).astype(bf16)           # (H, 128)
    bfc = jnp.pad(params["fc_b"], (0, PAD_OUT - C))[None, :]         # (1, 128) f32

    vmem = pl.BlockSpec(memory_space=pltpu.MemorySpace.VMEM)
    kernel = functools.partial(_lstm_fc_kernel, T=T, B=B)
    out_p = pl.pallas_call(
        kernel,
        out_shape=jax.ShapeDtypeStruct((B, PAD_OUT), jnp.float32),
        in_specs=[vmem] * 9,
        out_specs=vmem,
    )(x2p, wih0, whh0, b0, wih1, whh1, b1, wfc, bfc)
    return out_p[:, :C]                                              # (B, C)


def _init_params(key, input_size, hidden_size, num_classes):
    """Deterministic init mirroring nn.LSTM / nn.Linear parameter shapes."""
    k = 1.0 / jnp.sqrt(hidden_size)
    keys = jax.random.split(key, 10)
    u = lambda kk, shape: jax.random.uniform(kk, shape, jnp.float32, -k, k)
    return {
        "w_ih_l0": u(keys[0], (4 * hidden_size, input_size)),
        "w_hh_l0": u(keys[1], (4 * hidden_size, hidden_size)),
        "b_ih_l0": u(keys[2], (4 * hidden_size,)),
        "b_hh_l0": u(keys[3], (4 * hidden_size,)),
        "w_ih_l1": u(keys[4], (4 * hidden_size, hidden_size)),
        "w_hh_l1": u(keys[5], (4 * hidden_size, hidden_size)),
        "b_ih_l1": u(keys[6], (4 * hidden_size,)),
        "b_hh_l1": u(keys[7], (4 * hidden_size,)),
        "fc_w": u(keys[8], (num_classes, hidden_size)),
        "fc_b": u(keys[9], (num_classes,)),
    }


def _reference_forward_f32(x, params):
    """Pure-JAX f32 reference of the PyTorch forward."""
    B, T, _ = x.shape
    H = HIDDEN_SIZE

    def cell(xt, h, c, wih, whh, bih, bhh):
        gates = xt @ wih.T + bih + h @ whh.T + bhh
        i = jax.nn.sigmoid(gates[:, 0 * H:1 * H])
        f = jax.nn.sigmoid(gates[:, 1 * H:2 * H])
        g = jnp.tanh(gates[:, 2 * H:3 * H])
        o = jax.nn.sigmoid(gates[:, 3 * H:4 * H])
        c = f * c + i * g
        return o * jnp.tanh(c), c

    h1 = c1 = h2 = c2 = jnp.zeros((B, H), jnp.float32)
    for t in range(T):
        h1, c1 = cell(x[:, t, :], h1, c1, params["w_ih_l0"], params["w_hh_l0"],
                      params["b_ih_l0"], params["b_hh_l0"])
        h2, c2 = cell(h1, h2, c2, params["w_ih_l1"], params["w_hh_l1"],
                      params["b_ih_l1"], params["b_hh_l1"])
    return h2 @ params["fc_w"].T + params["fc_b"]


def _reference_forward_bf16(x, params):
    """Pure-JAX reference matching the kernel's bf16-matmul / f32-gate math."""
    B, T, _ = x.shape
    H = HIDDEN_SIZE
    bf16 = jnp.bfloat16
    f32 = jnp.float32
    wih0, whh0 = params["w_ih_l0"].T.astype(bf16), params["w_hh_l0"].T.astype(bf16)
    wih1, whh1 = params["w_ih_l1"].T.astype(bf16), params["w_hh_l1"].T.astype(bf16)
    b0 = params["b_ih_l0"] + params["b_hh_l0"]
    b1 = params["b_ih_l1"] + params["b_hh_l1"]
    wfc, bfc = params["fc_w"].T.astype(bf16), params["fc_b"]

    def gates_to_hc(gates, c):
        i = jax.nn.sigmoid(gates[:, 0 * H:1 * H])
        f = jax.nn.sigmoid(gates[:, 1 * H:2 * H])
        g = jnp.tanh(gates[:, 2 * H:3 * H])
        o = jax.nn.sigmoid(gates[:, 3 * H:4 * H])
        c = f * c + i * g
        return o * jnp.tanh(c), c

    h1 = c1 = h2 = c2 = jnp.zeros((B, H), f32)
    for t in range(T):
        g0 = (jnp.dot(x[:, t, :].astype(bf16), wih0, preferred_element_type=f32)
              + jnp.dot(h1.astype(bf16), whh0, preferred_element_type=f32)
              + b0)
        h1, c1 = gates_to_hc(g0, c1)
        g1 = (jnp.dot(h1.astype(bf16), wih1, preferred_element_type=f32)
              + jnp.dot(h2.astype(bf16), whh1, preferred_element_type=f32)
              + b1)
        h2, c2 = gates_to_hc(g1, c2)
    return jnp.dot(h2.astype(bf16), wfc, preferred_element_type=f32) + bfc


if __name__ == "__main__":
    key = jax.random.PRNGKey(0)
    pkey, xkey = jax.random.split(key)

    B, T = 2, 8
    params = _init_params(pkey, INPUT_SIZE, HIDDEN_SIZE, NUM_CLASSES)
    x = jax.random.normal(xkey, (B, T, INPUT_SIZE), jnp.float32)

    out = rnn_forward(x, params)
    out = jax.block_until_ready(out)
    assert out.shape == (B, NUM_CLASSES)

    # Tight check vs. a pure-JAX model of the exact kernel math (bf16 matmuls,
    # f32 accumulation / gates).
    ref_bf16 = _reference_forward_bf16(x, params)
    assert jnp.allclose(out, ref_bf16, atol=2e-3, rtol=2e-3), \
        "mismatch vs bf16-matmul reference"

    # Looser check vs. the full-f32 PyTorch-semantics reference (bf16 MXU
    # inputs introduce ~1e-3-level differences).
    ref_f32 = _reference_forward_f32(x, params)
    assert jnp.allclose(out, ref_f32, atol=5e-2, rtol=5e-2), \
        "mismatch vs f32 reference"

    print("KERNEL_OK")
</pallas_src>

<mosaic_0001>
module attributes {stable_mosaic.version = 11 : i64} {
  func.func @_lstm_fc_kernel(%arg0: memref<16x128xbf16, #tpu.memory_space<vmem>>, %arg1: memref<128x512xbf16, #tpu.memory_space<vmem>>, %arg2: memref<128x512xbf16, #tpu.memory_space<vmem>>, %arg3: memref<1x512xf32, #tpu.memory_space<vmem>>, %arg4: memref<128x512xbf16, #tpu.memory_space<vmem>>, %arg5: memref<128x512xbf16, #tpu.memory_space<vmem>>, %arg6: memref<1x512xf32, #tpu.memory_space<vmem>>, %arg7: memref<128x128xbf16, #tpu.memory_space<vmem>>, %arg8: memref<1x128xf32, #tpu.memory_space<vmem>>, %arg9: memref<2x128xf32, #tpu.memory_space<vmem>>) attributes {dimension_semantics = [], scalar_prefetch = 0 : i64, scratch_operands = 0 : i64, tpu.core_type = #tpu.core_type<tc>} {
    %c0 = arith.constant 0 : index
    %c0_0 = arith.constant 0 : index
    %0 = vector.load %arg2[%c0, %c0_0] : memref<128x512xbf16, #tpu.memory_space<vmem>>, vector<128x512xbf16>
    %c0_1 = arith.constant 0 : index
    %c0_2 = arith.constant 0 : index
    %1 = vector.load %arg4[%c0_1, %c0_2] : memref<128x512xbf16, #tpu.memory_space<vmem>>, vector<128x512xbf16>
    %c0_3 = arith.constant 0 : index
    %c0_4 = arith.constant 0 : index
    %2 = vector.load %arg5[%c0_3, %c0_4] : memref<128x512xbf16, #tpu.memory_space<vmem>>, vector<128x512xbf16>
    %c0_5 = arith.constant 0 : index
    %c0_6 = arith.constant 0 : index
    %3 = vector.load %arg6[%c0_5, %c0_6] : memref<1x512xf32, #tpu.memory_space<vmem>>, vector<1x512xf32>
    %4 = vector.shape_cast %3 : vector<1x512xf32> to vector<1x512xf32>
    %5 = vector.broadcast %4 : vector<1x512xf32> to vector<2x512xf32>
    %c0_7 = arith.constant 0 : index
    %c0_8 = arith.constant 0 : index
    %6 = vector.load %arg0[%c0_7, %c0_8] : memref<16x128xbf16, #tpu.memory_space<vmem>>, vector<16x128xbf16>
    %c0_9 = arith.constant 0 : index
    %c0_10 = arith.constant 0 : index
    %7 = vector.load %arg1[%c0_9, %c0_10] : memref<128x512xbf16, #tpu.memory_space<vmem>>, vector<128x512xbf16>
    %cst = arith.constant dense<0.000000e+00> : vector<16x512xf32>
    %8 = tpu.matmul %6, %7, %cst {dimension_numbers = #tpu.dot_dimension_numbers<[1], [0], [0], [1], [0, 0, 1, 1], [], []>} : vector<16x128xbf16>, vector<128x512xbf16>, vector<16x512xf32> -> vector<16x512xf32>
    %c0_11 = arith.constant 0 : index
    %c0_12 = arith.constant 0 : index
    %9 = vector.load %arg3[%c0_11, %c0_12] : memref<1x512xf32, #tpu.memory_space<vmem>>, vector<1x512xf32>
    %10 = vector.broadcast %9 : vector<1x512xf32> to vector<16x512xf32>
    %11 = arith.addf %8, %10 : vector<16x512xf32>
    %12 = vector.extract_strided_slice %11 {offsets = [0, 0], sizes = [2, 512], strides = [1, 1]} : vector<16x512xf32> to vector<2x512xf32>
    %13 = vector.extract_strided_slice %12 {offsets = [0, 0], sizes = [2, 128], strides = [1, 1]} : vector<2x512xf32> to vector<2x128xf32>
    %14 = arith.negf %13 : vector<2x128xf32>
    %15 = math.exp %14 : vector<2x128xf32>
    %cst_13 = arith.constant 1.000000e+00 : f32
    %16 = vector.broadcast %cst_13 : f32 to vector<2x128xf32>
    %17 = arith.addf %16, %15 : vector<2x128xf32>
    %18 = arith.divf %16, %17 : vector<2x128xf32>
    %19 = vector.extract_strided_slice %12 {offsets = [0, 256], sizes = [2, 128], strides = [1, 1]} : vector<2x512xf32> to vector<2x128xf32>
    %20 = math.tanh %19 : vector<2x128xf32>
    %21 = vector.extract_strided_slice %12 {offsets = [0, 384], sizes = [2, 128], strides = [1, 1]} : vector<2x512xf32> to vector<2x128xf32>
    %22 = arith.negf %21 : vector<2x128xf32>
    %23 = math.exp %22 : vector<2x128xf32>
    %cst_14 = arith.constant 1.000000e+00 : f32
    %24 = vector.broadcast %cst_14 : f32 to vector<2x128xf32>
    %25 = arith.addf %24, %23 : vector<2x128xf32>
    %26 = arith.divf %24, %25 : vector<2x128xf32>
    %27 = arith.mulf %18, %20 : vector<2x128xf32>
    %28 = math.tanh %27 : vector<2x128xf32>
    %29 = arith.mulf %26, %28 : vector<2x128xf32>
    %30 = arith.truncf %29 : vector<2x128xf32> to vector<2x128xbf16>
    %cst_15 = arith.constant dense<0.000000e+00> : vector<2x512xf32>
    %31 = tpu.matmul %30, %1, %cst_15 {dimension_numbers = #tpu.dot_dimension_numbers<[1], [0], [0], [1], [0, 0, 1, 1], [], []>} : vector<2x128xbf16>, vector<128x512xbf16>, vector<2x512xf32> -> vector<2x512xf32>
    %32 = arith.addf %31, %5 : vector<2x512xf32>
    %33 = vector.extract_strided_slice %32 {offsets = [0, 0], sizes = [2, 128], strides = [1, 1]} : vector<2x512xf32> to vector<2x128xf32>
    %34 = arith.negf %33 : vector<2x128xf32>
    %35 = math.exp %34 : vector<2x128xf32>
    %cst_16 = arith.constant 1.000000e+00 : f32
    %36 = vector.broadcast %cst_16 : f32 to vector<2x128xf32>
    %37 = arith.addf %36, %35 : vector<2x128xf32>
    %38 = arith.divf %36, %37 : vector<2x128xf32>
    %39 = vector.extract_strided_slice %32 {offsets = [0, 256], sizes = [2, 128], strides = [1, 1]} : vector<2x512xf32> to vector<2x128xf32>
    %40 = math.tanh %39 : vector<2x128xf32>
    %41 = vector.extract_strided_slice %32 {offsets = [0, 384], sizes = [2, 128], strides = [1, 1]} : vector<2x512xf32> to vector<2x128xf32>
    %42 = arith.negf %41 : vector<2x128xf32>
    %43 = math.exp %42 : vector<2x128xf32>
    %cst_17 = arith.constant 1.000000e+00 : f32
    %44 = vector.broadcast %cst_17 : f32 to vector<2x128xf32>
    %45 = arith.addf %44, %43 : vector<2x128xf32>
    %46 = arith.divf %44, %45 : vector<2x128xf32>
    %47 = arith.mulf %38, %40 : vector<2x128xf32>
    %48 = math.tanh %47 : vector<2x128xf32>
    %49 = arith.mulf %46, %48 : vector<2x128xf32>
    %50 = vector.extract_strided_slice %11 {offsets = [2, 0], sizes = [2, 512], strides = [1, 1]} : vector<16x512xf32> to vector<2x512xf32>
    %51 = arith.truncf %29 : vector<2x128xf32> to vector<2x128xbf16>
    %cst_18 = arith.constant dense<0.000000e+00> : vector<2x512xf32>
    %52 = tpu.matmul %51, %0, %cst_18 {dimension_numbers = #tpu.dot_dimension_numbers<[1], [0], [0], [1], [0, 0, 1, 1], [], []>} : vector<2x128xbf16>, vector<128x512xbf16>, vector<2x512xf32> -> vector<2x512xf32>
    %53 = arith.addf %50, %52 : vector<2x512xf32>
    %54 = vector.extract_strided_slice %53 {offsets = [0, 0], sizes = [2, 128], strides = [1, 1]} : vector<2x512xf32> to vector<2x128xf32>
    %55 = arith.negf %54 : vector<2x128xf32>
    %56 = math.exp %55 : vector<2x128xf32>
    %cst_19 = arith.constant 1.000000e+00 : f32
    %57 = vector.broadcast %cst_19 : f32 to vector<2x128xf32>
    %58 = arith.addf %57, %56 : vector<2x128xf32>
    %59 = arith.divf %57, %58 : vector<2x128xf32>
    %60 = vector.extract_strided_slice %53 {offsets = [0, 128], sizes = [2, 128], strides = [1, 1]} : vector<2x512xf32> to vector<2x128xf32>
    %61 = arith.negf %60 : vector<2x128xf32>
    %62 = math.exp %61 : vector<2x128xf32>
    %cst_20 = arith.constant 1.000000e+00 : f32
    %63 = vector.broadcast %cst_20 : f32 to vector<2x128xf32>
    %64 = arith.addf %63, %62 : vector<2x128xf32>
    %65 = arith.divf %63, %64 : vector<2x128xf32>
    %66 = vector.extract_strided_slice %53 {offsets = [0, 256], sizes = [2, 128], strides = [1, 1]} : vector<2x512xf32> to vector<2x128xf32>
    %67 = math.tanh %66 : vector<2x128xf32>
    %68 = vector.extract_strided_slice %53 {offsets = [0, 384], sizes = [2, 128], strides = [1, 1]} : vector<2x512xf32> to vector<2x128xf32>
    %69 = arith.negf %68 : vector<2x128xf32>
    %70 = math.exp %69 : vector<2x128xf32>
    %cst_21 = arith.constant 1.000000e+00 : f32
    %71 = vector.broadcast %cst_21 : f32 to vector<2x128xf32>
    %72 = arith.addf %71, %70 : vector<2x128xf32>
    %73 = arith.divf %71, %72 : vector<2x128xf32>
    %74 = arith.mulf %65, %27 : vector<2x128xf32>
    %75 = arith.mulf %59, %67 : vector<2x128xf32>
    %76 = arith.addf %74, %75 : vector<2x128xf32>
    %77 = math.tanh %76 : vector<2x128xf32>
    %78 = arith.mulf %73, %77 : vector<2x128xf32>
    %79 = arith.truncf %78 : vector<2x128xf32> to vector<2x128xbf16>
    %cst_22 = arith.constant dense<0.000000e+00> : vector<2x512xf32>
    %80 = tpu.matmul %79, %1, %cst_22 {dimension_numbers = #tpu.dot_dimension_numbers<[1], [0], [0], [1], [0, 0, 1, 1], [], []>} : vector<2x128xbf16>, vector<128x512xbf16>, vector<2x512xf32> -> vector<2x512xf32>
    %81 = arith.truncf %49 : vector<2x128xf32> to vector<2x128xbf16>
    %cst_23 = arith.constant dense<0.000000e+00> : vector<2x512xf32>
    %82 = tpu.matmul %81, %2, %cst_23 {dimension_numbers = #tpu.dot_dimension_numbers<[1], [0], [0], [1], [0, 0, 1, 1], [], []>} : vector<2x128xbf16>, vector<128x512xbf16>, vector<2x512xf32> -> vector<2x512xf32>
    %83 = arith.addf %80, %82 : vector<2x512xf32>
    %84 = arith.addf %83, %5 : vector<2x512xf32>
    %85 = vector.extract_strided_slice %84 {offsets = [0, 0], sizes = [2, 128], strides = [1, 1]} : vector<2x512xf32> to vector<2x128xf32>
    %86 = arith.negf %85 : vector<2x128xf32>
    %87 = math.exp %86 : vector<2x128xf32>
    %cst_24 = arith.constant 1.000000e+00 : f32
    %88 = vector.broadcast %cst_24 : f32 to vector<2x128xf32>
    %89 = arith.addf %88, %87 : vector<2x128xf32>
    %90 = arith.divf %88, %89 : vector<2x128xf32>
    %91 = vector.extract_strided_slice %84 {offsets = [0, 128], sizes = [2, 128], strides = [1, 1]} : vector<2x512xf32> to vector<2x128xf32>
    %92 = arith.negf %91 : vector<2x128xf32>
    %93 = math.exp %92 : vector<2x128xf32>
    %cst_25 = arith.constant 1.000000e+00 : f32
    %94 = vector.broadcast %cst_25 : f32 to vector<2x128xf32>
    %95 = arith.addf %94, %93 : vector<2x128xf32>
    %96 = arith.divf %94, %95 : vector<2x128xf32>
    %97 = vector.extract_strided_slice %84 {offsets = [0, 256], sizes = [2, 128], strides = [1, 1]} : vector<2x512xf32> to vector<2x128xf32>
    %98 = math.tanh %97 : vector<2x128xf32>
    %99 = vector.extract_strided_slice %84 {offsets = [0, 384], sizes = [2, 128], strides = [1, 1]} : vector<2x512xf32> to vector<2x128xf32>
    %100 = arith.negf %99 : vector<2x128xf32>
    %101 = math.exp %100 : vector<2x128xf32>
    %cst_26 = arith.constant 1.000000e+00 : f32
    %102 = vector.broadcast %cst_26 : f32 to vector<2x128xf32>
    %103 = arith.addf %102, %101 : vector<2x128xf32>
    %104 = arith.divf %102, %103 : vector<2x128xf32>
    %105 = arith.mulf %96, %47 : vector<2x128xf32>
    %106 = arith.mulf %90, %98 : vector<2x128xf32>
    %107 = arith.addf %105, %106 : vector<2x128xf32>
    %108 = math.tanh %107 : vector<2x128xf32>
    %109 = arith.mulf %104, %108 : vector<2x128xf32>
    %110 = vector.extract_strided_slice %11 {offsets = [4, 0], sizes = [2, 512], strides = [1, 1]} : vector<16x512xf32> to vector<2x512xf32>
    %111 = arith.truncf %78 : vector<2x128xf32> to vector<2x128xbf16>
    %cst_27 = arith.constant dense<0.000000e+00> : vector<2x512xf32>
    %112 = tpu.matmul %111, %0, %cst_27 {dimension_numbers = #tpu.dot_dimension_numbers<[1], [0], [0], [1], [0, 0, 1, 1], [], []>} : vector<2x128xbf16>, vector<128x512xbf16>, vector<2x512xf32> -> vector<2x512xf32>
    %113 = arith.addf %110, %112 : vector<2x512xf32>
    %114 = vector.extract_strided_slice %113 {offsets = [0, 0], sizes = [2, 128], strides = [1, 1]} : vector<2x512xf32> to vector<2x128xf32>
    %115 = arith.negf %114 : vector<2x128xf32>
    %116 = math.exp %115 : vector<2x128xf32>
    %cst_28 = arith.constant 1.000000e+00 : f32
    %117 = vector.broadcast %cst_28 : f32 to vector<2x128xf32>
    %118 = arith.addf %117, %116 : vector<2x128xf32>
    %119 = arith.divf %117, %118 : vector<2x128xf32>
    %120 = vector.extract_strided_slice %113 {offsets = [0, 128], sizes = [2, 128], strides = [1, 1]} : vector<2x512xf32> to vector<2x128xf32>
    %121 = arith.negf %120 : vector<2x128xf32>
    %122 = math.exp %121 : vector<2x128xf32>
    %cst_29 = arith.constant 1.000000e+00 : f32
    %123 = vector.broadcast %cst_29 : f32 to vector<2x128xf32>
    %124 = arith.addf %123, %122 : vector<2x128xf32>
    %125 = arith.divf %123, %124 : vector<2x128xf32>
    %126 = vector.extract_strided_slice %113 {offsets = [0, 256], sizes = [2, 128], strides = [1, 1]} : vector<2x512xf32> to vector<2x128xf32>
    %127 = math.tanh %126 : vector<2x128xf32>
    %128 = vector.extract_strided_slice %113 {offsets = [0, 384], sizes = [2, 128], strides = [1, 1]} : vector<2x512xf32> to vector<2x128xf32>
    %129 = arith.negf %128 : vector<2x128xf32>
    %130 = math.exp %129 : vector<2x128xf32>
    %cst_30 = arith.constant 1.000000e+00 : f32
    %131 = vector.broadcast %cst_30 : f32 to vector<2x128xf32>
    %132 = arith.addf %131, %130 : vector<2x128xf32>
    %133 = arith.divf %131, %132 : vector<2x128xf32>
    %134 = arith.mulf %125, %76 : vector<2x128xf32>
    %135 = arith.mulf %119, %127 : vector<2x128xf32>
    %136 = arith.addf %134, %135 : vector<2x128xf32>
    %137 = math.tanh %136 : vector<2x128xf32>
    %138 = arith.mulf %133, %137 : vector<2x128xf32>
    %139 = arith.truncf %138 : vector<2x128xf32> to vector<2x128xbf16>
    %cst_31 = arith.constant dense<0.000000e+00> : vector<2x512xf32>
    %140 = tpu.matmul %139, %1, %cst_31 {dimension_numbers = #tpu.dot_dimension_numbers<[1], [0], [0], [1], [0, 0, 1, 1], [], []>} : vector<2x128xbf16>, vector<128x512xbf16>, vector<2x512xf32> -> vector<2x512xf32>
    %141 = arith.truncf %109 : vector<2x128xf32> to vector<2x128xbf16>
    %cst_32 = arith.constant dense<0.000000e+00> : vector<2x512xf32>
    %142 = tpu.matmul %141, %2, %cst_32 {dimension_numbers = #tpu.dot_dimension_numbers<[1], [0], [0], [1], [0, 0, 1, 1], [], []>} : vector<2x128xbf16>, vector<128x512xbf16>, vector<2x512xf32> -> vector<2x512xf32>
    %143 = arith.addf %140, %142 : vector<2x512xf32>
    %144 = arith.addf %143, %5 : vector<2x512xf32>
    %145 = vector.extract_strided_slice %144 {offsets = [0, 0], sizes = [2, 128], strides = [1, 1]} : vector<2x512xf32> to vector<2x128xf32>
    %146 = arith.negf %145 : vector<2x128xf32>
    %147 = math.exp %146 : vector<2x128xf32>
    %cst_33 = arith.constant 1.000000e+00 : f32
    %148 = vector.broadcast %cst_33 : f32 to vector<2x128xf32>
    %149 = arith.addf %148, %147 : vector<2x128xf32>
    %150 = arith.divf %148, %149 : vector<2x128xf32>
    %151 = vector.extract_strided_slice %144 {offsets = [0, 128], sizes = [2, 128], strides = [1, 1]} : vector<2x512xf32> to vector<2x128xf32>
    %152 = arith.negf %151 : vector<2x128xf32>
    %153 = math.exp %152 : vector<2x128xf32>
    %cst_34 = arith.constant 1.000000e+00 : f32
    %154 = vector.broadcast %cst_34 : f32 to vector<2x128xf32>
    %155 = arith.addf %154, %153 : vector<2x128xf32>
    %156 = arith.divf %154, %155 : vector<2x128xf32>
    %157 = vector.extract_strided_slice %144 {offsets = [0, 256], sizes = [2, 128], strides = [1, 1]} : vector<2x512xf32> to vector<2x128xf32>
    %158 = math.tanh %157 : vector<2x128xf32>
    %159 = vector.extract_strided_slice %144 {offsets = [0, 384], sizes = [2, 128], strides = [1, 1]} : vector<2x512xf32> to vector<2x128xf32>
    %160 = arith.negf %159 : vector<2x128xf32>
    %161 = math.exp %160 : vector<2x128xf32>
    %cst_35 = arith.constant 1.000000e+00 : f32
    %162 = vector.broadcast %cst_35 : f32 to vector<2x128xf32>
    %163 = arith.addf %162, %161 : vector<2x128xf32>
    %164 = arith.divf %162, %163 : vector<2x128xf32>
    %165 = arith.mulf %156, %107 : vector<2x128xf32>
    %166 = arith.mulf %150, %158 : vector<2x128xf32>
    %167 = arith.addf %165, %166 : vector<2x128xf32>
    %168 = math.tanh %167 : vector<2x128xf32>
    %169 = arith.mulf %164, %168 : vector<2x128xf32>
    %170 = vector.extract_strided_slice %11 {offsets = [6, 0], sizes = [2, 512], strides = [1, 1]} : vector<16x512xf32> to vector<2x512xf32>
    %171 = arith.truncf %138 : vector<2x128xf32> to vector<2x128xbf16>
    %cst_36 = arith.constant dense<0.000000e+00> : vector<2x512xf32>
    %172 = tpu.matmul %171, %0, %cst_36 {dimension_numbers = #tpu.dot_dimension_numbers<[1], [0], [0], [1], [0, 0, 1, 1], [], []>} : vector<2x128xbf16>, vector<128x512xbf16>, vector<2x512xf32> -> vector<2x512xf32>
    %173 = arith.addf %170, %172 : vector<2x512xf32>
    %174 = vector.extract_strided_slice %173 {offsets = [0, 0], sizes = [2, 128], strides = [1, 1]} : vector<2x512xf32> to vector<2x128xf32>
    %175 = arith.negf %174 : vector<2x128xf32>
    %176 = math.exp %175 : vector<2x128xf32>
    %cst_37 = arith.constant 1.000000e+00 : f32
    %177 = vector.broadcast %cst_37 : f32 to vector<2x128xf32>
    %178 = arith.addf %177, %176 : vector<2x128xf32>
    %179 = arith.divf %177, %178 : vector<2x128xf32>
    %180 = vector.extract_strided_slice %173 {offsets = [0, 128], sizes = [2, 128], strides = [1, 1]} : vector<2x512xf32> to vector<2x128xf32>
    %181 = arith.negf %180 : vector<2x128xf32>
    %182 = math.exp %181 : vector<2x128xf32>
    %cst_38 = arith.constant 1.000000e+00 : f32
    %183 = vector.broadcast %cst_38 : f32 to vector<2x128xf32>
    %184 = arith.addf %183, %182 : vector<2x128xf32>
    %185 = arith.divf %183, %184 : vector<2x128xf32>
    %186 = vector.extract_strided_slice %173 {offsets = [0, 256], sizes = [2, 128], strides = [1, 1]} : vector<2x512xf32> to vector<2x128xf32>
    %187 = math.tanh %186 : vector<2x128xf32>
    %188 = vector.extract_strided_slice %173 {offsets = [0, 384], sizes = [2, 128], strides = [1, 1]} : vector<2x512xf32> to vector<2x128xf32>
    %189 = arith.negf %188 : vector<2x128xf32>
    %190 = math.exp %189 : vector<2x128xf32>
    %cst_39 = arith.constant 1.000000e+00 : f32
    %191 = vector.broadcast %cst_39 : f32 to vector<2x128xf32>
    %192 = arith.addf %191, %190 : vector<2x128xf32>
    %193 = arith.divf %191, %192 : vector<2x128xf32>
    %194 = arith.mulf %185, %136 : vector<2x128xf32>
    %195 = arith.mulf %179, %187 : vector<2x128xf32>
    %196 = arith.addf %194, %195 : vector<2x128xf32>
    %197 = math.tanh %196 : vector<2x128xf32>
    %198 = arith.mulf %193, %197 : vector<2x128xf32>
    %199 = arith.truncf %198 : vector<2x128xf32> to vector<2x128xbf16>
    %cst_40 = arith.constant dense<0.000000e+00> : vector<2x512xf32>
    %200 = tpu.matmul %199, %1, %cst_40 {dimension_numbers = #tpu.dot_dimension_numbers<[1], [0], [0], [1], [0, 0, 1, 1], [], []>} : vector<2x128xbf16>, vector<128x512xbf16>, vector<2x512xf32> -> vector<2x512xf32>
    %201 = arith.truncf %169 : vector<2x128xf32> to vector<2x128xbf16>
    %cst_41 = arith.constant dense<0.000000e+00> : vector<2x512xf32>
    %202 = tpu.matmul %201, %2, %cst_41 {dimension_numbers = #tpu.dot_dimension_numbers<[1], [0], [0], [1], [0, 0, 1, 1], [], []>} : vector<2x128xbf16>, vector<128x512xbf16>, vector<2x512xf32> -> vector<2x512xf32>
    %203 = arith.addf %200, %202 : vector<2x512xf32>
    %204 = arith.addf %203, %5 : vector<2x512xf32>
    %205 = vector.extract_strided_slice %204 {offsets = [0, 0], sizes = [2, 128], strides = [1, 1]} : vector<2x512xf32> to vector<2x128xf32>
    %206 = arith.negf %205 : vector<2x128xf32>
    %207 = math.exp %206 : vector<2x128xf32>
    %cst_42 = arith.constant 1.000000e+00 : f32
    %208 = vector.broadcast %cst_42 : f32 to vector<2x128xf32>
    %209 = arith.addf %208, %207 : vector<2x128xf32>
    %210 = arith.divf %208, %209 : vector<2x128xf32>
    %211 = vector.extract_strided_slice %204 {offsets = [0, 128], sizes = [2, 128], strides = [1, 1]} : vector<2x512xf32> to vector<2x128xf32>
    %212 = arith.negf %211 : vector<2x128xf32>
    %213 = math.exp %212 : vector<2x128xf32>
    %cst_43 = arith.constant 1.000000e+00 : f32
    %214 = vector.broadcast %cst_43 : f32 to vector<2x128xf32>
    %215 = arith.addf %214, %213 : vector<2x128xf32>
    %216 = arith.divf %214, %215 : vector<2x128xf32>
    %217 = vector.extract_strided_slice %204 {offsets = [0, 256], sizes = [2, 128], strides = [1, 1]} : vector<2x512xf32> to vector<2x128xf32>
    %218 = math.tanh %217 : vector<2x128xf32>
    %219 = vector.extract_strided_slice %204 {offsets = [0, 384], sizes = [2, 128], strides = [1, 1]} : vector<2x512xf32> to vector<2x128xf32>
    %220 = arith.negf %219 : vector<2x128xf32>
    %221 = math.exp %220 : vector<2x128xf32>
    %cst_44 = arith.constant 1.000000e+00 : f32
    %222 = vector.broadcast %cst_44 : f32 to vector<2x128xf32>
    %223 = arith.addf %222, %221 : vector<2x128xf32>
    %224 = arith.divf %222, %223 : vector<2x128xf32>
    %225 = arith.mulf %216, %167 : vector<2x128xf32>
    %226 = arith.mulf %210, %218 : vector<2x128xf32>
    %227 = arith.addf %225, %226 : vector<2x128xf32>
    %228 = math.tanh %227 : vector<2x128xf32>
    %229 = arith.mulf %224, %228 : vector<2x128xf32>
    %230 = vector.extract_strided_slice %11 {offsets = [8, 0], sizes = [2, 512], strides = [1, 1]} : vector<16x512xf32> to vector<2x512xf32>
    %231 = arith.truncf %198 : vector<2x128xf32> to vector<2x128xbf16>
    %cst_45 = arith.constant dense<0.000000e+00> : vector<2x512xf32>
    %232 = tpu.matmul %231, %0, %cst_45 {dimension_numbers = #tpu.dot_dimension_numbers<[1], [0], [0], [1], [0, 0, 1, 1], [], []>} : vector<2x128xbf16>, vector<128x512xbf16>, vector<2x512xf32> -> vector<2x512xf32>
    %233 = arith.addf %230, %232 : vector<2x512xf32>
    %234 = vector.extract_strided_slice %233 {offsets = [0, 0], sizes = [2, 128], strides = [1, 1]} : vector<2x512xf32> to vector<2x128xf32>
    %235 = arith.negf %234 : vector<2x128xf32>
    %236 = math.exp %235 : vector<2x128xf32>
    %cst_46 = arith.constant 1.000000e+00 : f32
    %237 = vector.broadcast %cst_46 : f32 to vector<2x128xf32>
    %238 = arith.addf %237, %236 : vector<2x128xf32>
    %239 = arith.divf %237, %238 : vector<2x128xf32>
    %240 = vector.extract_strided_slice %233 {offsets = [0, 128], sizes = [2, 128], strides = [1, 1]} : vector<2x512xf32> to vector<2x128xf32>
    %241 = arith.negf %240 : vector<2x128xf32>
    %242 = math.exp %241 : vector<2x128xf32>
    %cst_47 = arith.constant 1.000000e+00 : f32
    %243 = vector.broadcast %cst_47 : f32 to vector<2x128xf32>
    %244 = arith.addf %243, %242 : vector<2x128xf32>
    %245 = arith.divf %243, %244 : vector<2x128xf32>
    %246 = vector.extract_strided_slice %233 {offsets = [0, 256], sizes = [2, 128], strides = [1, 1]} : vector<2x512xf32> to vector<2x128xf32>
    %247 = math.tanh %246 : vector<2x128xf32>
    %248 = vector.extract_strided_slice %233 {offsets = [0, 384], sizes = [2, 128], strides = [1, 1]} : vector<2x512xf32> to vector<2x128xf32>
    %249 = arith.negf %248 : vector<2x128xf32>
    %250 = math.exp %249 : vector<2x128xf32>
    %cst_48 = arith.constant 1.000000e+00 : f32
    %251 = vector.broadcast %cst_48 : f32 to vector<2x128xf32>
    %252 = arith.addf %251, %250 : vector<2x128xf32>
    %253 = arith.divf %251, %252 : vector<2x128xf32>
    %254 = arith.mulf %245, %196 : vector<2x128xf32>
    %255 = arith.mulf %239, %247 : vector<2x128xf32>
    %256 = arith.addf %254, %255 : vector<2x128xf32>
    %257 = math.tanh %256 : vector<2x128xf32>
    %258 = arith.mulf %253, %257 : vector<2x128xf32>
    %259 = arith.truncf %258 : vector<2x128xf32> to vector<2x128xbf16>
    %cst_49 = arith.constant dense<0.000000e+00> : vector<2x512xf32>
    %260 = tpu.matmul %259, %1, %cst_49 {dimension_numbers = #tpu.dot_dimension_numbers<[1], [0], [0], [1], [0, 0, 1, 1], [], []>} : vector<2x128xbf16>, vector<128x512xbf16>, vector<2x512xf32> -> vector<2x512xf32>
    %261 = arith.truncf %229 : vector<2x128xf32> to vector<2x128xbf16>
    %cst_50 = arith.constant dense<0.000000e+00> : vector<2x512xf32>
    %262 = tpu.matmul %261, %2, %cst_50 {dimension_numbers = #tpu.dot_dimension_numbers<[1], [0], [0], [1], [0, 0, 1, 1], [], []>} : vector<2x128xbf16>, vector<128x512xbf16>, vector<2x512xf32> -> vector<2x512xf32>
    %263 = arith.addf %260, %262 : vector<2x512xf32>
    %264 = arith.addf %263, %5 : vector<2x512xf32>
    %265 = vector.extract_strided_slice %264 {offsets = [0, 0], sizes = [2, 128], strides = [1, 1]} : vector<2x512xf32> to vector<2x128xf32>
    %266 = arith.negf %265 : vector<2x128xf32>
    %267 = math.exp %266 : vector<2x128xf32>
    %cst_51 = arith.constant 1.000000e+00 : f32
    %268 = vector.broadcast %cst_51 : f32 to vector<2x128xf32>
    %269 = arith.addf %268, %267 : vector<2x128xf32>
    %270 = arith.divf %268, %269 : vector<2x128xf32>
    %271 = vector.extract_strided_slice %264 {offsets = [0, 128], sizes = [2, 128], strides = [1, 1]} : vector<2x512xf32> to vector<2x128xf32>
    %272 = arith.negf %271 : vector<2x128xf32>
    %273 = math.exp %272 : vector<2x128xf32>
    %cst_52 = arith.constant 1.000000e+00 : f32
    %274 = vector.broadcast %cst_52 : f32 to vector<2x128xf32>
    %275 = arith.addf %274, %273 : vector<2x128xf32>
    %276 = arith.divf %274, %275 : vector<2x128xf32>
    %277 = vector.extract_strided_slice %264 {offsets = [0, 256], sizes = [2, 128], strides = [1, 1]} : vector<2x512xf32> to vector<2x128xf32>
    %278 = math.tanh %277 : vector<2x128xf32>
    %279 = vector.extract_strided_slice %264 {offsets = [0, 384], sizes = [2, 128], strides = [1, 1]} : vector<2x512xf32> to vector<2x128xf32>
    %280 = arith.negf %279 : vector<2x128xf32>
    %281 = math.exp %280 : vector<2x128xf32>
    %cst_53 = arith.constant 1.000000e+00 : f32
    %282 = vector.broadcast %cst_53 : f32 to vector<2x128xf32>
    %283 = arith.addf %282, %281 : vector<2x128xf32>
    %284 = arith.divf %282, %283 : vector<2x128xf32>
    %285 = arith.mulf %276, %227 : vector<2x128xf32>
    %286 = arith.mulf %270, %278 : vector<2x128xf32>
    %287 = arith.addf %285, %286 : vector<2x128xf32>
    %288 = math.tanh %287 : vector<2x128xf32>
    %289 = arith.mulf %284, %288 : vector<2x128xf32>
    %290 = vector.extract_strided_slice %11 {offsets = [10, 0], sizes = [2, 512], strides = [1, 1]} : vector<16x512xf32> to vector<2x512xf32>
    %291 = arith.truncf %258 : vector<2x128xf32> to vector<2x128xbf16>
    %cst_54 = arith.constant dense<0.000000e+00> : vector<2x512xf32>
    %292 = tpu.matmul %291, %0, %cst_54 {dimension_numbers = #tpu.dot_dimension_numbers<[1], [0], [0], [1], [0, 0, 1, 1], [], []>} : vector<2x128xbf16>, vector<128x512xbf16>, vector<2x512xf32> -> vector<2x512xf32>
    %293 = arith.addf %290, %292 : vector<2x512xf32>
    %294 = vector.extract_strided_slice %293 {offsets = [0, 0], sizes = [2, 128], strides = [1, 1]} : vector<2x512xf32> to vector<2x128xf32>
    %295 = arith.negf %294 : vector<2x128xf32>
    %296 = math.exp %295 : vector<2x128xf32>
    %cst_55 = arith.constant 1.000000e+00 : f32
    %297 = vector.broadcast %cst_55 : f32 to vector<2x128xf32>
    %298 = arith.addf %297, %296 : vector<2x128xf32>
    %299 = arith.divf %297, %298 : vector<2x128xf32>
    %300 = vector.extract_strided_slice %293 {offsets = [0, 128], sizes = [2, 128], strides = [1, 1]} : vector<2x512xf32> to vector<2x128xf32>
    %301 = arith.negf %300 : vector<2x128xf32>
    %302 = math.exp %301 : vector<2x128xf32>
    %cst_56 = arith.constant 1.000000e+00 : f32
    %303 = vector.broadcast %cst_56 : f32 to vector<2x128xf32>
    %304 = arith.addf %303, %302 : vector<2x128xf32>
    %305 = arith.divf %303, %304 : vector<2x128xf32>
    %306 = vector.extract_strided_slice %293 {offsets = [0, 256], sizes = [2, 128], strides = [1, 1]} : vector<2x512xf32> to vector<2x128xf32>
    %307 = math.tanh %306 : vector<2x128xf32>
    %308 = vector.extract_strided_slice %293 {offsets = [0, 384], sizes = [2, 128], strides = [1, 1]} : vector<2x512xf32> to vector<2x128xf32>
    %309 = arith.negf %308 : vector<2x128xf32>
    %310 = math.exp %309 : vector<2x128xf32>
    %cst_57 = arith.constant 1.000000e+00 : f32
    %311 = vector.broadcast %cst_57 : f32 to vector<2x128xf32>
    %312 = arith.addf %311, %310 : vector<2x128xf32>
    %313 = arith.divf %311, %312 : vector<2x128xf32>
    %314 = arith.mulf %305, %256 : vector<2x128xf32>
    %315 = arith.mulf %299, %307 : vector<2x128xf32>
    %316 = arith.addf %314, %315 : vector<2x128xf32>
    %317 = math.tanh %316 : vector<2x128xf32>
    %318 = arith.mulf %313, %317 : vector<2x128xf32>
    %319 = arith.truncf %318 : vector<2x128xf32> to vector<2x128xbf16>
    %cst_58 = arith.constant dense<0.000000e+00> : vector<2x512xf32>
    %320 = tpu.matmul %319, %1, %cst_58 {dimension_numbers = #tpu.dot_dimension_numbers<[1], [0], [0], [1], [0, 0, 1, 1], [], []>} : vector<2x128xbf16>, vector<128x512xbf16>, vector<2x512xf32> -> vector<2x512xf32>
    %321 = arith.truncf %289 : vector<2x128xf32> to vector<2x128xbf16>
    %cst_59 = arith.constant dense<0.000000e+00> : vector<2x512xf32>
    %322 = tpu.matmul %321, %2, %cst_59 {dimension_numbers = #tpu.dot_dimension_numbers<[1], [0], [0], [1], [0, 0, 1, 1], [], []>} : vector<2x128xbf16>, vector<128x512xbf16>, vector<2x512xf32> -> vector<2x512xf32>
    %323 = arith.addf %320, %322 : vector<2x512xf32>
    %324 = arith.addf %323, %5 : vector<2x512xf32>
    %325 = vector.extract_strided_slice %324 {offsets = [0, 0], sizes = [2, 128], strides = [1, 1]} : vector<2x512xf32> to vector<2x128xf32>
    %326 = arith.negf %325 : vector<2x128xf32>
    %327 = math.exp %326 : vector<2x128xf32>
    %cst_60 = arith.constant 1.000000e+00 : f32
    %328 = vector.broadcast %cst_60 : f32 to vector<2x128xf32>
    %329 = arith.addf %328, %327 : vector<2x128xf32>
    %330 = arith.divf %328, %329 : vector<2x128xf32>
    %331 = vector.extract_strided_slice %324 {offsets = [0, 128], sizes = [2, 128], strides = [1, 1]} : vector<2x512xf32> to vector<2x128xf32>
    %332 = arith.negf %331 : vector<2x128xf32>
    %333 = math.exp %332 : vector<2x128xf32>
    %cst_61 = arith.constant 1.000000e+00 : f32
    %334 = vector.broadcast %cst_61 : f32 to vector<2x128xf32>
    %335 = arith.addf %334, %333 : vector<2x128xf32>
    %336 = arith.divf %334, %335 : vector<2x128xf32>
    %337 = vector.extract_strided_slice %324 {offsets = [0, 256], sizes = [2, 128], strides = [1, 1]} : vector<2x512xf32> to vector<2x128xf32>
    %338 = math.tanh %337 : vector<2x128xf32>
    %339 = vector.extract_strided_slice %324 {offsets = [0, 384], sizes = [2, 128], strides = [1, 1]} : vector<2x512xf32> to vector<2x128xf32>
    %340 = arith.negf %339 : vector<2x128xf32>
    %341 = math.exp %340 : vector<2x128xf32>
    %cst_62 = arith.constant 1.000000e+00 : f32
    %342 = vector.broadcast %cst_62 : f32 to vector<2x128xf32>
    %343 = arith.addf %342, %341 : vector<2x128xf32>
    %344 = arith.divf %342, %343 : vector<2x128xf32>
    %345 = arith.mulf %336, %287 : vector<2x128xf32>
    %346 = arith.mulf %330, %338 : vector<2x128xf32>
    %347 = arith.addf %345, %346 : vector<2x128xf32>
    %348 = math.tanh %347 : vector<2x128xf32>
    %349 = arith.mulf %344, %348 : vector<2x128xf32>
    %350 = vector.extract_strided_slice %11 {offsets = [12, 0], sizes = [2, 512], strides = [1, 1]} : vector<16x512xf32> to vector<2x512xf32>
    %351 = arith.truncf %318 : vector<2x128xf32> to vector<2x128xbf16>
    %cst_63 = arith.constant dense<0.000000e+00> : vector<2x512xf32>
    %352 = tpu.matmul %351, %0, %cst_63 {dimension_numbers = #tpu.dot_dimension_numbers<[1], [0], [0], [1], [0, 0, 1, 1], [], []>} : vector<2x128xbf16>, vector<128x512xbf16>, vector<2x512xf32> -> vector<2x512xf32>
    %353 = arith.addf %350, %352 : vector<2x512xf32>
    %354 = vector.extract_strided_slice %353 {offsets = [0, 0], sizes = [2, 128], strides = [1, 1]} : vector<2x512xf32> to vector<2x128xf32>
    %355 = arith.negf %354 : vector<2x128xf32>
    %356 = math.exp %355 : vector<2x128xf32>
    %cst_64 = arith.constant 1.000000e+00 : f32
    %357 = vector.broadcast %cst_64 : f32 to vector<2x128xf32>
    %358 = arith.addf %357, %356 : vector<2x128xf32>
    %359 = arith.divf %357, %358 : vector<2x128xf32>
    %360 = vector.extract_strided_slice %353 {offsets = [0, 128], sizes = [2, 128], strides = [1, 1]} : vector<2x512xf32> to vector<2x128xf32>
    %361 = arith.negf %360 : vector<2x128xf32>
    %362 = math.exp %361 : vector<2x128xf32>
    %cst_65 = arith.constant 1.000000e+00 : f32
    %363 = vector.broadcast %cst_65 : f32 to vector<2x128xf32>
    %364 = arith.addf %363, %362 : vector<2x128xf32>
    %365 = arith.divf %363, %364 : vector<2x128xf32>
    %366 = vector.extract_strided_slice %353 {offsets = [0, 256], sizes = [2, 128], strides = [1, 1]} : vector<2x512xf32> to vector<2x128xf32>
    %367 = math.tanh %366 : vector<2x128xf32>
    %368 = vector.extract_strided_slice %353 {offsets = [0, 384], sizes = [2, 128], strides = [1, 1]} : vector<2x512xf32> to vector<2x128xf32>
    %369 = arith.negf %368 : vector<2x128xf32>
    %370 = math.exp %369 : vector<2x128xf32>
    %cst_66 = arith.constant 1.000000e+00 : f32
    %371 = vector.broadcast %cst_66 : f32 to vector<2x128xf32>
    %372 = arith.addf %371, %370 : vector<2x128xf32>
    %373 = arith.divf %371, %372 : vector<2x128xf32>
    %374 = arith.mulf %365, %316 : vector<2x128xf32>
    %375 = arith.mulf %359, %367 : vector<2x128xf32>
    %376 = arith.addf %374, %375 : vector<2x128xf32>
    %377 = math.tanh %376 : vector<2x128xf32>
    %378 = arith.mulf %373, %377 : vector<2x128xf32>
    %379 = arith.truncf %378 : vector<2x128xf32> to vector<2x128xbf16>
    %cst_67 = arith.constant dense<0.000000e+00> : vector<2x512xf32>
    %380 = tpu.matmul %379, %1, %cst_67 {dimension_numbers = #tpu.dot_dimension_numbers<[1], [0], [0], [1], [0, 0, 1, 1], [], []>} : vector<2x128xbf16>, vector<128x512xbf16>, vector<2x512xf32> -> vector<2x512xf32>
    %381 = arith.truncf %349 : vector<2x128xf32> to vector<2x128xbf16>
    %cst_68 = arith.constant dense<0.000000e+00> : vector<2x512xf32>
    %382 = tpu.matmul %381, %2, %cst_68 {dimension_numbers = #tpu.dot_dimension_numbers<[1], [0], [0], [1], [0, 0, 1, 1], [], []>} : vector<2x128xbf16>, vector<128x512xbf16>, vector<2x512xf32> -> vector<2x512xf32>
    %383 = arith.addf %380, %382 : vector<2x512xf32>
    %384 = arith.addf %383, %5 : vector<2x512xf32>
    %385 = vector.extract_strided_slice %384 {offsets = [0, 0], sizes = [2, 128], strides = [1, 1]} : vector<2x512xf32> to vector<2x128xf32>
    %386 = arith.negf %385 : vector<2x128xf32>
    %387 = math.exp %386 : vector<2x128xf32>
    %cst_69 = arith.constant 1.000000e+00 : f32
    %388 = vector.broadcast %cst_69 : f32 to vector<2x128xf32>
    %389 = arith.addf %388, %387 : vector<2x128xf32>
    %390 = arith.divf %388, %389 : vector<2x128xf32>
    %391 = vector.extract_strided_slice %384 {offsets = [0, 128], sizes = [2, 128], strides = [1, 1]} : vector<2x512xf32> to vector<2x128xf32>
    %392 = arith.negf %391 : vector<2x128xf32>
    %393 = math.exp %392 : vector<2x128xf32>
    %cst_70 = arith.constant 1.000000e+00 : f32
    %394 = vector.broadcast %cst_70 : f32 to vector<2x128xf32>
    %395 = arith.addf %394, %393 : vector<2x128xf32>
    %396 = arith.divf %394, %395 : vector<2x128xf32>
    %397 = vector.extract_strided_slice %384 {offsets = [0, 256], sizes = [2, 128], strides = [1, 1]} : vector<2x512xf32> to vector<2x128xf32>
    %398 = math.tanh %397 : vector<2x128xf32>
    %399 = vector.extract_strided_slice %384 {offsets = [0, 384], sizes = [2, 128], strides = [1, 1]} : vector<2x512xf32> to vector<2x128xf32>
    %400 = arith.negf %399 : vector<2x128xf32>
    %401 = math.exp %400 : vector<2x128xf32>
    %cst_71 = arith.constant 1.000000e+00 : f32
    %402 = vector.broadcast %cst_71 : f32 to vector<2x128xf32>
    %403 = arith.addf %402, %401 : vector<2x128xf32>
    %404 = arith.divf %402, %403 : vector<2x128xf32>
    %405 = arith.mulf %396, %347 : vector<2x128xf32>
    %406 = arith.mulf %390, %398 : vector<2x128xf32>
    %407 = arith.addf %405, %406 : vector<2x128xf32>
    %408 = math.tanh %407 : vector<2x128xf32>
    %409 = arith.mulf %404, %408 : vector<2x128xf32>
    %410 = vector.extract_strided_slice %11 {offsets = [14, 0], sizes = [2, 512], strides = [1, 1]} : vector<16x512xf32> to vector<2x512xf32>
    %411 = arith.truncf %378 : vector<2x128xf32> to vector<2x128xbf16>
    %cst_72 = arith.constant dense<0.000000e+00> : vector<2x512xf32>
    %412 = tpu.matmul %411, %0, %cst_72 {dimension_numbers = #tpu.dot_dimension_numbers<[1], [0], [0], [1], [0, 0, 1, 1], [], []>} : vector<2x128xbf16>, vector<128x512xbf16>, vector<2x512xf32> -> vector<2x512xf32>
    %413 = arith.addf %410, %412 : vector<2x512xf32>
    %414 = vector.extract_strided_slice %413 {offsets = [0, 0], sizes = [2, 128], strides = [1, 1]} : vector<2x512xf32> to vector<2x128xf32>
    %415 = arith.negf %414 : vector<2x128xf32>
    %416 = math.exp %415 : vector<2x128xf32>
    %cst_73 = arith.constant 1.000000e+00 : f32
    %417 = vector.broadcast %cst_73 : f32 to vector<2x128xf32>
    %418 = arith.addf %417, %416 : vector<2x128xf32>
    %419 = arith.divf %417, %418 : vector<2x128xf32>
    %420 = vector.extract_strided_slice %413 {offsets = [0, 128], sizes = [2, 128], strides = [1, 1]} : vector<2x512xf32> to vector<2x128xf32>
    %421 = arith.negf %420 : vector<2x128xf32>
    %422 = math.exp %421 : vector<2x128xf32>
    %cst_74 = arith.constant 1.000000e+00 : f32
    %423 = vector.broadcast %cst_74 : f32 to vector<2x128xf32>
    %424 = arith.addf %423, %422 : vector<2x128xf32>
    %425 = arith.divf %423, %424 : vector<2x128xf32>
    %426 = vector.extract_strided_slice %413 {offsets = [0, 256], sizes = [2, 128], strides = [1, 1]} : vector<2x512xf32> to vector<2x128xf32>
    %427 = math.tanh %426 : vector<2x128xf32>
    %428 = vector.extract_strided_slice %413 {offsets = [0, 384], sizes = [2, 128], strides = [1, 1]} : vector<2x512xf32> to vector<2x128xf32>
    %429 = arith.negf %428 : vector<2x128xf32>
    %430 = math.exp %429 : vector<2x128xf32>
    %cst_75 = arith.constant 1.000000e+00 : f32
    %431 = vector.broadcast %cst_75 : f32 to vector<2x128xf32>
    %432 = arith.addf %431, %430 : vector<2x128xf32>
    %433 = arith.divf %431, %432 : vector<2x128xf32>
    %434 = arith.mulf %425, %376 : vector<2x128xf32>
    %435 = arith.mulf %419, %427 : vector<2x128xf32>
    %436 = arith.addf %434, %435 : vector<2x128xf32>
    %437 = math.tanh %436 : vector<2x128xf32>
    %438 = arith.mulf %433, %437 : vector<2x128xf32>
    %439 = arith.truncf %438 : vector<2x128xf32> to vector<2x128xbf16>
    %cst_76 = arith.constant dense<0.000000e+00> : vector<2x512xf32>
    %440 = tpu.matmul %439, %1, %cst_76 {dimension_numbers = #tpu.dot_dimension_numbers<[1], [0], [0], [1], [0, 0, 1, 1], [], []>} : vector<2x128xbf16>, vector<128x512xbf16>, vector<2x512xf32> -> vector<2x512xf32>
    %441 = arith.truncf %409 : vector<2x128xf32> to vector<2x128xbf16>
    %cst_77 = arith.constant dense<0.000000e+00> : vector<2x512xf32>
    %442 = tpu.matmul %441, %2, %cst_77 {dimension_numbers = #tpu.dot_dimension_numbers<[1], [0], [0], [1], [0, 0, 1, 1], [], []>} : vector<2x128xbf16>, vector<128x512xbf16>, vector<2x512xf32> -> vector<2x512xf32>
    %443 = arith.addf %440, %442 : vector<2x512xf32>
    %444 = arith.addf %443, %5 : vector<2x512xf32>
    %445 = vector.extract_strided_slice %444 {offsets = [0, 0], sizes = [2, 128], strides = [1, 1]} : vector<2x512xf32> to vector<2x128xf32>
    %446 = arith.negf %445 : vector<2x128xf32>
    %447 = math.exp %446 : vector<2x128xf32>
    %cst_78 = arith.constant 1.000000e+00 : f32
    %448 = vector.broadcast %cst_78 : f32 to vector<2x128xf32>
    %449 = arith.addf %448, %447 : vector<2x128xf32>
    %450 = arith.divf %448, %449 : vector<2x128xf32>
    %451 = vector.extract_strided_slice %444 {offsets = [0, 128], sizes = [2, 128], strides = [1, 1]} : vector<2x512xf32> to vector<2x128xf32>
    %452 = arith.negf %451 : vector<2x128xf32>
    %453 = math.exp %452 : vector<2x128xf32>
    %cst_79 = arith.constant 1.000000e+00 : f32
    %454 = vector.broadcast %cst_79 : f32 to vector<2x128xf32>
    %455 = arith.addf %454, %453 : vector<2x128xf32>
    %456 = arith.divf %454, %455 : vector<2x128xf32>
    %457 = vector.extract_strided_slice %444 {offsets = [0, 256], sizes = [2, 128], strides = [1, 1]} : vector<2x512xf32> to vector<2x128xf32>
    %458 = math.tanh %457 : vector<2x128xf32>
    %459 = vector.extract_strided_slice %444 {offsets = [0, 384], sizes = [2, 128], strides = [1, 1]} : vector<2x512xf32> to vector<2x128xf32>
    %460 = arith.negf %459 : vector<2x128xf32>
    %461 = math.exp %460 : vector<2x128xf32>
    %cst_80 = arith.constant 1.000000e+00 : f32
    %462 = vector.broadcast %cst_80 : f32 to vector<2x128xf32>
    %463 = arith.addf %462, %461 : vector<2x128xf32>
    %464 = arith.divf %462, %463 : vector<2x128xf32>
    %465 = arith.mulf %456, %407 : vector<2x128xf32>
    %466 = arith.mulf %450, %458 : vector<2x128xf32>
    %467 = arith.addf %465, %466 : vector<2x128xf32>
    %468 = math.tanh %467 : vector<2x128xf32>
    %469 = arith.mulf %464, %468 : vector<2x128xf32>
    %470 = arith.truncf %469 : vector<2x128xf32> to vector<2x128xbf16>
    %c0_81 = arith.constant 0 : index
    %c0_82 = arith.constant 0 : index
    %471 = vector.load %arg7[%c0_81, %c0_82] : memref<128x128xbf16, #tpu.memory_space<vmem>>, vector<128x128xbf16>
    %cst_83 = arith.constant dense<0.000000e+00> : vector<2x128xf32>
    %472 = tpu.matmul %470, %471, %cst_83 {dimension_numbers = #tpu.dot_dimension_numbers<[1], [0], [0], [1], [0, 0, 1, 1], [], []>} : vector<2x128xbf16>, vector<128x128xbf16>, vector<2x128xf32> -> vector<2x128xf32>
    %c0_84 = arith.constant 0 : index
    %c0_85 = arith.constant 0 : index
    %473 = vector.load %arg8[%c0_84, %c0_85] : memref<1x128xf32, #tpu.memory_space<vmem>>, vector<1x128xf32>
    %474 = vector.broadcast %473 : vector<1x128xf32> to vector<2x128xf32>
    %475 = arith.addf %472, %474 : vector<2x128xf32>
    %c0_86 = arith.constant 0 : index
    %c0_87 = arith.constant 0 : index
    %476 = vector.load %arg9[%c0_86, %c0_87] : memref<2x128xf32, #tpu.memory_space<vmem>>, vector<2x128xf32>
    tpu.vector_store %arg9[%c0_86, %c0_87], %475 {strides = array<i32>} : memref<2x128xf32, #tpu.memory_space<vmem>>, vector<2x128xf32>,
    return
  }
}

</mosaic_0001>

<bundles_post_ra>
// kernel: rnn_forward.1
= control target key start
LH: loop header
LB: loop body
LE: loop exit
PB: predicated region body
PF: predicated region fallthrough
CT: control target
= control target key end

     0   :  { %v6707_v2 = vmov 0   ;;  %s6693_s0 = inlined_call_operand.vmem [shape: bf16[16,128], index: 0, kind: input, shape index: {}]   ;;  %s6694_s1 = inlined_call_operand.vmem [shape: bf16[128,512], index: 1, kind: input, shape index: {}]   ;;  %s6695_s2 = inlined_call_operand.vmem [shape: bf16[128,512], index: 2, kind: input, shape index: {}]   ;;  %s6696_s3 = inlined_call_operand.vmem [shape: f32[1,512], index: 3, kind: input, shape index: {}]   ;;  %s6697_s4 = inlined_call_operand.vmem [shape: bf16[128,512], index: 4, kind: input, shape index: {}]   ;;  %s6698_s5 = inlined_call_operand.vmem [shape: bf16[128,512], index: 5, kind: input, shape index: {}]   ;;  %s6699_s6 = inlined_call_operand.vmem [shape: f32[1,512], index: 6, kind: input, shape index: {}]   ;;  %s6700_s7 = inlined_call_operand.vmem [shape: bf16[128,128], index: 7, kind: input, shape index: {}]   ;;  %s6701_s8 = inlined_call_operand.vmem [shape: f32[1,128], index: 8, kind: input, shape index: {}]   ;;  %s6702_s9 = inlined_call_operand.hbm [shape: f32[2,128], index: 9, kind: output, shape index: {}]  }
   0x1   :  { %v3637_v0 = vld [vmem:[%s6694_s1 + $0x4] ss:$16 sps:$4 sm:$0xff]   ;;  %v3639_v1 = vld [vmem:[%s6694_s1] ss:$16 sps:$4 sm:$0xff]   ;;  %406 = vmatprep.mubr.bf16.mxu0 %v6707_v2  ;;  %449 = vmatprep.mubr.bf16.mxu1 %v6707_v2  ;;  %v3646_v6 = vld [vmem:[%s6694_s1 + $0xc] ss:$16 sps:$4 sm:$0xff]  }
   0x2   :  { %374 = vmatprep.subr.bf16.mxu0 %v3637_v0  ;;  %v3640_v3 = vld [vmem:[%s6694_s1 + $0x24] ss:$16 sps:$4 sm:$0xff]   ;;  %v3642_v4 = vld [vmem:[%s6694_s1 + $0x20] ss:$16 sps:$4 sm:$0xff]   ;;  %v3648_v7 = vld [vmem:[%s6694_s1 + $0x8] ss:$16 sps:$4 sm:$0xff]   ;;  %417 = vmatprep.subr.bf16.mxu1 %v3646_v6 }
   0x3   :  { %375 = vmatpush1.bf16.msra.mxu0 %v3639_v1  ;;  %v3643_v5 = vld [vmem:[%s6694_s1 + $0x44] ss:$16 sps:$4 sm:$0xff]   ;;  %v3645_v8 = vld [vmem:[%s6694_s1 + $0x40] ss:$16 sps:$4 sm:$0xff]   ;;  %418 = vmatpush1.bf16.msra.mxu1 %v3648_v7  ;;  %v3652_v9 = vld [vmem:[%s6694_s1 + $0x2c] ss:$16 sps:$4 sm:$0xff]  }
   0x4   :  { %376 = vmatprep.subr.bf16.mxu0 %v3640_v3  ;;  %v3654_v10 = vld [vmem:[%s6694_s1 + $0x28] ss:$16 sps:$4 sm:$0xff]   ;;  %v3649_v11 = vld [vmem:[%s6694_s1 + $0x64] ss:$16 sps:$4 sm:$0xff]   ;;  %419 = vmatprep.subr.bf16.mxu1 %v3652_v9  ;;  %v3651_v12 = vld [vmem:[%s6694_s1 + $0x60] ss:$16 sps:$4 sm:$0xff]  }
   0x5   :  { %v3658_v13 = vld [vmem:[%s6694_s1 + $0x4c] ss:$16 sps:$4 sm:$0xff]   ;;  %v3655_v14 = vld [vmem:[%s6694_s1 + $0x84] ss:$16 sps:$4 sm:$0xff]   ;;  %v3660_v15 = vld [vmem:[%s6694_s1 + $0x48] ss:$16 sps:$4 sm:$0xff]  }
   0x6   :  { %v3664_v16 = vld [vmem:[%s6694_s1 + $0x6c] ss:$16 sps:$4 sm:$0xff]   ;;  %v3657_v17 = vld [vmem:[%s6694_s1 + $0x80] ss:$16 sps:$4 sm:$0xff]   ;;  %v3661_v18 = vld [vmem:[%s6694_s1 + $0xa4] ss:$16 sps:$4 sm:$0xff]  }
   0x7   :  { %377 = vmatpush1.bf16.msra.mxu0 %v3642_v4  ;;  %420 = vmatpush1.bf16.msra.mxu1 %v3654_v10  ;;  %v3666_v19 = vld [vmem:[%s6694_s1 + $0x68] ss:$16 sps:$4 sm:$0xff]   ;;  %v3670_v20 = vld [vmem:[%s6694_s1 + $0x8c] ss:$16 sps:$4 sm:$0xff]   ;;  %v3663_v21 = vld [vmem:[%s6694_s1 + $0xa0] ss:$16 sps:$4 sm:$0xff]  }
   0x8   :  { %378 = vmatprep.subr.bf16.mxu0 %v3643_v5  ;;  %421 = vmatprep.subr.bf16.mxu1 %v3658_v13  ;;  %v3672_v22 = vld [vmem:[%s6694_s1 + $0x88] ss:$16 sps:$4 sm:$0xff]   ;;  %v3667_v23 = vld [vmem:[%s6694_s1 + $0xc4] ss:$16 sps:$4 sm:$0xff]   ;;  %v3676_v24 = vld [vmem:[%s6694_s1 + $0xac] ss:$16 sps:$4 sm:$0xff]  }
   0x9   :  { %v3669_v25 = vld [vmem:[%s6694_s1 + $0xc0] ss:$16 sps:$4 sm:$0xff]   ;;  %v3673_v26 = vld [vmem:[%s6694_s1 + $0xe4] ss:$16 sps:$4 sm:$0xff]   ;;  %v3678_v27 = vld [vmem:[%s6694_s1 + $0xa8] ss:$16 sps:$4 sm:$0xff]  }
   0xa   :  { %v3680_v28 = vld [vmem:[%s6694_s1 + $0xcc] ss:$16 sps:$4 sm:$0xff]   ;;  %v3675_v29 = vld [vmem:[%s6694_s1 + $0xe0] ss:$16 sps:$4 sm:$0xff]   ;;  %v3682_v30 = vld [vmem:[%s6694_s1 + $0xc8] ss:$16 sps:$4 sm:$0xff]  }
   0xb   :  { %379 = vmatpush1.bf16.msra.mxu0 %v3645_v8  ;;  %422 = vmatpush1.bf16.msra.mxu1 %v3660_v15  ;;  %v3683_v31 = vld [vmem:[%s6694_s1 + $0xec] ss:$16 sps:$4 sm:$0xff]   ;;  %v3679_v32 = vld [vmem:[%s6693_s0] sm:$0xff]   ;;  %v3685_v33 = vld [vmem:[%s6694_s1 + $0xe8] ss:$16 sps:$4 sm:$0xff]  }
   0xc   :  { %380 = vmatprep.subr.bf16.mxu0 %v3649_v11  ;;  %423 = vmatprep.subr.bf16.mxu1 %v3664_v16 }
   0xf   :  { %381 = vmatpush1.bf16.msra.mxu0 %v3651_v12  ;;  %424 = vmatpush1.bf16.msra.mxu1 %v3666_v19 }
  0x10   :  { %382 = vmatprep.subr.bf16.mxu0 %v3655_v14  ;;  %425 = vmatprep.subr.bf16.mxu1 %v3670_v20 }
  0x13   :  { %383 = vmatpush1.bf16.msra.mxu0 %v3657_v17  ;;  %426 = vmatpush1.bf16.msra.mxu1 %v3672_v22 }
  0x14   :  { %384 = vmatprep.subr.bf16.mxu0 %v3661_v18  ;;  %427 = vmatprep.subr.bf16.mxu1 %v3676_v24 }
  0x17   :  { %385 = vmatpush1.bf16.msra.mxu0 %v3663_v21  ;;  %428 = vmatpush1.bf16.msra.mxu1 %v3678_v27 }
  0x18   :  { %386 = vmatprep.subr.bf16.mxu0 %v3667_v23  ;;  %429 = vmatprep.subr.bf16.mxu1 %v3680_v28 }
  0x1b   :  { %387 = vmatpush1.bf16.msra.mxu0 %v3669_v25  ;;  %430 = vmatpush1.bf16.msra.mxu1 %v3682_v30 }
  0x1c   :  { %388 = vmatprep.subr.bf16.mxu0 %v3673_v26  ;;  %431 = vmatprep.subr.bf16.mxu1 %v3683_v31 }
  0x1f   :  { %389 = vmatpush1.bf16.msra.mxu0 %v3675_v29  ;;  %432 = vmatpush1.bf16.msra.mxu1 %v3685_v33 }
  0x22   :  { %407 = vmatmul.mubr.bf16.vlgmr.msra.gmra.mrb[0].mxu0 %v3679_v32  ;;  %450 = vmatmul.mubr.bf16.vlgmr.msra.gmra.mrb[0].mxu1 %v3679_v32 }
  0x23   :  { %669 = vmatprep.mubr.bf16.mxu0 %v6707_v2  ;;  %709 = vmatprep.mubr.bf16.mxu1 %v6707_v2 }
  0x24   :  { %14 = vsyncpa [#allocation3], 0  ;;  %v4462_v34 = vld [vmem:[%s6697_s4 + $0x4] ss:$16 sps:$4 sm:$0xff]   ;;  %v4467_v35 = vld [vmem:[%s6697_s4 + $0xc] ss:$16 sps:$4 sm:$0xff]   ;;  %v132_v5 = vlaneseq }
  0x25   :  { %6955 = vst [vmem:[#allocation5_spill] sm:$0xff] %v4462_v34  ;;  %6956 = vst [vmem:[#allocation6_spill] sm:$0xff] %v4467_v35  ;;  %v4472_v36 = vld [vmem:[%s6697_s4] ss:$16 sps:$4 sm:$0xff]   ;;  %v4477_v37 = vld [vmem:[%s6697_s4 + $0x8] ss:$16 sps:$4 sm:$0xff]   ;;  %637 = vmatprep.subr.bf16.mxu0 %v4462_v34  ;;  %677 = vmatprep.subr.bf16.mxu1 %v4467_v35 }
  0x26   :  { %638 = vmatpush1.bf16.msra.mxu0 %v4472_v36  ;;  %678 = vmatpush1.bf16.msra.mxu1 %v4477_v37  ;;  %v4486_v38 = vld [vmem:[%s6697_s4 + $0x24] ss:$16 sps:$4 sm:$0xff]   ;;  %v4491_v39 = vld [vmem:[%s6697_s4 + $0x2c] ss:$16 sps:$4 sm:$0xff]   ;;  %v4496_v40 = vld [vmem:[%s6697_s4 + $0x20] ss:$16 sps:$4 sm:$0xff]  }
  0x27   :  { %v4501_v41 = vld [vmem:[%s6697_s4 + $0x28] ss:$16 sps:$4 sm:$0xff]   ;;  %639 = vmatprep.subr.bf16.mxu0 %v4486_v38  ;;  %679 = vmatprep.subr.bf16.mxu1 %v4491_v39  ;;  %v4510_v42 = vld [vmem:[%s6697_s4 + $0x44] ss:$16 sps:$4 sm:$0xff]   ;;  %v4515_v43 = vld [vmem:[%s6697_s4 + $0x4c] ss:$16 sps:$4 sm:$0xff]  }
  0x28   :  { %v4520_v44 = vld [vmem:[%s6697_s4 + $0x40] ss:$16 sps:$4 sm:$0xff]   ;;  %v4525_v45 = vld [vmem:[%s6697_s4 + $0x48] ss:$16 sps:$4 sm:$0xff]   ;;  %v4534_v46 = vld [vmem:[%s6697_s4 + $0x64] ss:$16 sps:$4 sm:$0xff]  }
  0x29   :  { %v4539_v47 = vld [vmem:[%s6697_s4 + $0x6c] ss:$16 sps:$4 sm:$0xff]   ;;  %v4544_v48 = vld [vmem:[%s6697_s4 + $0x60] ss:$16 sps:$4 sm:$0xff]   ;;  %v4549_v49 = vld [vmem:[%s6697_s4 + $0x68] ss:$16 sps:$4 sm:$0xff]  }
  0x2a   :  { %640 = vmatpush1.bf16.msra.mxu0 %v4496_v40  ;;  %680 = vmatpush1.bf16.msra.mxu1 %v4501_v41  ;;  %v4558_v50 = vld [vmem:[%s6697_s4 + $0x84] ss:$16 sps:$4 sm:$0xff]   ;;  %v4563_v51 = vld [vmem:[%s6697_s4 + $0x8c] ss:$16 sps:$4 sm:$0xff]   ;;  %v4568_v52 = vld [vmem:[%s6697_s4 + $0x80] ss:$16 sps:$4 sm:$0xff]  }
  0x2b   :  { %641 = vmatprep.subr.bf16.mxu0 %v4510_v42  ;;  %681 = vmatprep.subr.bf16.mxu1 %v4515_v43  ;;  %v4573_v53 = vld [vmem:[%s6697_s4 + $0x88] ss:$16 sps:$4 sm:$0xff]   ;;  %v4580_v54 = vld [vmem:[%s6697_s4 + $0xa4] ss:$16 sps:$4 sm:$0xff]   ;;  %v4585_v55 = vld [vmem:[%s6697_s4 + $0xac] ss:$16 sps:$4 sm:$0xff]  }
  0x2c   :  { %v4592_v56 = vld [vmem:[%s6697_s4 + $0xa0] ss:$16 sps:$4 sm:$0xff]   ;;  %v4597_v57 = vld [vmem:[%s6697_s4 + $0xa8] ss:$16 sps:$4 sm:$0xff]   ;;  %v4604_v58 = vld [vmem:[%s6697_s4 + $0xc4] ss:$16 sps:$4 sm:$0xff]  }
  0x2d   :  { %v4609_v59 = vld [vmem:[%s6697_s4 + $0xcc] ss:$16 sps:$4 sm:$0xff]   ;;  %v4616_v60 = vld [vmem:[%s6697_s4 + $0xc0] ss:$16 sps:$4 sm:$0xff]   ;;  %v4621_v61 = vld [vmem:[%s6697_s4 + $0xc8] ss:$16 sps:$4 sm:$0xff]  }
  0x2e   :  { %642 = vmatpush1.bf16.msra.mxu0 %v4520_v44  ;;  %682 = vmatpush1.bf16.msra.mxu1 %v4525_v45  ;;  %v4628_v62 = vld [vmem:[%s6697_s4 + $0xe4] ss:$16 sps:$4 sm:$0xff]   ;;  %v4633_v63 = vld [vmem:[%s6697_s4 + $0xec] ss:$16 sps:$4 sm:$0xff]   ;;  %v4640_v0 = vld [vmem:[%s6697_s4 + $0xe0] ss:$16 sps:$4 sm:$0xff]  }
  0x2f   :  { %643 = vmatprep.subr.bf16.mxu0 %v4534_v46  ;;  %683 = vmatprep.subr.bf16.mxu1 %v4539_v47  ;;  %v4645_v1 = vld [vmem:[%s6697_s4 + $0xe8] ss:$16 sps:$4 sm:$0xff]   ;;  %v4652_v3 = vld [vmem:[%s6695_s2 + $0x4] ss:$16 sps:$4 sm:$0xff]   ;;  %v4657_v4 = vld [vmem:[%s6695_s2 + $0xc] ss:$16 sps:$4 sm:$0xff]  }
  0x30   :  { %v4663_v6 = vshrl.u32 %v132_v5, 7  ;;  %v186_v8 = vld [vmem:[%s6696_s3] sm:$0xf]  ;;  %vm4304_vm0 = vmmov 0   ;;  %s4305_s10 = smov [#allocation2]  }
  0x31   :  { %s3412_s11 = sshll.u32 %s4305_s10, 4  ;;  %s3413_s11 = int_to_ptr.vmem [resolvable:$true] %s3412_s11 }
  0x32   :  { %644 = vmatpush1.bf16.msra.mxu0 %v4544_v48  ;;  %684 = vmatpush1.bf16.msra.mxu1 %v4549_v49  ;;  %v6706_v7 = vsub.s32 0, %v4663_v6  ;;  %v6703_v10 = vsub.s32 1, %v4663_v6  ;;  %v6705_v11 = vsub.s32 3, %v4663_v6  ;;  %v6704_v12 = vsub.s32 2, %v4663_v6  ;;  %s4278_s12 = scalar_lea.vmem %s3413_s11, 32  ;;  %p4283_p1 = scmp.lt.s32.totalorder %s3413_s11, %s3413_s11 }
  0x33   :  { %645 = vmatprep.subr.bf16.mxu0 %v4558_v50  ;;  %685 = vmatprep.subr.bf16.mxu1 %v4563_v51  ;;  %p4279_p0 = scmp.ne.s32.totalorder %s3413_s11, %s4278_s12  ;;  %p4284_p2 = scmp.lt.s32.totalorder %s4278_s12, %s4278_s12 }
  0x34   :  { %v191_v9 = vrot.slane %v186_v8, %v6706_v7  ;;  %v4680_v16 = vrot.slane %v186_v8, %v6703_v10  ;;  %v203_v18 = vrot.slane %v186_v8, %v6705_v11  ;;  %v199_v22 = vrot.slane %v186_v8, %v6704_v12  ;;  %v4789_v10 = vld [vmem:[%s6695_s2 + $0x68] ss:$16 sps:$4 sm:$0xff]   ;;  %v4796_v12 = vld [vmem:[%s6695_s2 + $0x84] ss:$16 sps:$4 sm:$0xff]   ;;  %v4801_v11 = vld [vmem:[%s6695_s2 + $0x8c] ss:$16 sps:$4 sm:$0xff]  }
  0x35   :  { %6968 = vst [vmem:[#allocation18_spill] sm:$0xff] %v4789_v10  ;;  %6969 = vst [vmem:[#allocation19_spill] sm:$0xff] %v4796_v12  ;;  %v4808_v7 = vld [vmem:[%s6695_s2 + $0x80] ss:$16 sps:$4 sm:$0xff]   ;;  %p4285_p3 = por %p4284_p2, %p4283_p1 }
  0x36   :  { %646 = vmatpush1.bf16.msra.mxu0 %v4568_v52  ;;  %686 = vmatpush1.bf16.msra.mxu1 %v4573_v53  ;;  %6970 = vst [vmem:[#allocation20_spill] sm:$0xff] %v4801_v11  ;;  %6971 = vst [vmem:[#allocation21_spill] sm:$0xff] %v4808_v7 }
  0x37   :  { %647 = vmatprep.subr.bf16.mxu0 %v4580_v54  ;;  %687 = vmatprep.subr.bf16.mxu1 %v4585_v55  ;;  %p4286_p4 = pnand %p4285_p3, %p4279_p0 }
  0x3a   :  { %648 = vmatpush1.bf16.msra.mxu0 %v4592_v56  ;;  %688 = vmatpush1.bf16.msra.mxu1 %v4597_v57 }
  0x3b   :  { %649 = vmatprep.subr.bf16.mxu0 %v4604_v58  ;;  %689 = vmatprep.subr.bf16.mxu1 %v4609_v59 }
  0x3e   :  { %650 = vmatpush1.bf16.msra.mxu0 %v4616_v60  ;;  %690 = vmatpush1.bf16.msra.mxu1 %v4621_v61 }
  0x3f   :  { %651 = vmatprep.subr.bf16.mxu0 %v4628_v62  ;;  %691 = vmatprep.subr.bf16.mxu1 %v4633_v63 }
  0x42   :  { %652 = vmatpush1.bf16.msra.mxu0 %v4640_v0  ;;  %692 = vmatpush1.bf16.msra.mxu1 %v4645_v1 }
  0x43   :  { %894 = vmatprep.subr.bf16.mxu0 %v4652_v3  ;;  %935 = vmatprep.subr.bf16.mxu1 %v4657_v4 }
  0xf5   :  { %v408_v13 = vpop.f32.mrb[0].mxu0  ;;  %v451_v24 = vpop.f32.mrb[0].mxu1 }
  0xf6   :  { %v4674_v14 = vadd.f32 %v408_v13, %v191_v9  ;;  %v4676_v15 = vpop.f32.mrb[1].mxu0  ;;  %v453_v25 = vpop.f32.mrb[1].mxu1  ;;  %v4699_v32 = vadd.f32 %v451_v24, %v199_v22  ;;  %v4713_v24 = vld [vmem:[%s6695_s2 + $0x8] ss:$16 sps:$4 sm:$0xff]  }
  0xf7   :  { %v412_v17 = vpop.f32.mrb[2].mxu0  ;;  %v4692_v26 = vadd.f32 %v453_v25, %v203_v18  ;;  %v455_v27 = vpop.f32.mrb[2].mxu1 }
  0xf8   :  { %v3453_v19 = vmul.f32 -1.442695, %v4674_v14  ;;  %v4685_v20 = vadd.f32 %v412_v17, %v191_v9  ;;  %v414_v21 = vpop.f32.mrb[3].mxu0  ;;  %v4694_v28 = vadd.f32 %v455_v27, %v199_v22  ;;  %v457_v29 = vpop.f32.mrb[3].mxu1  ;;  %v4708_v22 = vld [vmem:[%s6695_s2] ss:$16 sps:$4 sm:$0xff]  }
  0xf9   :  { %v4690_v23 = vadd.f32 %v414_v21, %v4680_v16  ;;  %v3454_v30 = vmul.f32 -1.442695, %v4692_v26  ;;  %v4697_v31 = vadd.f32 %v457_v29, %v203_v18  ;;  %v4720_v29 = vld [vmem:[%s6695_s2 + $0x24] ss:$16 sps:$4 sm:$0xff]  }
  0xfa   :  { %6957 = vst [vmem:[#allocation7_spill] sm:$0xff] %v4685_v20  ;;  %3838 = vpow2.f32 %v3453_v19  ;;  %6959 = vst [vmem:[#allocation9_spill] sm:$0xff] %v4694_v28  ;;  %v4820_v28 = vld [vmem:[%s6695_s2 + $0xa4] ss:$16 sps:$4 sm:$0xff]   ;;  %v4837_v20 = vld [vmem:[%s6695_s2 + $0xa8] ss:$16 sps:$4 sm:$0xff]  }
  0xfb   :  { %6958 = vst [vmem:[#allocation8_spill] sm:$0xff] %v4690_v23  ;;  %6960 = vst [vmem:[#allocation10_spill] sm:$0xff] %v4697_v31  ;;  %3840 = vpow2.f32 %v3454_v30  ;;  %v4725_v30 = vld [vmem:[%s6695_s2 + $0x2c] ss:$16 sps:$4 sm:$0xff]   ;;  %v4832_v23 = vld [vmem:[%s6695_s2 + $0xa0] ss:$16 sps:$4 sm:$0xff]  }
  0xfc   :  { %3842 = vtanh.f32 %v4699_v32  ;;  %6973 = vst [vmem:[#allocation23_spill] sm:$0xff] %v4820_v28  ;;  %v4825_v31 = vld [vmem:[%s6695_s2 + $0xac] ss:$16 sps:$4 sm:$0xff]   ;;  %6975 = vst [vmem:[#allocation25_spill] sm:$0xff] %v4832_v23 }
  0xfd   :  { %6974 = vst [vmem:[#allocation24_spill] sm:$0xff] %v4825_v31  ;;  %6976 = vst [vmem:[#allocation26_spill] sm:$0xff] %v4837_v20 }
 0x104   :  { %v3839_v33 = vpop.eup %3838 }
 0x105   :  { %v463_v5 = vadd.f32 1.0, %v3839_v33  ;;  %v3841_v8 = vpop.eup %3840  ;;  %v4734_v33 = vld [vmem:[%s6695_s2 + $0x20] ss:$16 sps:$4 sm:$0xff]  }
 0x106   :  { %v470_v9 = vadd.f32 1.0, %v3841_v8  ;;  %v3843_v13 = vpop.eup %3842  ;;  %v4746_v8 = vld [vmem:[%s6695_s2 + $0x44] ss:$16 sps:$4 sm:$0xff]  }
 0x107   :  { %3844 = vrcp.f32 %v463_v5  ;;  %v4739_v5 = vld [vmem:[%s6695_s2 + $0x28] ss:$16 sps:$4 sm:$0xff]   ;;  %6961 = vst [vmem:[#allocation11_spill] sm:$0xff] %v4746_v8 }
 0x108   :  { %3846 = vrcp.f32 %v470_v9  ;;  %v4751_v9 = vld [vmem:[%s6695_s2 + $0x4c] ss:$16 sps:$4 sm:$0xff]  }
 0x109   :  { %6962 = vst [vmem:[#allocation12_spill] sm:$0xff] %v4751_v9 }
 0x111   :  { %v3845_v17 = vpop.eup %3844 }
 0x112   :  { %v4702_v19 = vmul.f32 %v3845_v17, %v3843_v13  ;;  %v3847_v21 = vpop.eup %3846  ;;  %v4760_v13 = vld [vmem:[%s6695_s2 + $0x40] ss:$16 sps:$4 sm:$0xff]   ;;  %v4765_v17 = vld [vmem:[%s6695_s2 + $0x48] ss:$16 sps:$4 sm:$0xff]  }
 0x113   :  { %6963 = vst [vmem:[#allocation13_spill] sm:$0xff] %v4760_v13  ;;  %6964 = vst [vmem:[#allocation14_spill] sm:$0xff] %v4765_v17 }
 0x114   :  { %3848 = vtanh.f32 %v4702_v19 }
 0x11e   :  { %v3849_v18 = vpop.eup %3848 }
 0x11f   :  { %v475_v25 = vmul.f32 %v3849_v18, %v3847_v21  ;;  %v4772_v21 = vld [vmem:[%s6695_s2 + $0x64] ss:$16 sps:$4 sm:$0xff]   ;;  %v4777_v18 = vld [vmem:[%s6695_s2 + $0x6c] ss:$16 sps:$4 sm:$0xff]  }
 0x120   :  { %6965 = vst [vmem:[#allocation15_spill] sm:$0xff] %v4772_v21  ;;  %6966 = vst [vmem:[#allocation16_spill] sm:$0xff] %v4777_v18 }
 0x121   :  { %v4715_v27 = vpack.c.bf16 %v475_v25, %v475_v25  ;;  %v4784_v25 = vld [vmem:[%s6695_s2 + $0x60] ss:$16 sps:$4 sm:$0xff]  }
 0x122   :  { %6967 = vst [vmem:[#allocation17_spill] sm:$0xff] %v4784_v25 }
 0x123   :  { %670 = vmatmul.mubr.bf16.vlgmr.msra.gmra.mrb[4].mxu0 %v4715_v27  ;;  %710 = vmatmul.mubr.bf16.vlgmr.msra.gmra.mrb[4].mxu1 %v4715_v27 }
 0x124   :  { %895 = vmatpush1.bf16.msra.mxu0 %v4708_v22  ;;  %936 = vmatpush1.bf16.msra.mxu1 %v4713_v24 }
 0x125   :  { %896 = vmatprep.subr.bf16.mxu0 %v4720_v29  ;;  %937 = vmatprep.subr.bf16.mxu1 %v4725_v30 }
 0x126   :  { %926 = vmatprep.mubr.bf16.mxu0 %v6707_v2  ;;  %967 = vmatprep.mubr.bf16.mxu1 %v6707_v2  ;;  %v4813_v2 = vld [vmem:[%s6695_s2 + $0x88] ss:$16 sps:$4 sm:$0xff]  }
 0x127   :  { %6972 = vst [vmem:[#allocation22_spill] sm:$0xff] %v4813_v2 }
 0x128   :  { %897 = vmatpush1.bf16.msra.mxu0 %v4734_v33  ;;  %938 = vmatpush1.bf16.msra.mxu1 %v4739_v5 }
 0x129   :  { %898 = vmatprep.subr.bf16.mxu0 %v4746_v8  ;;  %939 = vmatprep.subr.bf16.mxu1 %v4751_v9 }
 0x12c   :  { %899 = vmatpush1.bf16.msra.mxu0 %v4760_v13  ;;  %940 = vmatpush1.bf16.msra.mxu1 %v4765_v17  ;;  %v7023_v13 = vsub.s32 2, %v4663_v6 }
 0x12d   :  { %900 = vmatprep.subr.bf16.mxu0 %v4772_v21  ;;  %941 = vmatprep.subr.bf16.mxu1 %v4777_v18 }
 0x130   :  { %901 = vmatpush1.bf16.msra.mxu0 %v4784_v25  ;;  %942 = vmatpush1.bf16.msra.mxu1 %v4789_v10 }
 0x131   :  { %902 = vmatprep.subr.bf16.mxu0 %v4796_v12  ;;  %943 = vmatprep.subr.bf16.mxu1 %v4801_v11 }
 0x134   :  { %903 = vmatpush1.bf16.msra.mxu0 %v4808_v7  ;;  %944 = vmatpush1.bf16.msra.mxu1 %v4813_v2  ;;  %v4844_v7 = vld [vmem:[%s6695_s2 + $0xc4] ss:$16 sps:$4 sm:$0xff]   ;;  %v4849_v2 = vld [vmem:[%s6695_s2 + $0xcc] ss:$16 sps:$4 sm:$0xff]  }
 0x135   :  { %904 = vmatprep.subr.bf16.mxu0 %v4820_v28  ;;  %945 = vmatprep.subr.bf16.mxu1 %v4825_v31  ;;  %6977 = vst [vmem:[#allocation27_spill] sm:$0xff] %v4844_v7  ;;  %6978 = vst [vmem:[#allocation28_spill] sm:$0xff] %v4849_v2  ;;  %v4856_v28 = vld [vmem:[%s6695_s2 + $0xc0] ss:$16 sps:$4 sm:$0xff]   ;;  %v4861_v31 = vld [vmem:[%s6695_s2 + $0xc8] ss:$16 sps:$4 sm:$0xff]  }
 0x136   :  { %6979 = vst [vmem:[#allocation29_spill] sm:$0xff] %v4856_v28  ;;  %6980 = vst [vmem:[#allocation30_spill] sm:$0xff] %v4861_v31 }
 0x138   :  { %905 = vmatpush1.bf16.msra.mxu0 %v4832_v23  ;;  %946 = vmatpush1.bf16.msra.mxu1 %v4837_v20  ;;  %v4868_v23 = vld [vmem:[%s6695_s2 + $0xe4] ss:$16 sps:$4 sm:$0xff]   ;;  %v4873_v20 = vld [vmem:[%s6695_s2 + $0xec] ss:$16 sps:$4 sm:$0xff]  }
 0x139   :  { %906 = vmatprep.subr.bf16.mxu0 %v4844_v7  ;;  %947 = vmatprep.subr.bf16.mxu1 %v4849_v2  ;;  %6981 = vst [vmem:[#allocation31_spill] sm:$0xff] %v4868_v23  ;;  %6982 = vst [vmem:[#allocation32_spill] sm:$0xff] %v4873_v20  ;;  %v4880_v7 = vld [vmem:[%s6695_s2 + $0xe0] ss:$16 sps:$4 sm:$0xff]   ;;  %v4885_v2 = vld [vmem:[%s6695_s2 + $0xe8] ss:$16 sps:$4 sm:$0xff]  }
 0x13a   :  { %6983 = vst [vmem:[#allocation33_spill] sm:$0xff] %v4880_v7  ;;  %6984 = vst [vmem:[#allocation34_spill] sm:$0xff] %v4885_v2 }
 0x13c   :  { %907 = vmatpush1.bf16.msra.mxu0 %v4856_v28  ;;  %948 = vmatpush1.bf16.msra.mxu1 %v4861_v31  ;;  %v6985_v31 = vmov 0   ;;  %v4898_v28 = vld [vmem:[%s6698_s5 + $0x4] ss:$16 sps:$4 sm:$0xff]  }
 0x13d   :  { %908 = vmatprep.subr.bf16.mxu0 %v4868_v23  ;;  %949 = vmatprep.subr.bf16.mxu1 %v4873_v20  ;;  %6986 = vst [vmem:[#allocation35_spill] sm:$0xff] %v4898_v28  ;;  %v4903_v20 = vld [vmem:[%s6698_s5 + $0xc] ss:$16 sps:$4 sm:$0xff]  }
 0x13e   :  { %6987 = vst [vmem:[#allocation36_spill] sm:$0xff] %v4903_v20  ;;  %v4927_v23 = vld [vmem:[%s6698_s5 + $0x2c] ss:$16 sps:$4 sm:$0xff]  }
 0x13f   :  { %6991 = vst [vmem:[#allocation40_spill] sm:$0xff] %v4927_v23 }
 0x140   :  { %909 = vmatpush1.bf16.msra.mxu0 %v4880_v7  ;;  %950 = vmatpush1.bf16.msra.mxu1 %v4885_v2  ;;  %v4908_v2 = vld [vmem:[%s6698_s5] ss:$16 sps:$4 sm:$0xff]   ;;  %v4922_v7 = vld [vmem:[%s6698_s5 + $0x24] ss:$16 sps:$4 sm:$0xff]  }
 0x141   :  { %6988 = vst [vmem:[#allocation37_spill] sm:$0xff] %v4908_v2  ;;  %1181 = vmatprep.subr.bf16.mxu0 %v4898_v28  ;;  %1222 = vmatprep.subr.bf16.mxu1 %v4903_v20  ;;  %6990 = vst [vmem:[#allocation39_spill] sm:$0xff] %v4922_v7  ;;  %v4932_v28 = vld [vmem:[%s6698_s5 + $0x20] ss:$16 sps:$4 sm:$0xff]   ;;  %v4951_v20 = vld [vmem:[%s6698_s5 + $0x4c] ss:$16 sps:$4 sm:$0xff]  }
 0x142   :  { %6992 = vst [vmem:[#allocation41_spill] sm:$0xff] %v4932_v28  ;;  %6995 = vst [vmem:[#allocation44_spill] sm:$0xff] %v4951_v20 }
 0x143   :  { %927 = vmatmul.mubr.bf16.vlgmr.msra.gmra.mrb[8].mxu0 %v4715_v27  ;;  %968 = vmatmul.mubr.bf16.vlgmr.msra.gmra.mrb[8].mxu1 %v4715_v27  ;;  %v4913_v27 = vld [vmem:[%s6698_s5 + $0x8] ss:$16 sps:$4 sm:$0xff]  }
 0x144   :  { %1213 = vmatprep.mubr.bf16.mxu0 %v6985_v31  ;;  %1254 = vmatprep.mubr.bf16.mxu1 %v6985_v31  ;;  %6989 = vst [vmem:[#allocation38_spill] sm:$0xff] %v4913_v27 }
 0x145   :  { %1182 = vmatpush1.bf16.msra.mxu0 %v4908_v2  ;;  %1223 = vmatpush1.bf16.msra.mxu1 %v4913_v27  ;;  %v4937_v2 = vld [vmem:[%s6698_s5 + $0x28] ss:$16 sps:$4 sm:$0xff]   ;;  %v4946_v27 = vld [vmem:[%s6698_s5 + $0x44] ss:$16 sps:$4 sm:$0xff]  }
 0x146   :  { %6993 = vst [vmem:[#allocation42_spill] sm:$0xff] %v4937_v2  ;;  %1183 = vmatprep.subr.bf16.mxu0 %v4922_v7  ;;  %1224 = vmatprep.subr.bf16.mxu1 %v4927_v23  ;;  %6994 = vst [vmem:[#allocation43_spill] sm:$0xff] %v4946_v27  ;;  %v4956_v7 = vld [vmem:[%s6698_s5 + $0x40] ss:$16 sps:$4 sm:$0xff]   ;;  %v4975_v23 = vld [vmem:[%s6698_s5 + $0x6c] ss:$16 sps:$4 sm:$0xff]  }
 0x147   :  { %6996 = vst [vmem:[#allocation45_spill] sm:$0xff] %v4956_v7  ;;  %6999 = vst [vmem:[#allocation48_spill] sm:$0xff] %v4975_v23 }
 0x149   :  { %1184 = vmatpush1.bf16.msra.mxu0 %v4932_v28  ;;  %1225 = vmatpush1.bf16.msra.mxu1 %v4937_v2  ;;  %v4961_v28 = vld [vmem:[%s6698_s5 + $0x48] ss:$16 sps:$4 sm:$0xff]   ;;  %v4970_v2 = vld [vmem:[%s6698_s5 + $0x64] ss:$16 sps:$4 sm:$0xff]  }
 0x14a   :  { %6997 = vst [vmem:[#allocation46_spill] sm:$0xff] %v4961_v28  ;;  %1185 = vmatprep.subr.bf16.mxu0 %v4946_v27  ;;  %1226 = vmatprep.subr.bf16.mxu1 %v4951_v20  ;;  %6998 = vst [vmem:[#allocation47_spill] sm:$0xff] %v4970_v2  ;;  %v4980_v27 = vld [vmem:[%s6698_s5 + $0x60] ss:$16 sps:$4 sm:$0xff]   ;;  %v4999_v20 = vld [vmem:[%s6698_s5 + $0x8c] ss:$16 sps:$4 sm:$0xff]  }
 0x14b   :  { %7000 = vst [vmem:[#allocation49_spill] sm:$0xff] %v4980_v27  ;;  %7003 = vst [vmem:[#allocation52_spill] sm:$0xff] %v4999_v20 }
 0x14d   :  { %1186 = vmatpush1.bf16.msra.mxu0 %v4956_v7  ;;  %1227 = vmatpush1.bf16.msra.mxu1 %v4961_v28  ;;  %v4985_v7 = vld [vmem:[%s6698_s5 + $0x68] ss:$16 sps:$4 sm:$0xff]   ;;  %v4994_v28 = vld [vmem:[%s6698_s5 + $0x84] ss:$16 sps:$4 sm:$0xff]  }
 0x14e   :  { %7001 = vst [vmem:[#allocation50_spill] sm:$0xff] %v4985_v7  ;;  %1187 = vmatprep.subr.bf16.mxu0 %v4970_v2  ;;  %1228 = vmatprep.subr.bf16.mxu1 %v4975_v23  ;;  %7002 = vst [vmem:[#allocation51_spill] sm:$0xff] %v4994_v28  ;;  %v5004_v2 = vld [vmem:[%s6698_s5 + $0x80] ss:$16 sps:$4 sm:$0xff]   ;;  %v5023_v23 = vld [vmem:[%s6698_s5 + $0xac] ss:$16 sps:$4 sm:$0xff]  }
 0x14f   :  { %7004 = vst [vmem:[#allocation53_spill] sm:$0xff] %v5004_v2  ;;  %7007 = vst [vmem:[#allocation56_spill] sm:$0xff] %v5023_v23 }
 0x151   :  { %1188 = vmatpush1.bf16.msra.mxu0 %v4980_v27  ;;  %1229 = vmatpush1.bf16.msra.mxu1 %v4985_v7  ;;  %v5009_v27 = vld [vmem:[%s6698_s5 + $0x88] ss:$16 sps:$4 sm:$0xff]   ;;  %v5018_v7 = vld [vmem:[%s6698_s5 + $0xa4] ss:$16 sps:$4 sm:$0xff]  }
 0x152   :  { %7005 = vst [vmem:[#allocation54_spill] sm:$0xff] %v5009_v27  ;;  %1189 = vmatprep.subr.bf16.mxu0 %v4994_v28  ;;  %1230 = vmatprep.subr.bf16.mxu1 %v4999_v20  ;;  %7006 = vst [vmem:[#allocation55_spill] sm:$0xff] %v5018_v7  ;;  %v5028_v28 = vld [vmem:[%s6698_s5 + $0xa0] ss:$16 sps:$4 sm:$0xff]   ;;  %v5047_v20 = vld [vmem:[%s6698_s5 + $0xcc] ss:$16 sps:$4 sm:$0xff]  }
 0x153   :  { %7008 = vst [vmem:[#allocation57_spill] sm:$0xff] %v5028_v28  ;;  %7011 = vst [vmem:[#allocation60_spill] sm:$0xff] %v5047_v20 }
 0x155   :  { %1190 = vmatpush1.bf16.msra.mxu0 %v5004_v2  ;;  %1231 = vmatpush1.bf16.msra.mxu1 %v5009_v27  ;;  %v5033_v2 = vld [vmem:[%s6698_s5 + $0xa8] ss:$16 sps:$4 sm:$0xff]   ;;  %v5042_v27 = vld [vmem:[%s6698_s5 + $0xc4] ss:$16 sps:$4 sm:$0xff]  }
 0x156   :  { %7009 = vst [vmem:[#allocation58_spill] sm:$0xff] %v5033_v2  ;;  %1191 = vmatprep.subr.bf16.mxu0 %v5018_v7  ;;  %1232 = vmatprep.subr.bf16.mxu1 %v5023_v23  ;;  %7010 = vst [vmem:[#allocation59_spill] sm:$0xff] %v5042_v27  ;;  %v5052_v7 = vld [vmem:[%s6698_s5 + $0xc0] ss:$16 sps:$4 sm:$0xff]   ;;  %v5071_v23 = vld [vmem:[%s6698_s5 + $0xec] ss:$16 sps:$4 sm:$0xff]  }
 0x157   :  { %7012 = vst [vmem:[#allocation61_spill] sm:$0xff] %v5052_v7  ;;  %7015 = vst [vmem:[#allocation64_spill] sm:$0xff] %v5071_v23 }
 0x159   :  { %1192 = vmatpush1.bf16.msra.mxu0 %v5028_v28  ;;  %1233 = vmatpush1.bf16.msra.mxu1 %v5033_v2  ;;  %v5057_v28 = vld [vmem:[%s6698_s5 + $0xc8] ss:$16 sps:$4 sm:$0xff]   ;;  %v5066_v2 = vld [vmem:[%s6698_s5 + $0xe4] ss:$16 sps:$4 sm:$0xff]  }
 0x15a   :  { %7013 = vst [vmem:[#allocation62_spill] sm:$0xff] %v5057_v28  ;;  %1193 = vmatprep.subr.bf16.mxu0 %v5042_v27  ;;  %1234 = vmatprep.subr.bf16.mxu1 %v5047_v20  ;;  %7014 = vst [vmem:[#allocation63_spill] sm:$0xff] %v5066_v2  ;;  %v5076_v27 = vld [vmem:[%s6698_s5 + $0xe0] ss:$16 sps:$4 sm:$0xff]   ;;  %v7019_v20 = vsub.s32 0, %v4663_v6 }
 0x15b   :  { %7016 = vst [vmem:[#allocation65_spill] sm:$0xff] %v5076_v27 }
 0x15d   :  { %1194 = vmatpush1.bf16.msra.mxu0 %v5052_v7  ;;  %1235 = vmatpush1.bf16.msra.mxu1 %v5057_v28  ;;  %v5081_v7 = vld [vmem:[%s6698_s5 + $0xe8] ss:$16 sps:$4 sm:$0xff]   ;;  %v5092_v28 = vld [vmem:[%s6699_s6] sm:$0xf] }
 0x15e   :  { %7017 = vst [vmem:[#allocation66_spill] sm:$0xff] %v5081_v7  ;;  %1195 = vmatprep.subr.bf16.mxu0 %v5066_v2  ;;  %1236 = vmatprep.subr.bf16.mxu1 %v5071_v23  ;;  %7018 = vst [vmem:[#allocation67_spill] sm:$0xff] %v5092_v28  ;;  %v5097_v11 = vrot.slane %v5092_v28, %v7019_v20  ;;  %v5109_v9 = vrot.slane %v5092_v28, %v7023_v13 }
 0x160   :  { %7020 = vst [vmem:[#allocation68_spill] sm:$0xff] %v5097_v11  ;;  %7024 = vst [vmem:[#allocation70_spill] sm:$0xff] %v5109_v9 }
 0x161   :  { %1196 = vmatpush1.bf16.msra.mxu0 %v5076_v27  ;;  %1237 = vmatpush1.bf16.msra.mxu1 %v5081_v7  ;;  %v7021_v27 = vsub.s32 3, %v4663_v6 }
 0x162   :  { %1266 = vmatprep.subr.bf16.mxu0 %v4462_v34  ;;  %1307 = vmatprep.subr.bf16.mxu1 %v4467_v35 }
 0x163   :  { %v5102_v7 = vrot.slane %v5092_v28, %v7021_v27 }
 0x165   :  { %7022 = vst [vmem:[#allocation69_spill] sm:$0xff] %v5102_v7 }
 0x1f6   :  { %v671_v2 = vpop.f32.mrb[4].mxu0  ;;  %v711_v23 = vpop.f32.mrb[4].mxu1 }
 0x1f7   :  { %v672_v34 = vadd.f32 %v671_v2, %v5097_v11  ;;  %v673_v35 = vpop.f32.mrb[5].mxu0  ;;  %v713_v12 = vpop.f32.mrb[5].mxu1  ;;  %v712_v27 = vadd.f32 %v711_v23, %v5109_v9  ;;  %v5117_v23 = vadd.f32 %v4676_v15, %v4680_v16 }
 0x1f8   :  { %v674_v10 = vpop.f32.mrb[6].mxu0  ;;  %v715_v25 = vpop.f32.mrb[6].mxu1  ;;  %v714_v20 = vadd.f32 %v713_v12, %v5102_v7 }
 0x1f9   :  { %v3487_v18 = vmul.f32 -1.442695, %v672_v34  ;;  %v675_v21 = vpop.f32.mrb[7].mxu0  ;;  %v716_v17 = vpop.f32.mrb[7].mxu1 }
 0x1fa   :  { %v3488_v8 = vmul.f32 -1.442695, %v714_v20 }
 0x1fb   :  { %3850 = vpow2.f32 %v3487_v18 }
 0x1fc   :  { %3852 = vpow2.f32 %v3488_v8 }
 0x1fd   :  { %3854 = vtanh.f32 %v712_v27 }
 0x205   :  { %v3851_v2 = vpop.eup %3850 }
 0x206   :  { %v721_v35 = vadd.f32 1.0, %v3851_v2  ;;  %v3853_v10 = vpop.eup %3852 }
 0x207   :  { %v728_v34 = vadd.f32 1.0, %v3853_v10  ;;  %v3855_v21 = vpop.eup %3854 }
 0x208   :  { %3856 = vrcp.f32 %v721_v35 }
 0x209   :  { %3858 = vrcp.f32 %v728_v34 }
 0x212   :  { %v3857_v17 = vpop.eup %3856 }
 0x213   :  { %v5112_v18 = vmul.f32 %v3857_v17, %v3855_v21 }
 0x215   :  { %7025 = vst [vmem:[#allocation71_spill] sm:$0xff] %v5112_v18  ;;  %3860 = vtanh.f32 %v5112_v18 }
 0x216   :  { %v928_v12 = vpop.f32.mrb[8].mxu0  ;;  %v969_v13 = vpop.f32.mrb[8].mxu1 }
 0x217   :  { %v980_v25 = vrot.slane %v928_v12, 6  ;;  %v930_v20 = vpop.f32.mrb[9].mxu0  ;;  %v971_v7 = vpop.f32.mrb[9].mxu1  ;;  %v982_v16 = vrot.slane %v969_v13, 6 }
 0x218   :  { %v981_v8 = vrot.slane %v930_v20, 6  ;;  %v932_v27 = vpop.f32.mrb[10].mxu0  ;;  %v973_v2 = vpop.f32.mrb[10].mxu1  ;;  %v983_v9 = vrot.slane %v971_v7, 6 }
 0x219   :  { %v988_v35 = vadd.f32 %v980_v25, %v4674_v14  ;;  %v933_v10 = vpop.f32.mrb[11].mxu0  ;;  %v974_v21 = vpop.f32.mrb[11].mxu1  ;;  %v990_v25 = vadd.f32 %v982_v16, %v4699_v32  ;;  %v7026_v2 = vld [vmem:[#allocation11_spill] sm:$0xff] }
 0x21a   :  { %v989_v34 = vadd.f32 %v981_v8, %v5117_v23  ;;  %v3859_v12 = vpop.eup %3858  ;;  %v991_v28 = vadd.f32 %v983_v9, %v4692_v26  ;;  %v7028_v10 = vld [vmem:[#allocation13_spill] sm:$0xff]  ;;  %v7029_v21 = vld [vmem:[#allocation14_spill] sm:$0xff]  ;;  %v7034_v16 = vld [vmem:[#allocation19_spill] sm:$0xff] }
 0x21b   :  { %v3521_v17 = vmul.f32 -1.442695, %v988_v35  ;;  %v7027_v35 = vld [vmem:[#allocation12_spill] sm:$0xff] }
 0x21c   :  { %v3522_v18 = vmul.f32 -1.442695, %v989_v34  ;;  %v3523_v27 = vmul.f32 -1.442695, %v991_v28  ;;  %v7030_v34 = vld [vmem:[#allocation15_spill] sm:$0xff] }
 0x21d   :  { %3862 = vpow2.f32 %v3521_v17  ;;  %v7031_v17 = vld [vmem:[#allocation16_spill] sm:$0xff] }
 0x21e   :  { %3864 = vpow2.f32 %v3522_v18 }
 0x21f   :  { %v3861_v11 = vpop.eup %3860  ;;  %3866 = vpow2.f32 %v3523_v27  ;;  %v7036_v27 = vld [vmem:[#allocation21_spill] sm:$0xff] }
 0x220   :  { %v733_v15 = vmul.f32 %v3861_v11, %v3859_v12  ;;  %3868 = vtanh.f32 %v990_v25  ;;  %v7032_v12 = vld [vmem:[#allocation17_spill] sm:$0xff]  ;;  %v7037_v25 = vld [vmem:[#allocation22_spill] sm:$0xff] }
 0x222   :  { %v1020_v20 = vpack.c.bf16 %v733_v15, %v733_v15  ;;  %v7033_v15 = vld [vmem:[#allocation18_spill] sm:$0xff] }
 0x224   :  { %1214 = vmatmul.mubr.bf16.vlgmr.msra.gmra.mrb[12].mxu0 %v1020_v20  ;;  %1255 = vmatmul.mubr.bf16.vlgmr.msra.gmra.mrb[12].mxu1 %v1020_v20  ;;  %v7035_v20 = vld [vmem:[#allocation20_spill] sm:$0xff] }
 0x225   :  { %1267 = vmatpush1.bf16.msra.mxu0 %v4472_v36  ;;  %1308 = vmatpush1.bf16.msra.mxu1 %v4477_v37 }
 0x226   :  { %1268 = vmatprep.subr.bf16.mxu0 %v4486_v38  ;;  %1309 = vmatprep.subr.bf16.mxu1 %v4491_v39  ;;  %v1012_v39 = vrot.slane %v4702_v19, 6 }
 0x227   :  { %v3863_v7 = vpop.eup %3862  ;;  %1298 = vmatprep.mubr.bf16.mxu0 %v6985_v31  ;;  %1339 = vmatprep.mubr.bf16.mxu1 %v6985_v31 }
 0x228   :  { %v3865_v11 = vpop.eup %3864  ;;  %v995_v9 = vadd.f32 1.0, %v3863_v7  ;;  %v7038_v7 = vld [vmem:[#allocation23_spill] sm:$0xff] }
 0x229   :  { %v1001_v28 = vadd.f32 1.0, %v3865_v11  ;;  %1269 = vmatpush1.bf16.msra.mxu0 %v4496_v40  ;;  %1310 = vmatpush1.bf16.msra.mxu1 %v4501_v41  ;;  %v3867_v36 = vpop.eup %3866  ;;  %v7039_v11 = vld [vmem:[#allocation24_spill] sm:$0xff] }
 0x22a   :  { %3870 = vrcp.f32 %v995_v9  ;;  %1270 = vmatprep.subr.bf16.mxu0 %v4510_v42  ;;  %1311 = vmatprep.subr.bf16.mxu1 %v4515_v43  ;;  %v3869_v37 = vpop.eup %3868  ;;  %v1008_v18 = vadd.f32 1.0, %v3867_v36  ;;  %v7040_v9 = vld [vmem:[#allocation25_spill] sm:$0xff]  ;;  %v7042_v36 = vld [vmem:[#allocation27_spill] sm:$0xff] }
 0x22b   :  { %3872 = vrcp.f32 %v1001_v28  ;;  %v7041_v28 = vld [vmem:[#allocation26_spill] sm:$0xff] }
 0x22c   :  { %3874 = vrcp.f32 %v1008_v18  ;;  %v7048_v18 = vld [vmem:[#allocation33_spill] sm:$0xff] }
 0x22d   :  { %1271 = vmatpush1.bf16.msra.mxu0 %v4520_v44  ;;  %1312 = vmatpush1.bf16.msra.mxu1 %v4525_v45 }
 0x22e   :  { %1272 = vmatprep.subr.bf16.mxu0 %v4534_v46  ;;  %1313 = vmatprep.subr.bf16.mxu1 %v4539_v47 }
 0x231   :  { %1273 = vmatpush1.bf16.msra.mxu0 %v4544_v48  ;;  %1314 = vmatpush1.bf16.msra.mxu1 %v4549_v49 }
 0x232   :  { %1274 = vmatprep.subr.bf16.mxu0 %v4558_v50  ;;  %1315 = vmatprep.subr.bf16.mxu1 %v4563_v51 }
 0x234   :  { %v3871_v38 = vpop.eup %3870 }
 0x235   :  { %v3873_v40 = vpop.eup %3872  ;;  %v1015_v41 = vmul.f32 %v3871_v38, %v3869_v37  ;;  %1275 = vmatpush1.bf16.msra.mxu0 %v4568_v52  ;;  %1316 = vmatpush1.bf16.msra.mxu1 %v4573_v53  ;;  %v7043_v37 = vld [vmem:[#allocation28_spill] sm:$0xff]  ;;  %v7044_v38 = vld [vmem:[#allocation29_spill] sm:$0xff] }
 0x236   :  { %v1014_v13 = vmul.f32 %v3873_v40, %v1012_v39  ;;  %1276 = vmatprep.subr.bf16.mxu0 %v4580_v54  ;;  %1317 = vmatprep.subr.bf16.mxu1 %v4585_v55  ;;  %v3875_v49 = vpop.eup %3874  ;;  %v7045_v39 = vld [vmem:[#allocation30_spill] sm:$0xff]  ;;  %v7046_v40 = vld [vmem:[#allocation31_spill] sm:$0xff] }
 0x238   :  { %v5146_v48 = vadd.f32 %v1015_v41, %v1014_v13  ;;  %v7047_v41 = vld [vmem:[#allocation32_spill] sm:$0xff]  ;;  %v7049_v13 = vld [vmem:[#allocation34_spill] sm:$0xff] }
 0x239   :  { %1277 = vmatpush1.bf16.msra.mxu0 %v4592_v56  ;;  %1318 = vmatpush1.bf16.msra.mxu1 %v4597_v57 }
 0x23a   :  { %1278 = vmatprep.subr.bf16.mxu0 %v4604_v58  ;;  %1319 = vmatprep.subr.bf16.mxu1 %v4609_v59  ;;  %3876 = vtanh.f32 %v5146_v48 }
 0x23d   :  { %1279 = vmatpush1.bf16.msra.mxu0 %v4616_v60  ;;  %1320 = vmatpush1.bf16.msra.mxu1 %v4621_v61 }
 0x23e   :  { %1280 = vmatprep.subr.bf16.mxu0 %v4628_v62  ;;  %1321 = vmatprep.subr.bf16.mxu1 %v4633_v63 }
 0x241   :  { %1281 = vmatpush1.bf16.msra.mxu0 %v4640_v0  ;;  %1322 = vmatpush1.bf16.msra.mxu1 %v4645_v1 }
 0x242   :  { %1376 = vmatprep.subr.bf16.mxu0 %v4652_v3  ;;  %1417 = vmatprep.subr.bf16.mxu1 %v4657_v4 }
 0x244   :  { %v3877_v52 = vpop.eup %3876 }
 0x245   :  { %v1018_v53 = vmul.f32 %v3877_v52, %v3875_v49  ;;  %v7050_v49 = vld [vmem:[#allocation35_spill] sm:$0xff]  ;;  %v7051_v52 = vld [vmem:[#allocation36_spill] sm:$0xff] }
 0x247   :  { %v1019_v19 = vpack.c.bf16 %v1018_v53, %v1018_v53  ;;  %v7052_v53 = vld [vmem:[#allocation37_spill] sm:$0xff] }
 0x249   :  { %v1264_v8 = vrot.slane %v1019_v19, 1  ;;  %v7053_v19 = vld [vmem:[#allocation38_spill] sm:$0xff] }
 0x24b   :  { %1299 = vmatmul.mubr.bf16.vlgmr.msra.gmra.mrb[16].mxu0 %v1264_v8  ;;  %1340 = vmatmul.mubr.bf16.vlgmr.msra.gmra.mrb[16].mxu1 %v1264_v8 }
 0x24c   :  { %1377 = vmatpush1.bf16.msra.mxu0 %v4708_v22  ;;  %1418 = vmatpush1.bf16.msra.mxu1 %v4713_v24 }
 0x24d   :  { %1378 = vmatprep.subr.bf16.mxu0 %v4720_v29  ;;  %1419 = vmatprep.subr.bf16.mxu1 %v4725_v30 }
 0x24e   :  { %1408 = vmatprep.mubr.bf16.mxu0 %v6985_v31  ;;  %1449 = vmatprep.mubr.bf16.mxu1 %v6985_v31 }
 0x250   :  { %1379 = vmatpush1.bf16.msra.mxu0 %v4734_v33  ;;  %1420 = vmatpush1.bf16.msra.mxu1 %v4739_v5 }
 0x251   :  { %1380 = vmatprep.subr.bf16.mxu0 %v7026_v2  ;;  %1421 = vmatprep.subr.bf16.mxu1 %v7027_v35 }
 0x254   :  { %1381 = vmatpush1.bf16.msra.mxu0 %v7028_v10  ;;  %1422 = vmatpush1.bf16.msra.mxu1 %v7029_v21 }
 0x255   :  { %1382 = vmatprep.subr.bf16.mxu0 %v7030_v34  ;;  %1423 = vmatprep.subr.bf16.mxu1 %v7031_v17 }
 0x258   :  { %1383 = vmatpush1.bf16.msra.mxu0 %v7032_v12  ;;  %1424 = vmatpush1.bf16.msra.mxu1 %v7033_v15  ;;  %v7086_v15 = vld [vmem:[#allocation68_spill] sm:$0xff] }
 0x259   :  { %1384 = vmatprep.subr.bf16.mxu0 %v7034_v16  ;;  %1425 = vmatprep.subr.bf16.mxu1 %v7035_v20 }
 0x25c   :  { %1385 = vmatpush1.bf16.msra.mxu0 %v7036_v27  ;;  %1426 = vmatpush1.bf16.msra.mxu1 %v7037_v25 }
 0x25d   :  { %1386 = vmatprep.subr.bf16.mxu0 %v7038_v7  ;;  %1427 = vmatprep.subr.bf16.mxu1 %v7039_v11 }
 0x260   :  { %1387 = vmatpush1.bf16.msra.mxu0 %v7040_v9  ;;  %1428 = vmatpush1.bf16.msra.mxu1 %v7041_v28  ;;  %v7085_v9 = vld [vmem:[#allocation67_spill] sm:$0xff] }
 0x261   :  { %1388 = vmatprep.subr.bf16.mxu0 %v7042_v36  ;;  %1429 = vmatprep.subr.bf16.mxu1 %v7043_v37 }
 0x264   :  { %1389 = vmatpush1.bf16.msra.mxu0 %v7044_v38  ;;  %1430 = vmatpush1.bf16.msra.mxu1 %v7045_v39  ;;  %v7054_v38 = vld [vmem:[#allocation39_spill] sm:$0xff]  ;;  %v7055_v39 = vld [vmem:[#allocation40_spill] sm:$0xff] }
 0x265   :  { %1390 = vmatprep.subr.bf16.mxu0 %v7046_v40  ;;  %1431 = vmatprep.subr.bf16.mxu1 %v7047_v41  ;;  %v7065_v41 = vld [vmem:[#allocation50_spill] sm:$0xff]  ;;  %v7066_v40 = vld [vmem:[#allocation51_spill] sm:$0xff] }
 0x268   :  { %1391 = vmatpush1.bf16.msra.mxu0 %v7048_v18  ;;  %1432 = vmatpush1.bf16.msra.mxu1 %v7049_v13  ;;  %v7056_v18 = vld [vmem:[#allocation41_spill] sm:$0xff]  ;;  %v7057_v13 = vld [vmem:[#allocation42_spill] sm:$0xff] }
 0x269   :  { %1503 = vmatprep.subr.bf16.mxu0 %v7050_v49  ;;  %1544 = vmatprep.subr.bf16.mxu1 %v7051_v52  ;;  %v7058_v49 = vld [vmem:[#allocation43_spill] sm:$0xff]  ;;  %v7059_v52 = vld [vmem:[#allocation44_spill] sm:$0xff] }
 0x26b   :  { %1409 = vmatmul.mubr.bf16.vlgmr.msra.gmra.mrb[20].mxu0 %v1264_v8  ;;  %1450 = vmatmul.mubr.bf16.vlgmr.msra.gmra.mrb[20].mxu1 %v1264_v8  ;;  %v7060_v8 = vld [vmem:[#allocation45_spill] sm:$0xff] }
 0x26c   :  { %1504 = vmatpush1.bf16.msra.mxu0 %v7052_v53  ;;  %1545 = vmatpush1.bf16.msra.mxu1 %v7053_v19  ;;  %v7061_v53 = vld [vmem:[#allocation46_spill] sm:$0xff]  ;;  %v7062_v19 = vld [vmem:[#allocation47_spill] sm:$0xff] }
 0x26d   :  { %1505 = vmatprep.subr.bf16.mxu0 %v7054_v38  ;;  %1546 = vmatprep.subr.bf16.mxu1 %v7055_v39  ;;  %v7063_v38 = vld [vmem:[#allocation48_spill] sm:$0xff]  ;;  %v7064_v39 = vld [vmem:[#allocation49_spill] sm:$0xff] }
 0x26e   :  { %1535 = vmatprep.mubr.bf16.mxu0 %v6985_v31  ;;  %1576 = vmatprep.mubr.bf16.mxu1 %v6985_v31 }
 0x270   :  { %1506 = vmatpush1.bf16.msra.mxu0 %v7056_v18  ;;  %1547 = vmatpush1.bf16.msra.mxu1 %v7057_v13  ;;  %v7067_v18 = vld [vmem:[#allocation52_spill] sm:$0xff]  ;;  %v7068_v13 = vld [vmem:[#allocation53_spill] sm:$0xff] }
 0x271   :  { %1507 = vmatprep.subr.bf16.mxu0 %v7058_v49  ;;  %1548 = vmatprep.subr.bf16.mxu1 %v7059_v52  ;;  %v7069_v49 = vld [vmem:[#allocation54_spill] sm:$0xff]  ;;  %v7070_v52 = vld [vmem:[#allocation55_spill] sm:$0xff] }
 0x274   :  { %1508 = vmatpush1.bf16.msra.mxu0 %v7060_v8  ;;  %1549 = vmatpush1.bf16.msra.mxu1 %v7061_v53  ;;  %v7071_v8 = vld [vmem:[#allocation56_spill] sm:$0xff]  ;;  %v7072_v53 = vld [vmem:[#allocation57_spill] sm:$0xff] }
 0x275   :  { %1509 = vmatprep.subr.bf16.mxu0 %v7062_v19  ;;  %1550 = vmatprep.subr.bf16.mxu1 %v7063_v38  ;;  %v7073_v19 = vld [vmem:[#allocation58_spill] sm:$0xff]  ;;  %v7074_v38 = vld [vmem:[#allocation59_spill] sm:$0xff] }
 0x278   :  { %1510 = vmatpush1.bf16.msra.mxu0 %v7064_v39  ;;  %1551 = vmatpush1.bf16.msra.mxu1 %v7065_v41  ;;  %v7075_v39 = vld [vmem:[#allocation60_spill] sm:$0xff]  ;;  %v7076_v41 = vld [vmem:[#allocation61_spill] sm:$0xff] }
 0x279   :  { %1511 = vmatprep.subr.bf16.mxu0 %v7066_v40  ;;  %1552 = vmatprep.subr.bf16.mxu1 %v7067_v18  ;;  %v7077_v40 = vld [vmem:[#allocation62_spill] sm:$0xff]  ;;  %v7078_v18 = vld [vmem:[#allocation63_spill] sm:$0xff] }
 0x27c   :  { %1512 = vmatpush1.bf16.msra.mxu0 %v7068_v13  ;;  %1553 = vmatpush1.bf16.msra.mxu1 %v7069_v49  ;;  %v7079_v13 = vld [vmem:[#allocation64_spill] sm:$0xff]  ;;  %v7080_v49 = vld [vmem:[#allocation65_spill] sm:$0xff] }
 0x27d   :  { %1513 = vmatprep.subr.bf16.mxu0 %v7070_v52  ;;  %1554 = vmatprep.subr.bf16.mxu1 %v7071_v8  ;;  %v7081_v52 = vld [vmem:[#allocation66_spill] sm:$0xff]  ;;  %v7082_v8 = vld [vmem:[#allocation5_spill] sm:$0xff] }
 0x280   :  { %1514 = vmatpush1.bf16.msra.mxu0 %v7072_v53  ;;  %1555 = vmatpush1.bf16.msra.mxu1 %v7073_v19  ;;  %v7083_v53 = vld [vmem:[#allocation6_spill] sm:$0xff] }
 0x281   :  { %1515 = vmatprep.subr.bf16.mxu0 %v7074_v38  ;;  %1556 = vmatprep.subr.bf16.mxu1 %v7075_v39 }
 0x284   :  { %1516 = vmatpush1.bf16.msra.mxu0 %v7076_v41  ;;  %1557 = vmatpush1.bf16.msra.mxu1 %v7077_v40 }
 0x285   :  { %1517 = vmatprep.subr.bf16.mxu0 %v7078_v18  ;;  %1558 = vmatprep.subr.bf16.mxu1 %v7079_v13  ;;  %v7084_v18 = vsub.s32 1, %v4663_v6 }
 0x287   :  { %v5232_v13 = vrot.slane %v7085_v9, %v7084_v18  ;;  %v7087_v9 = vld [vmem:[#allocation69_spill] sm:$0xff] }
 0x288   :  { %1518 = vmatpush1.bf16.msra.mxu0 %v7080_v49  ;;  %1559 = vmatpush1.bf16.msra.mxu1 %v7081_v52 }
 0x289   :  { %1588 = vmatprep.subr.bf16.mxu0 %v7082_v8  ;;  %1629 = vmatprep.subr.bf16.mxu1 %v7083_v53 }
 0x2f7   :  { %v1215_v19 = vpop.f32.mrb[12].mxu0  ;;  %v1256_v38 = vpop.f32.mrb[12].mxu1 }
 0x2f8   :  { %v1217_v37 = vpop.f32.mrb[13].mxu0  ;;  %v1258_v39 = vpop.f32.mrb[13].mxu1 }
 0x2f9   :  { %v1219_v36 = vpop.f32.mrb[14].mxu0  ;;  %v1260_v41 = vpop.f32.mrb[14].mxu1 }
 0x2fa   :  { %v1220_v28 = vpop.f32.mrb[15].mxu0  ;;  %v1261_v40 = vpop.f32.mrb[15].mxu1 }
 0x31e   :  { %v1300_v49 = vpop.f32.mrb[16].mxu0  ;;  %v1341_v11 = vpop.f32.mrb[16].mxu1 }
 0x31f   :  { %v1301_v52 = vadd.f32 %v1300_v49, %v1215_v19  ;;  %v1342_v7 = vadd.f32 %v1341_v11, %v1256_v38  ;;  %v1302_v8 = vpop.f32.mrb[17].mxu0  ;;  %v1343_v25 = vpop.f32.mrb[17].mxu1  ;;  %v7088_v11 = vld [vmem:[#allocation70_spill] sm:$0xff] }
 0x320   :  { %v1303_v53 = vadd.f32 %v1302_v8, %v1217_v37  ;;  %v1344_v27 = vadd.f32 %v1343_v25, %v1258_v39  ;;  %v1304_v20 = vpop.f32.mrb[18].mxu0  ;;  %v1345_v16 = vpop.f32.mrb[18].mxu1 }
 0x321   :  { %v1348_v36 = vadd.f32 %v1301_v52, %v7086_v15  ;;  %v1305_v41 = vpop.f32.mrb[19].mxu0  ;;  %v1346_v28 = vpop.f32.mrb[19].mxu1  ;;  %v1350_v38 = vadd.f32 %v1342_v7, %v7088_v11 }
 0x322   :  { %v1349_v40 = vadd.f32 %v1303_v53, %v5232_v13  ;;  %v1351_v18 = vadd.f32 %v1344_v27, %v7087_v9 }
 0x323   :  { %v3556_v6 = vmul.f32 -1.442695, %v1348_v36 }
 0x324   :  { %v3557_v12 = vmul.f32 -1.442695, %v1349_v40  ;;  %v3558_v49 = vmul.f32 -1.442695, %v1351_v18 }
 0x325   :  { %3878 = vpow2.f32 %v3556_v6 }
 0x326   :  { %3880 = vpow2.f32 %v3557_v12  ;;  %v7089_v12 = vld [vmem:[#allocation71_spill] sm:$0xff] }
 0x327   :  { %3882 = vpow2.f32 %v3558_v49 }
 0x328   :  { %3884 = vtanh.f32 %v1350_v38 }
 0x32f   :  { %v3879_v19 = vpop.eup %3878 }
 0x330   :  { %v3881_v37 = vpop.eup %3880  ;;  %v1355_v25 = vadd.f32 1.0, %v3879_v19 }
 0x331   :  { %v1361_v16 = vadd.f32 1.0, %v3881_v37  ;;  %v3883_v20 = vpop.eup %3882 }
 0x332   :  { %3886 = vrcp.f32 %v1355_v25  ;;  %v3885_v39 = vpop.eup %3884  ;;  %v1368_v36 = vadd.f32 1.0, %v3883_v20 }
 0x333   :  { %3888 = vrcp.f32 %v1361_v16 }
 0x334   :  { %3890 = vrcp.f32 %v1368_v36 }
 0x33c   :  { %v3887_v52 = vpop.eup %3886 }
 0x33d   :  { %v3889_v8 = vpop.eup %3888  ;;  %v1372_v53 = vmul.f32 %v3887_v52, %v3885_v39 }
 0x33e   :  { %v1371_v41 = vmul.f32 %v3889_v8, %v7089_v12  ;;  %v1410_v27 = vpop.f32.mrb[20].mxu0  ;;  %v1451_v28 = vpop.f32.mrb[20].mxu1 }
 0x33f   :  { %v1462_v40 = vrot.slane %v1410_v27, 4  ;;  %v1412_v7 = vpop.f32.mrb[21].mxu0  ;;  %v1453_v6 = vpop.f32.mrb[21].mxu1  ;;  %v1464_v12 = vrot.slane %v1451_v28, 4  ;;  %v5249_v28 = vld [vmem:[%s6697_s4] ss:$16 sps:$4 sm:$0xff]  }
 0x340   :  { %v5239_v18 = vadd.f32 %v1372_v53, %v1371_v41  ;;  %v1463_v49 = vrot.slane %v1412_v7, 4  ;;  %v1414_v38 = vpop.f32.mrb[22].mxu0  ;;  %v1455_v19 = vpop.f32.mrb[22].mxu1  ;;  %v1465_v8 = vrot.slane %v1453_v6, 4  ;;  %v5255_v6 = vld [vmem:[%s6697_s4 + $0x8] ss:$16 sps:$4 sm:$0xff]  }
 0x341   :  { %v1470_v37 = vadd.f32 %v1462_v40, %v4674_v14  ;;  %v1415_v25 = vpop.f32.mrb[23].mxu0  ;;  %v1456_v16 = vpop.f32.mrb[23].mxu1  ;;  %v1472_v36 = vadd.f32 %v1464_v12, %v4699_v32 }
 0x342   :  { %v1471_v39 = vadd.f32 %v1463_v49, %v5117_v23  ;;  %3892 = vtanh.f32 %v5239_v18  ;;  %v1473_v53 = vadd.f32 %v1465_v8, %v4692_v26  ;;  %v3891_v41 = vpop.eup %3890  ;;  %v5261_v16 = vld [vmem:[%s6697_s4 + $0x24] ss:$16 sps:$4 sm:$0xff]  }
 0x343   :  { %v3559_v20 = vmul.f32 -1.442695, %v1470_v37 }
 0x344   :  { %v3560_v52 = vmul.f32 -1.442695, %v1471_v39  ;;  %v3561_v7 = vmul.f32 -1.442695, %v1473_v53  ;;  %v5267_v39 = vld [vmem:[%s6697_s4 + $0x2c] ss:$16 sps:$4 sm:$0xff]  }
 0x345   :  { %3894 = vpow2.f32 %v3559_v20  ;;  %v5275_v20 = vld [vmem:[%s6697_s4 + $0x20] ss:$16 sps:$4 sm:$0xff]  }
 0x346   :  { %3896 = vpow2.f32 %v3560_v52  ;;  %v5281_v52 = vld [vmem:[%s6697_s4 + $0x28] ss:$16 sps:$4 sm:$0xff]  }
 0x347   :  { %3898 = vpow2.f32 %v3561_v7 }
 0x348   :  { %3900 = vtanh.f32 %v1472_v36 }
 0x34c   :  { %v3893_v27 = vpop.eup %3892 }
 0x34d   :  { %v1375_v40 = vmul.f32 %v3893_v27, %v3891_v41  ;;  %v1494_v41 = vrot.slane %v5146_v48, 6  ;;  %v7108_v48 = vld [vmem:[#allocation35_spill] sm:$0xff] }
 0x34f   :  { %v3895_v38 = vpop.eup %3894  ;;  %v1502_v19 = vpack.c.bf16 %v1375_v40, %v1375_v40 }
 0x350   :  { %v3897_v25 = vpop.eup %3896  ;;  %v1477_v49 = vadd.f32 1.0, %v3895_v38  ;;  %v7115_v38 = vld [vmem:[#allocation42_spill] sm:$0xff] }
 0x351   :  { %v1483_v37 = vadd.f32 1.0, %v3897_v25  ;;  %1536 = vmatmul.mubr.bf16.vlgmr.msra.gmra.mrb[24].mxu0 %v1502_v19  ;;  %1577 = vmatmul.mubr.bf16.vlgmr.msra.gmra.mrb[24].mxu1 %v1502_v19  ;;  %v3899_v8 = vpop.eup %3898  ;;  %v7116_v19 = vld [vmem:[#allocation43_spill] sm:$0xff]  ;;  %v7117_v25 = vld [vmem:[#allocation44_spill] sm:$0xff] }
 0x352   :  { %3902 = vrcp.f32 %v1477_v49  ;;  %1589 = vmatpush1.bf16.msra.mxu0 %v5249_v28  ;;  %1630 = vmatpush1.bf16.msra.mxu1 %v5255_v6  ;;  %v3901_v53 = vpop.eup %3900  ;;  %v1490_v36 = vadd.f32 1.0, %v3899_v8  ;;  %v7118_v49 = vld [vmem:[#allocation45_spill] sm:$0xff]  ;;  %v7120_v8 = vld [vmem:[#allocation47_spill] sm:$0xff] }
 0x353   :  { %3904 = vrcp.f32 %v1483_v37  ;;  %1590 = vmatprep.subr.bf16.mxu0 %v5261_v16  ;;  %1631 = vmatprep.subr.bf16.mxu1 %v5267_v39  ;;  %v7119_v37 = vld [vmem:[#allocation46_spill] sm:$0xff] }
 0x354   :  { %1620 = vmatprep.mubr.bf16.mxu0 %v6985_v31  ;;  %1661 = vmatprep.mubr.bf16.mxu1 %v6985_v31  ;;  %3906 = vrcp.f32 %v1490_v36  ;;  %v7126_v36 = vld [vmem:[#allocation53_spill] sm:$0xff] }
 0x356   :  { %1591 = vmatpush1.bf16.msra.mxu0 %v5275_v20  ;;  %1632 = vmatpush1.bf16.msra.mxu1 %v5281_v52 }
 0x357   :  { %1592 = vmatprep.subr.bf16.mxu0 %v4510_v42  ;;  %1633 = vmatprep.subr.bf16.mxu1 %v4515_v43  ;;  %v5294_v42 = vld [vmem:[%s6697_s4 + $0x60] ss:$16 sps:$4 sm:$0xff]   ;;  %v5300_v43 = vld [vmem:[%s6697_s4 + $0x68] ss:$16 sps:$4 sm:$0xff]  }
 0x35a   :  { %1593 = vmatpush1.bf16.msra.mxu0 %v4520_v44  ;;  %1634 = vmatpush1.bf16.msra.mxu1 %v4525_v45  ;;  %v5310_v45 = vld [vmem:[%s6697_s4 + $0x80] ss:$16 sps:$4 sm:$0xff]  }
 0x35b   :  { %1594 = vmatprep.subr.bf16.mxu0 %v4534_v46  ;;  %1635 = vmatprep.subr.bf16.mxu1 %v4539_v47  ;;  %v5316_v46 = vld [vmem:[%s6697_s4 + $0x88] ss:$16 sps:$4 sm:$0xff]  }
 0x35c   :  { %v3903_v12 = vpop.eup %3902 }
 0x35d   :  { %v3905_v27 = vpop.eup %3904  ;;  %v1497_v7 = vmul.f32 %v3903_v12, %v3901_v53  ;;  %v7121_v53 = vld [vmem:[#allocation48_spill] sm:$0xff]  ;;  %v7122_v12 = vld [vmem:[#allocation49_spill] sm:$0xff] }
 0x35e   :  { %v1496_v40 = vmul.f32 %v3905_v27, %v1494_v41  ;;  %1595 = vmatpush1.bf16.msra.mxu0 %v5294_v42  ;;  %1636 = vmatpush1.bf16.msra.mxu1 %v5300_v43  ;;  %v3907_v47 = vpop.eup %3906  ;;  %v7123_v41 = vld [vmem:[#allocation50_spill] sm:$0xff]  ;;  %v7124_v27 = vld [vmem:[#allocation51_spill] sm:$0xff] }
 0x35f   :  { %1596 = vmatprep.subr.bf16.mxu0 %v4558_v50  ;;  %1637 = vmatprep.subr.bf16.mxu1 %v4563_v51 }
 0x360   :  { %v5305_v44 = vadd.f32 %v1497_v7, %v1496_v40  ;;  %v7125_v7 = vld [vmem:[#allocation52_spill] sm:$0xff]  ;;  %v7127_v40 = vld [vmem:[#allocation54_spill] sm:$0xff] }
 0x362   :  { %1597 = vmatpush1.bf16.msra.mxu0 %v5310_v45  ;;  %1638 = vmatpush1.bf16.msra.mxu1 %v5316_v46  ;;  %3908 = vtanh.f32 %v5305_v44 }
 0x363   :  { %1598 = vmatprep.subr.bf16.mxu0 %v4580_v54  ;;  %1639 = vmatprep.subr.bf16.mxu1 %v4585_v55 }
 0x366   :  { %1599 = vmatpush1.bf16.msra.mxu0 %v4592_v56  ;;  %1640 = vmatpush1.bf16.msra.mxu1 %v4597_v57  ;;  %v7090_v56 = vld [vmem:[#allocation17_spill] sm:$0xff]  ;;  %v7091_v57 = vld [vmem:[#allocation18_spill] sm:$0xff] }
 0x367   :  { %1600 = vmatprep.subr.bf16.mxu0 %v4604_v58  ;;  %1641 = vmatprep.subr.bf16.mxu1 %v4609_v59  ;;  %v7092_v58 = vld [vmem:[#allocation19_spill] sm:$0xff]  ;;  %v7093_v59 = vld [vmem:[#allocation20_spill] sm:$0xff] }
 0x36a   :  { %1601 = vmatpush1.bf16.msra.mxu0 %v4616_v60  ;;  %1642 = vmatpush1.bf16.msra.mxu1 %v4621_v61  ;;  %v7094_v60 = vld [vmem:[#allocation21_spill] sm:$0xff]  ;;  %v7095_v61 = vld [vmem:[#allocation22_spill] sm:$0xff] }
 0x36b   :  { %1602 = vmatprep.subr.bf16.mxu0 %v4628_v62  ;;  %1643 = vmatprep.subr.bf16.mxu1 %v4633_v63  ;;  %v7096_v62 = vld [vmem:[#allocation23_spill] sm:$0xff]  ;;  %v7097_v63 = vld [vmem:[#allocation24_spill] sm:$0xff] }
 0x36c   :  { %v3909_v50 = vpop.eup %3908 }
 0x36d   :  { %v1500_v51 = vmul.f32 %v3909_v50, %v3907_v47  ;;  %v7128_v47 = vld [vmem:[#allocation55_spill] sm:$0xff]  ;;  %v7129_v50 = vld [vmem:[#allocation56_spill] sm:$0xff] }
 0x36e   :  { %1603 = vmatpush1.bf16.msra.mxu0 %v4640_v0  ;;  %1644 = vmatpush1.bf16.msra.mxu1 %v4645_v1  ;;  %v7098_v0 = vld [vmem:[#allocation25_spill] sm:$0xff]  ;;  %v7099_v1 = vld [vmem:[#allocation26_spill] sm:$0xff] }
 0x36f   :  { %1698 = vmatprep.subr.bf16.mxu0 %v4652_v3  ;;  %1739 = vmatprep.subr.bf16.mxu1 %v4657_v4  ;;  %v1501_v54 = vpack.c.bf16 %v1500_v51, %v1500_v51  ;;  %v7100_v3 = vld [vmem:[#allocation27_spill] sm:$0xff]  ;;  %v7101_v4 = vld [vmem:[#allocation28_spill] sm:$0xff]  ;;  %v7130_v51 = vld [vmem:[#allocation57_spill] sm:$0xff] }
 0x371   :  { %v1586_v55 = vrot.slane %v1501_v54, 2  ;;  %v7131_v54 = vld [vmem:[#allocation58_spill] sm:$0xff] }
 0x373   :  { %1621 = vmatmul.mubr.bf16.vlgmr.msra.gmra.mrb[28].mxu0 %v1586_v55  ;;  %1662 = vmatmul.mubr.bf16.vlgmr.msra.gmra.mrb[28].mxu1 %v1586_v55 }
 0x374   :  { %1699 = vmatpush1.bf16.msra.mxu0 %v4708_v22  ;;  %1740 = vmatpush1.bf16.msra.mxu1 %v4713_v24  ;;  %v7102_v22 = vld [vmem:[#allocation29_spill] sm:$0xff]  ;;  %v7103_v24 = vld [vmem:[#allocation30_spill] sm:$0xff] }
 0x375   :  { %1700 = vmatprep.subr.bf16.mxu0 %v4720_v29  ;;  %1741 = vmatprep.subr.bf16.mxu1 %v4725_v30  ;;  %v7104_v29 = vld [vmem:[#allocation31_spill] sm:$0xff]  ;;  %v7105_v30 = vld [vmem:[#allocation32_spill] sm:$0xff] }
 0x376   :  { %1730 = vmatprep.mubr.bf16.mxu0 %v6985_v31  ;;  %1771 = vmatprep.mubr.bf16.mxu1 %v6985_v31 }
 0x378   :  { %1701 = vmatpush1.bf16.msra.mxu0 %v4734_v33  ;;  %1742 = vmatpush1.bf16.msra.mxu1 %v4739_v5  ;;  %v7106_v33 = vld [vmem:[#allocation33_spill] sm:$0xff]  ;;  %v7107_v5 = vld [vmem:[#allocation34_spill] sm:$0xff] }
 0x379   :  { %1702 = vmatprep.subr.bf16.mxu0 %v7026_v2  ;;  %1743 = vmatprep.subr.bf16.mxu1 %v7027_v35  ;;  %v7109_v2 = vld [vmem:[#allocation36_spill] sm:$0xff]  ;;  %v7110_v35 = vld [vmem:[#allocation37_spill] sm:$0xff] }
 0x37c   :  { %1703 = vmatpush1.bf16.msra.mxu0 %v7028_v10  ;;  %1744 = vmatpush1.bf16.msra.mxu1 %v7029_v21  ;;  %v7111_v10 = vld [vmem:[#allocation38_spill] sm:$0xff]  ;;  %v7112_v21 = vld [vmem:[#allocation39_spill] sm:$0xff] }
 0x37d   :  { %1704 = vmatprep.subr.bf16.mxu0 %v7030_v34  ;;  %1745 = vmatprep.subr.bf16.mxu1 %v7031_v17  ;;  %v7113_v34 = vld [vmem:[#allocation40_spill] sm:$0xff]  ;;  %v7114_v17 = vld [vmem:[#allocation41_spill] sm:$0xff] }
 0x380   :  { %1705 = vmatpush1.bf16.msra.mxu0 %v7090_v56  ;;  %1746 = vmatpush1.bf16.msra.mxu1 %v7091_v57  ;;  %v7133_v56 = vld [vmem:[#allocation60_spill] sm:$0xff]  ;;  %v7134_v57 = vld [vmem:[#allocation61_spill] sm:$0xff] }
 0x381   :  { %1706 = vmatprep.subr.bf16.mxu0 %v7092_v58  ;;  %1747 = vmatprep.subr.bf16.mxu1 %v7093_v59  ;;  %v7135_v58 = vld [vmem:[#allocation62_spill] sm:$0xff]  ;;  %v7136_v59 = vld [vmem:[#allocation63_spill] sm:$0xff] }
 0x384   :  { %1707 = vmatpush1.bf16.msra.mxu0 %v7094_v60  ;;  %1748 = vmatpush1.bf16.msra.mxu1 %v7095_v61  ;;  %v7137_v60 = vld [vmem:[#allocation64_spill] sm:$0xff]  ;;  %v7138_v61 = vld [vmem:[#allocation65_spill] sm:$0xff] }
 0x385   :  { %1708 = vmatprep.subr.bf16.mxu0 %v7096_v62  ;;  %1749 = vmatprep.subr.bf16.mxu1 %v7097_v63  ;;  %v7139_v62 = vld [vmem:[#allocation66_spill] sm:$0xff]  ;;  %v5403_v63 = vld [vmem:[%s6697_s4 + $0x4] ss:$16 sps:$4 sm:$0xff]  }
 0x386   :  { %7140 = vst [vmem:[#allocation11_spill] sm:$0xff] %v5403_v63 }
 0x388   :  { %1709 = vmatpush1.bf16.msra.mxu0 %v7098_v0  ;;  %1750 = vmatpush1.bf16.msra.mxu1 %v7099_v1  ;;  %v5409_v0 = vld [vmem:[%s6697_s4 + $0xc] ss:$16 sps:$4 sm:$0xff]  }
 0x389   :  { %1710 = vmatprep.subr.bf16.mxu0 %v7100_v3  ;;  %1751 = vmatprep.subr.bf16.mxu1 %v7101_v4  ;;  %7141 = vst [vmem:[#allocation12_spill] sm:$0xff] %v5409_v0 }
 0x38c   :  { %1711 = vmatpush1.bf16.msra.mxu0 %v7102_v22  ;;  %1752 = vmatpush1.bf16.msra.mxu1 %v7103_v24 }
 0x38d   :  { %1712 = vmatprep.subr.bf16.mxu0 %v7104_v29  ;;  %1753 = vmatprep.subr.bf16.mxu1 %v7105_v30 }
 0x390   :  { %1713 = vmatpush1.bf16.msra.mxu0 %v7106_v33  ;;  %1754 = vmatpush1.bf16.msra.mxu1 %v7107_v5 }
 0x391   :  { %1825 = vmatprep.subr.bf16.mxu0 %v7108_v48  ;;  %1866 = vmatprep.subr.bf16.mxu1 %v7109_v2 }
 0x393   :  { %1731 = vmatmul.mubr.bf16.vlgmr.msra.gmra.mrb[32].mxu0 %v1586_v55  ;;  %1772 = vmatmul.mubr.bf16.vlgmr.msra.gmra.mrb[32].mxu1 %v1586_v55  ;;  %v7132_v55 = vld [vmem:[#allocation59_spill] sm:$0xff] }
 0x394   :  { %1826 = vmatpush1.bf16.msra.mxu0 %v7110_v35  ;;  %1867 = vmatpush1.bf16.msra.mxu1 %v7111_v10 }
 0x395   :  { %1827 = vmatprep.subr.bf16.mxu0 %v7112_v21  ;;  %1868 = vmatprep.subr.bf16.mxu1 %v7113_v34 }
 0x396   :  { %1857 = vmatprep.mubr.bf16.mxu0 %v6985_v31  ;;  %1898 = vmatprep.mubr.bf16.mxu1 %v6985_v31 }
 0x398   :  { %1828 = vmatpush1.bf16.msra.mxu0 %v7114_v17  ;;  %1869 = vmatpush1.bf16.msra.mxu1 %v7115_v38 }
 0x399   :  { %1829 = vmatprep.subr.bf16.mxu0 %v7116_v19  ;;  %1870 = vmatprep.subr.bf16.mxu1 %v7117_v25 }
 0x39c   :  { %1830 = vmatpush1.bf16.msra.mxu0 %v7118_v49  ;;  %1871 = vmatpush1.bf16.msra.mxu1 %v7119_v37 }
 0x39d   :  { %1831 = vmatprep.subr.bf16.mxu0 %v7120_v8  ;;  %1872 = vmatprep.subr.bf16.mxu1 %v7121_v53 }
 0x3a0   :  { %1832 = vmatpush1.bf16.msra.mxu0 %v7122_v12  ;;  %1873 = vmatpush1.bf16.msra.mxu1 %v7123_v41 }
 0x3a1   :  { %1833 = vmatprep.subr.bf16.mxu0 %v7124_v27  ;;  %1874 = vmatprep.subr.bf16.mxu1 %v7125_v7 }
 0x3a4   :  { %1834 = vmatpush1.bf16.msra.mxu0 %v7126_v36  ;;  %1875 = vmatpush1.bf16.msra.mxu1 %v7127_v40 }
 0x3a5   :  { %1835 = vmatprep.subr.bf16.mxu0 %v7128_v47  ;;  %1876 = vmatprep.subr.bf16.mxu1 %v7129_v50 }
 0x3a8   :  { %1836 = vmatpush1.bf16.msra.mxu0 %v7130_v51  ;;  %1877 = vmatpush1.bf16.msra.mxu1 %v7131_v54 }
 0x3a9   :  { %1837 = vmatprep.subr.bf16.mxu0 %v7132_v55  ;;  %1878 = vmatprep.subr.bf16.mxu1 %v7133_v56 }
 0x3ac   :  { %1838 = vmatpush1.bf16.msra.mxu0 %v7134_v57  ;;  %1879 = vmatpush1.bf16.msra.mxu1 %v7135_v58 }
 0x3ad   :  { %1839 = vmatprep.subr.bf16.mxu0 %v7136_v59  ;;  %1880 = vmatprep.subr.bf16.mxu1 %v7137_v60 }
 0x3b0   :  { %1840 = vmatpush1.bf16.msra.mxu0 %v7138_v61  ;;  %1881 = vmatpush1.bf16.msra.mxu1 %v7139_v62 }
 0x3b1   :  { %1910 = vmatprep.subr.bf16.mxu0 %v5403_v63  ;;  %1951 = vmatprep.subr.bf16.mxu1 %v5409_v0 }
 0x424   :  { %v1537_v1 = vpop.f32.mrb[24].mxu0  ;;  %v1578_v3 = vpop.f32.mrb[24].mxu1 }
 0x425   :  { %v1539_v4 = vpop.f32.mrb[25].mxu0  ;;  %v1580_v22 = vpop.f32.mrb[25].mxu1 }
 0x426   :  { %v1541_v24 = vpop.f32.mrb[26].mxu0  ;;  %v1582_v29 = vpop.f32.mrb[26].mxu1 }
 0x427   :  { %v1542_v30 = vpop.f32.mrb[27].mxu0  ;;  %v1583_v33 = vpop.f32.mrb[27].mxu1 }
 0x446   :  { %v1622_v5 = vpop.f32.mrb[28].mxu0  ;;  %v1663_v48 = vpop.f32.mrb[28].mxu1 }
 0x447   :  { %v1623_v2 = vadd.f32 %v1622_v5, %v1537_v1  ;;  %v1664_v35 = vadd.f32 %v1663_v48, %v1578_v3  ;;  %v1624_v10 = vpop.f32.mrb[29].mxu0  ;;  %v1665_v21 = vpop.f32.mrb[29].mxu1 }
 0x448   :  { %v1625_v34 = vadd.f32 %v1624_v10, %v1539_v4  ;;  %v1666_v17 = vadd.f32 %v1665_v21, %v1580_v22  ;;  %v1626_v38 = vpop.f32.mrb[30].mxu0  ;;  %v1667_v19 = vpop.f32.mrb[30].mxu1 }
 0x449   :  { %v1670_v25 = vadd.f32 %v1623_v2, %v7086_v15  ;;  %v1627_v49 = vpop.f32.mrb[31].mxu0  ;;  %v1668_v37 = vpop.f32.mrb[31].mxu1  ;;  %v1672_v7 = vadd.f32 %v1664_v35, %v7088_v11 }
 0x44a   :  { %v1671_v8 = vadd.f32 %v1625_v34, %v5232_v13  ;;  %v1673_v41 = vadd.f32 %v1666_v17, %v7087_v9 }
 0x44b   :  { %v3562_v53 = vmul.f32 -1.442695, %v1670_v25 }
 0x44c   :  { %v3563_v12 = vmul.f32 -1.442695, %v1671_v8  ;;  %v3564_v27 = vmul.f32 -1.442695, %v1673_v41  ;;  %v5453_v41 = vld [vmem:[%s6697_s4 + $0x48] ss:$16 sps:$4 sm:$0xff]  }
 0x44d   :  { %3910 = vpow2.f32 %v3562_v53 }
 0x44e   :  { %3912 = vpow2.f32 %v3563_v12  ;;  %v5447_v12 = vld [vmem:[%s6697_s4 + $0x40] ss:$16 sps:$4 sm:$0xff]  }
 0x44f   :  { %3914 = vpow2.f32 %v3564_v27 }
 0x450   :  { %3916 = vtanh.f32 %v1672_v7  ;;  %v5459_v7 = vld [vmem:[%s6697_s4 + $0x64] ss:$16 sps:$4 sm:$0xff]  }
 0x457   :  { %v3911_v36 = vpop.eup %3910 }
 0x458   :  { %v3913_v40 = vpop.eup %3912  ;;  %v1677_v47 = vadd.f32 1.0, %v3911_v36  ;;  %v5465_v36 = vld [vmem:[%s6697_s4 + $0x6c] ss:$16 sps:$4 sm:$0xff]  }
 0x459   :  { %v1683_v50 = vadd.f32 1.0, %v3913_v40  ;;  %v3915_v51 = vpop.eup %3914 }
 0x45a   :  { %3918 = vrcp.f32 %v1677_v47  ;;  %v3917_v54 = vpop.eup %3916  ;;  %v1690_v58 = vadd.f32 1.0, %v3915_v51  ;;  %v1816_v47 = vrot.slane %v5305_v44, 6 }
 0x45b   :  { %3920 = vrcp.f32 %v1683_v50 }
 0x45c   :  { %3922 = vrcp.f32 %v1690_v58  ;;  %v5491_v58 = vld [vmem:[%s6697_s4 + $0xa4] ss:$16 sps:$4 sm:$0xff]  }
 0x464   :  { %v3919_v55 = vpop.eup %3918 }
 0x465   :  { %v3921_v56 = vpop.eup %3920  ;;  %v1694_v57 = vmul.f32 %v3919_v55, %v3917_v54 }
 0x466   :  { %v1693_v59 = vmul.f32 %v3921_v56, %v5239_v18  ;;  %v1732_v60 = vpop.f32.mrb[32].mxu0  ;;  %v1773_v61 = vpop.f32.mrb[32].mxu1  ;;  %v5474_v56 = vld [vmem:[%s6697_s4 + $0x84] ss:$16 sps:$4 sm:$0xff]  }
 0x467   :  { %v1784_v62 = vrot.slane %v1732_v60, 2  ;;  %v1734_v1 = vpop.f32.mrb[33].mxu0  ;;  %v1775_v3 = vpop.f32.mrb[33].mxu1  ;;  %v1786_v21 = vrot.slane %v1773_v61, 2  ;;  %v5503_v60 = vld [vmem:[%s6697_s4 + $0xa0] ss:$16 sps:$4 sm:$0xff]  }
 0x468   :  { %v5417_v4 = vadd.f32 %v1694_v57, %v1693_v59  ;;  %v1785_v22 = vrot.slane %v1734_v1, 2  ;;  %v1736_v24 = vpop.f32.mrb[34].mxu0  ;;  %v1777_v29 = vpop.f32.mrb[34].mxu1  ;;  %v1787_v35 = vrot.slane %v1775_v3, 2  ;;  %v5480_v57 = vld [vmem:[%s6697_s4 + $0x8c] ss:$16 sps:$4 sm:$0xff]  }
 0x469   :  { %v1792_v30 = vadd.f32 %v1784_v62, %v4674_v14  ;;  %v1737_v33 = vpop.f32.mrb[35].mxu0  ;;  %v1778_v5 = vpop.f32.mrb[35].mxu1  ;;  %v1794_v19 = vadd.f32 %v1786_v21, %v4699_v32  ;;  %v5441_v32 = vld [vmem:[%s6697_s4 + $0x4c] ss:$16 sps:$4 sm:$0xff]   ;;  %v5509_v61 = vld [vmem:[%s6697_s4 + $0xa8] ss:$16 sps:$4 sm:$0xff]  }
 0x46a   :  { %v1793_v48 = vadd.f32 %v1785_v22, %v5117_v23  ;;  %3924 = vtanh.f32 %v5417_v4  ;;  %v1795_v10 = vadd.f32 %v1787_v35, %v4692_v26  ;;  %v3923_v34 = vpop.eup %3922  ;;  %v5435_v26 = vld [vmem:[%s6697_s4 + $0x44] ss:$16 sps:$4 sm:$0xff]   ;;  %v5497_v59 = vld [vmem:[%s6697_s4 + $0xac] ss:$16 sps:$4 sm:$0xff]   ;;  %v5527_v3 = vld [vmem:[%s6697_s4 + $0xc0] ss:$16 sps:$4 sm:$0xff]  }
 0x46b   :  { %v3565_v18 = vmul.f32 -1.442695, %v1792_v30  ;;  %v5515_v62 = vld [vmem:[%s6697_s4 + $0xc4] ss:$16 sps:$4 sm:$0xff]   ;;  %v5521_v1 = vld [vmem:[%s6697_s4 + $0xcc] ss:$16 sps:$4 sm:$0xff]  }
 0x46c   :  { %v3566_v2 = vmul.f32 -1.442695, %v1793_v48  ;;  %v3567_v38 = vmul.f32 -1.442695, %v1795_v10  ;;  %v5533_v22 = vld [vmem:[%s6697_s4 + $0xc8] ss:$16 sps:$4 sm:$0xff]  }
 0x46d   :  { %3926 = vpow2.f32 %v3565_v18  ;;  %v5539_v29 = vld [vmem:[%s6697_s4 + $0xe4] ss:$16 sps:$4 sm:$0xff]   ;;  %v5545_v30 = vld [vmem:[%s6697_s4 + $0xec] ss:$16 sps:$4 sm:$0xff]   ;;  %v5551_v48 = vld [vmem:[%s6697_s4 + $0xe0] ss:$16 sps:$4 sm:$0xff]  }
 0x46e   :  { %3928 = vpow2.f32 %v3566_v2  ;;  %v5557_v18 = vld [vmem:[%s6697_s4 + $0xe8] ss:$16 sps:$4 sm:$0xff]   ;;  %v5563_v2 = vld [vmem:[%s6695_s2 + $0x4] ss:$16 sps:$4 sm:$0xff]   ;;  %v5569_v35 = vld [vmem:[%s6695_s2 + $0xc] ss:$16 sps:$4 sm:$0xff]  }
 0x46f   :  { %3930 = vpow2.f32 %v3567_v38  ;;  %v5591_v38 = vld [vmem:[%s6695_s2 + $0x24] ss:$16 sps:$4 sm:$0xff]  }
 0x470   :  { %3932 = vtanh.f32 %v1794_v19  ;;  %v5597_v19 = vld [vmem:[%s6695_s2 + $0x2c] ss:$16 sps:$4 sm:$0xff]  }
 0x471   :  { %7142 = vst [vmem:[#allocation13_spill] sm:$0xff] %v5597_v19 }
 0x474   :  { %v3925_v17 = vpop.eup %3924 }
 0x475   :  { %v1697_v14 = vmul.f32 %v3925_v17, %v3923_v34  ;;  %v5579_v34 = vld [vmem:[%s6695_s2] ss:$16 sps:$4 sm:$0xff]   ;;  %v5585_v17 = vld [vmem:[%s6695_s2 + $0x8] ss:$16 sps:$4 sm:$0xff]  }
 0x477   :  { %v3927_v25 = vpop.eup %3926  ;;  %v1824_v49 = vpack.c.bf16 %v1697_v14, %v1697_v14  ;;  %v5605_v14 = vld [vmem:[%s6695_s2 + $0x20] ss:$16 sps:$4 sm:$0xff]  }
 0x478   :  { %v3929_v37 = vpop.eup %3928  ;;  %v1799_v23 = vadd.f32 1.0, %v3927_v25  ;;  %7143 = vst [vmem:[#allocation14_spill] sm:$0xff] %v5605_v14  ;;  %v5611_v25 = vld [vmem:[%s6695_s2 + $0x28] ss:$16 sps:$4 sm:$0xff]  }
 0x479   :  { %v1805_v8 = vadd.f32 1.0, %v3929_v37  ;;  %1858 = vmatmul.mubr.bf16.vlgmr.msra.gmra.mrb[36].mxu0 %v1824_v49  ;;  %1899 = vmatmul.mubr.bf16.vlgmr.msra.gmra.mrb[36].mxu1 %v1824_v49  ;;  %v3931_v53 = vpop.eup %3930  ;;  %7144 = vst [vmem:[#allocation15_spill] sm:$0xff] %v5611_v25  ;;  %v5617_v49 = vld [vmem:[%s6695_s2 + $0x44] ss:$16 sps:$4 sm:$0xff]   ;;  %v5623_v37 = vld [vmem:[%s6695_s2 + $0x4c] ss:$16 sps:$4 sm:$0xff]  }
 0x47a   :  { %3934 = vrcp.f32 %v1799_v23  ;;  %1911 = vmatpush1.bf16.msra.mxu0 %v5249_v28  ;;  %1952 = vmatpush1.bf16.msra.mxu1 %v5255_v6  ;;  %v3933_v27 = vpop.eup %3932  ;;  %v1812_v54 = vadd.f32 1.0, %v3931_v53  ;;  %7145 = vst [vmem:[#allocation16_spill] sm:$0xff] %v5617_v49  ;;  %7146 = vst [vmem:[#allocation5_spill] sm:$0xff] %v5623_v37  ;;  %v5629_v23 = vld [vmem:[%s6695_s2 + $0x40] ss:$16 sps:$4 sm:$0xff]  }
 0x47b   :  { %3936 = vrcp.f32 %v1805_v8  ;;  %1912 = vmatprep.subr.bf16.mxu0 %v5261_v16  ;;  %1953 = vmatprep.subr.bf16.mxu1 %v5267_v39  ;;  %7147 = vst [vmem:[#allocation6_spill] sm:$0xff] %v5629_v23  ;;  %v5635_v8 = vld [vmem:[%s6695_s2 + $0x48] ss:$16 sps:$4 sm:$0xff]   ;;  %v5641_v53 = vld [vmem:[%s6695_s2 + $0x64] ss:$16 sps:$4 sm:$0xff]  }
 0x47c   :  { %1942 = vmatprep.mubr.bf16.mxu0 %v6985_v31  ;;  %1983 = vmatprep.mubr.bf16.mxu1 %v6985_v31  ;;  %3938 = vrcp.f32 %v1812_v54  ;;  %7148 = vst [vmem:[#allocation67_spill] sm:$0xff] %v5635_v8  ;;  %7149 = vst [vmem:[#allocation68_spill] sm:$0xff] %v5641_v53  ;;  %v5677_v54 = vld [vmem:[%s6695_s2 + $0x80] ss:$16 sps:$4 sm:$0xff]  }
 0x47d   :  { %7155 = vst [vmem:[#allocation19_spill] sm:$0xff] %v5677_v54 }
 0x47e   :  { %1913 = vmatpush1.bf16.msra.mxu0 %v5275_v20  ;;  %1954 = vmatpush1.bf16.msra.mxu1 %v5281_v52 }
 0x47f   :  { %1914 = vmatprep.subr.bf16.mxu0 %v5435_v26  ;;  %1955 = vmatprep.subr.bf16.mxu1 %v5441_v32 }
 0x482   :  { %1915 = vmatpush1.bf16.msra.mxu0 %v5447_v12  ;;  %1956 = vmatpush1.bf16.msra.mxu1 %v5453_v41 }
 0x483   :  { %1916 = vmatprep.subr.bf16.mxu0 %v5459_v7  ;;  %1957 = vmatprep.subr.bf16.mxu1 %v5465_v36 }
 0x484   :  { %v3935_v40 = vpop.eup %3934 }
 0x485   :  { %v3937_v50 = vpop.eup %3936  ;;  %v1819_v51 = vmul.f32 %v3935_v40, %v3933_v27  ;;  %v5647_v27 = vld [vmem:[%s6695_s2 + $0x6c] ss:$16 sps:$4 sm:$0xff]   ;;  %v5653_v40 = vld [vmem:[%s6695_s2 + $0x60] ss:$16 sps:$4 sm:$0xff]  }
 0x486   :  { %v1818_v55 = vmul.f32 %v3937_v50, %v1816_v47  ;;  %1917 = vmatpush1.bf16.msra.mxu0 %v5294_v42  ;;  %1958 = vmatpush1.bf16.msra.mxu1 %v5300_v43  ;;  %v3939_v24 = vpop.eup %3938  ;;  %7150 = vst [vmem:[#allocation69_spill] sm:$0xff] %v5647_v27  ;;  %7151 = vst [vmem:[#allocation70_spill] sm:$0xff] %v5653_v40  ;;  %v5659_v47 = vld [vmem:[%s6695_s2 + $0x68] ss:$16 sps:$4 sm:$0xff]   ;;  %v5665_v50 = vld [vmem:[%s6695_s2 + $0x84] ss:$16 sps:$4 sm:$0xff]  }
 0x487   :  { %1918 = vmatprep.subr.bf16.mxu0 %v5474_v56  ;;  %1959 = vmatprep.subr.bf16.mxu1 %v5480_v57  ;;  %7152 = vst [vmem:[#allocation71_spill] sm:$0xff] %v5659_v47  ;;  %7153 = vst [vmem:[#allocation17_spill] sm:$0xff] %v5665_v50 }
 0x488   :  { %v5483_v44 = vadd.f32 %v1819_v51, %v1818_v55  ;;  %v5671_v51 = vld [vmem:[%s6695_s2 + $0x8c] ss:$16 sps:$4 sm:$0xff]   ;;  %v5683_v55 = vld [vmem:[%s6695_s2 + $0x88] ss:$16 sps:$4 sm:$0xff]  }
 0x489   :  { %7154 = vst [vmem:[#allocation18_spill] sm:$0xff] %v5671_v51  ;;  %7156 = vst [vmem:[#allocation20_spill] sm:$0xff] %v5683_v55 }
 0x48a   :  { %1919 = vmatpush1.bf16.msra.mxu0 %v5310_v45  ;;  %1960 = vmatpush1.bf16.msra.mxu1 %v5316_v46  ;;  %3940 = vtanh.f32 %v5483_v44 }
 0x48b   :  { %1920 = vmatprep.subr.bf16.mxu0 %v5491_v58  ;;  %1961 = vmatprep.subr.bf16.mxu1 %v5497_v59 }
 0x48e   :  { %1921 = vmatpush1.bf16.msra.mxu0 %v5503_v60  ;;  %1962 = vmatpush1.bf16.msra.mxu1 %v5509_v61 }
 0x48f   :  { %1922 = vmatprep.subr.bf16.mxu0 %v5515_v62  ;;  %1963 = vmatprep.subr.bf16.mxu1 %v5521_v1 }
 0x492   :  { %1923 = vmatpush1.bf16.msra.mxu0 %v5527_v3  ;;  %1964 = vmatpush1.bf16.msra.mxu1 %v5533_v22 }
 0x493   :  { %1924 = vmatprep.subr.bf16.mxu0 %v5539_v29  ;;  %1965 = vmatprep.subr.bf16.mxu1 %v5545_v30 }
 0x494   :  { %v3941_v33 = vpop.eup %3940 }
 0x495   :  { %v1822_v5 = vmul.f32 %v3941_v33, %v3939_v24  ;;  %v5689_v24 = vld [vmem:[%s6695_s2 + $0xa4] ss:$16 sps:$4 sm:$0xff]   ;;  %v5695_v33 = vld [vmem:[%s6695_s2 + $0xac] ss:$16 sps:$4 sm:$0xff]  }
 0x496   :  { %1925 = vmatpush1.bf16.msra.mxu0 %v5551_v48  ;;  %1966 = vmatpush1.bf16.msra.mxu1 %v5557_v18  ;;  %7157 = vst [vmem:[#allocation21_spill] sm:$0xff] %v5689_v24  ;;  %7158 = vst [vmem:[#allocation22_spill] sm:$0xff] %v5695_v33 }
 0x497   :  { %2020 = vmatprep.subr.bf16.mxu0 %v5563_v2  ;;  %2061 = vmatprep.subr.bf16.mxu1 %v5569_v35  ;;  %v1823_v10 = vpack.c.bf16 %v1822_v5, %v1822_v5  ;;  %v5701_v5 = vld [vmem:[%s6695_s2 + $0xa0] ss:$16 sps:$4 sm:$0xff]  }
 0x498   :  { %7159 = vst [vmem:[#allocation23_spill] sm:$0xff] %v5701_v5 }
 0x499   :  { %v5572_v21 = vrot.slane %v1823_v10, 3  ;;  %v5707_v10 = vld [vmem:[%s6695_s2 + $0xa8] ss:$16 sps:$4 sm:$0xff]  }
 0x49a   :  { %7160 = vst [vmem:[#allocation24_spill] sm:$0xff] %v5707_v10 }
 0x49b   :  { %1943 = vmatmul.mubr.bf16.vlgmr.msra.gmra.mrb[40].mxu0 %v5572_v21  ;;  %1984 = vmatmul.mubr.bf16.vlgmr.msra.gmra.mrb[40].mxu1 %v5572_v21 }
 0x49c   :  { %2021 = vmatpush1.bf16.msra.mxu0 %v5579_v34  ;;  %2062 = vmatpush1.bf16.msra.mxu1 %v5585_v17 }
 0x49d   :  { %2022 = vmatprep.subr.bf16.mxu0 %v5591_v38  ;;  %2063 = vmatprep.subr.bf16.mxu1 %v5597_v19 }
 0x49e   :  { %2052 = vmatprep.mubr.bf16.mxu0 %v6985_v31  ;;  %2093 = vmatprep.mubr.bf16.mxu1 %v6985_v31 }
 0x4a0   :  { %2023 = vmatpush1.bf16.msra.mxu0 %v5605_v14  ;;  %2064 = vmatpush1.bf16.msra.mxu1 %v5611_v25 }
 0x4a1   :  { %2024 = vmatprep.subr.bf16.mxu0 %v5617_v49  ;;  %2065 = vmatprep.subr.bf16.mxu1 %v5623_v37 }
 0x4a4   :  { %2025 = vmatpush1.bf16.msra.mxu0 %v5629_v23  ;;  %2066 = vmatpush1.bf16.msra.mxu1 %v5635_v8 }
 0x4a5   :  { %2026 = vmatprep.subr.bf16.mxu0 %v5641_v53  ;;  %2067 = vmatprep.subr.bf16.mxu1 %v5647_v27 }
 0x4a8   :  { %2027 = vmatpush1.bf16.msra.mxu0 %v5653_v40  ;;  %2068 = vmatpush1.bf16.msra.mxu1 %v5659_v47 }
 0x4a9   :  { %2028 = vmatprep.subr.bf16.mxu0 %v5665_v50  ;;  %2069 = vmatprep.subr.bf16.mxu1 %v5671_v51 }
 0x4ac   :  { %2029 = vmatpush1.bf16.msra.mxu0 %v5677_v54  ;;  %2070 = vmatpush1.bf16.msra.mxu1 %v5683_v55 }
 0x4ad   :  { %2030 = vmatprep.subr.bf16.mxu0 %v5689_v24  ;;  %2071 = vmatprep.subr.bf16.mxu1 %v5695_v33  ;;  %v5713_v24 = vld [vmem:[%s6695_s2 + $0xc4] ss:$16 sps:$4 sm:$0xff]   ;;  %v5719_v33 = vld [vmem:[%s6695_s2 + $0xcc] ss:$16 sps:$4 sm:$0xff]  }
 0x4ae   :  { %7161 = vst [vmem:[#allocation25_spill] sm:$0xff] %v5713_v24  ;;  %7162 = vst [vmem:[#allocation26_spill] sm:$0xff] %v5719_v33 }
 0x4b0   :  { %2031 = vmatpush1.bf16.msra.mxu0 %v5701_v5  ;;  %2072 = vmatpush1.bf16.msra.mxu1 %v5707_v10  ;;  %v5725_v5 = vld [vmem:[%s6695_s2 + $0xc0] ss:$16 sps:$4 sm:$0xff]   ;;  %v5731_v10 = vld [vmem:[%s6695_s2 + $0xc8] ss:$16 sps:$4 sm:$0xff]  }
 0x4b1   :  { %2032 = vmatprep.subr.bf16.mxu0 %v5713_v24  ;;  %2073 = vmatprep.subr.bf16.mxu1 %v5719_v33  ;;  %7163 = vst [vmem:[#allocation27_spill] sm:$0xff] %v5725_v5  ;;  %7164 = vst [vmem:[#allocation28_spill] sm:$0xff] %v5731_v10  ;;  %v5737_v24 = vld [vmem:[%s6695_s2 + $0xe4] ss:$16 sps:$4 sm:$0xff]   ;;  %v5743_v33 = vld [vmem:[%s6695_s2 + $0xec] ss:$16 sps:$4 sm:$0xff]  }
 0x4b2   :  { %7165 = vst [vmem:[#allocation29_spill] sm:$0xff] %v5737_v24  ;;  %7166 = vst [vmem:[#allocation30_spill] sm:$0xff] %v5743_v33 }
 0x4b4   :  { %2033 = vmatpush1.bf16.msra.mxu0 %v5725_v5  ;;  %2074 = vmatpush1.bf16.msra.mxu1 %v5731_v10  ;;  %v5749_v5 = vld [vmem:[%s6695_s2 + $0xe0] ss:$16 sps:$4 sm:$0xff]   ;;  %v5755_v10 = vld [vmem:[%s6695_s2 + $0xe8] ss:$16 sps:$4 sm:$0xff]  }
 0x4b5   :  { %2034 = vmatprep.subr.bf16.mxu0 %v5737_v24  ;;  %2075 = vmatprep.subr.bf16.mxu1 %v5743_v33  ;;  %7167 = vst [vmem:[#allocation31_spill] sm:$0xff] %v5749_v5  ;;  %7168 = vst [vmem:[#allocation32_spill] sm:$0xff] %v5755_v10  ;;  %v5761_v24 = vld [vmem:[%s6698_s5 + $0x4] ss:$16 sps:$4 sm:$0xff]   ;;  %v5767_v33 = vld [vmem:[%s6698_s5 + $0xc] ss:$16 sps:$4 sm:$0xff]  }
 0x4b6   :  { %7169 = vst [vmem:[#allocation33_spill] sm:$0xff] %v5761_v24  ;;  %7170 = vst [vmem:[#allocation34_spill] sm:$0xff] %v5767_v33 }
 0x4b8   :  { %2035 = vmatpush1.bf16.msra.mxu0 %v5749_v5  ;;  %2076 = vmatpush1.bf16.msra.mxu1 %v5755_v10  ;;  %v5775_v10 = vld [vmem:[%s6698_s5] ss:$16 sps:$4 sm:$0xff]  }
 0x4b9   :  { %2135 = vmatprep.subr.bf16.mxu0 %v5761_v24  ;;  %2176 = vmatprep.subr.bf16.mxu1 %v5767_v33  ;;  %7171 = vst [vmem:[#allocation35_spill] sm:$0xff] %v5775_v10  ;;  %v5781_v24 = vld [vmem:[%s6698_s5 + $0x8] ss:$16 sps:$4 sm:$0xff]   ;;  %v5787_v33 = vld [vmem:[%s6698_s5 + $0x24] ss:$16 sps:$4 sm:$0xff]  }
 0x4ba   :  { %7172 = vst [vmem:[#allocation36_spill] sm:$0xff] %v5781_v24  ;;  %7173 = vst [vmem:[#allocation37_spill] sm:$0xff] %v5787_v33 }
 0x4bb   :  { %2053 = vmatmul.mubr.bf16.vlgmr.msra.gmra.mrb[44].mxu0 %v5572_v21  ;;  %2094 = vmatmul.mubr.bf16.vlgmr.msra.gmra.mrb[44].mxu1 %v5572_v21  ;;  %v5793_v21 = vld [vmem:[%s6698_s5 + $0x2c] ss:$16 sps:$4 sm:$0xff]  }
 0x4bc   :  { %2136 = vmatpush1.bf16.msra.mxu0 %v5775_v10  ;;  %2177 = vmatpush1.bf16.msra.mxu1 %v5781_v24  ;;  %7174 = vst [vmem:[#allocation38_spill] sm:$0xff] %v5793_v21  ;;  %v5801_v24 = vld [vmem:[%s6698_s5 + $0x20] ss:$16 sps:$4 sm:$0xff]   ;;  %v5819_v10 = vld [vmem:[%s6698_s5 + $0x4c] ss:$16 sps:$4 sm:$0xff]  }
 0x4bd   :  { %2137 = vmatprep.subr.bf16.mxu0 %v5787_v33  ;;  %2178 = vmatprep.subr.bf16.mxu1 %v5793_v21  ;;  %7175 = vst [vmem:[#allocation39_spill] sm:$0xff] %v5801_v24  ;;  %v5807_v33 = vld [vmem:[%s6698_s5 + $0x28] ss:$16 sps:$4 sm:$0xff]   ;;  %v5813_v21 = vld [vmem:[%s6698_s5 + $0x44] ss:$16 sps:$4 sm:$0xff]   ;;  %7178 = vst [vmem:[#allocation42_spill] sm:$0xff] %v5819_v10 }
 0x4be   :  { %2167 = vmatprep.mubr.bf16.mxu0 %v6985_v31  ;;  %2208 = vmatprep.mubr.bf16.mxu1 %v6985_v31  ;;  %7176 = vst [vmem:[#allocation40_spill] sm:$0xff] %v5807_v33  ;;  %7177 = vst [vmem:[#allocation41_spill] sm:$0xff] %v5813_v21 }
 0x4c0   :  { %2138 = vmatpush1.bf16.msra.mxu0 %v5801_v24  ;;  %2179 = vmatpush1.bf16.msra.mxu1 %v5807_v33  ;;  %v5825_v24 = vld [vmem:[%s6698_s5 + $0x40] ss:$16 sps:$4 sm:$0xff]   ;;  %v5831_v33 = vld [vmem:[%s6698_s5 + $0x48] ss:$16 sps:$4 sm:$0xff]  }
 0x4c1   :  { %2139 = vmatprep.subr.bf16.mxu0 %v5813_v21  ;;  %2180 = vmatprep.subr.bf16.mxu1 %v5819_v10  ;;  %7179 = vst [vmem:[#allocation43_spill] sm:$0xff] %v5825_v24  ;;  %7180 = vst [vmem:[#allocation44_spill] sm:$0xff] %v5831_v33  ;;  %v5837_v21 = vld [vmem:[%s6698_s5 + $0x64] ss:$16 sps:$4 sm:$0xff]   ;;  %v5843_v10 = vld [vmem:[%s6698_s5 + $0x6c] ss:$16 sps:$4 sm:$0xff]  }
 0x4c2   :  { %7181 = vst [vmem:[#allocation45_spill] sm:$0xff] %v5837_v21  ;;  %7182 = vst [vmem:[#allocation46_spill] sm:$0xff] %v5843_v10 }
 0x4c4   :  { %2140 = vmatpush1.bf16.msra.mxu0 %v5825_v24  ;;  %2181 = vmatpush1.bf16.msra.mxu1 %v5831_v33  ;;  %v5849_v24 = vld [vmem:[%s6698_s5 + $0x60] ss:$16 sps:$4 sm:$0xff]   ;;  %v5855_v33 = vld [vmem:[%s6698_s5 + $0x68] ss:$16 sps:$4 sm:$0xff]  }
 0x4c5   :  { %2141 = vmatprep.subr.bf16.mxu0 %v5837_v21  ;;  %2182 = vmatprep.subr.bf16.mxu1 %v5843_v10  ;;  %7183 = vst [vmem:[#allocation47_spill] sm:$0xff] %v5849_v24  ;;  %7184 = vst [vmem:[#allocation48_spill] sm:$0xff] %v5855_v33  ;;  %v5861_v21 = vld [vmem:[%s6698_s5 + $0x84] ss:$16 sps:$4 sm:$0xff]   ;;  %v5867_v10 = vld [vmem:[%s6698_s5 + $0x8c] ss:$16 sps:$4 sm:$0xff]  }
 0x4c6   :  { %7185 = vst [vmem:[#allocation49_spill] sm:$0xff] %v5861_v21  ;;  %7186 = vst [vmem:[#allocation50_spill] sm:$0xff] %v5867_v10 }
 0x4c8   :  { %2142 = vmatpush1.bf16.msra.mxu0 %v5849_v24  ;;  %2183 = vmatpush1.bf16.msra.mxu1 %v5855_v33  ;;  %v5873_v24 = vld [vmem:[%s6698_s5 + $0x80] ss:$16 sps:$4 sm:$0xff]   ;;  %v5879_v33 = vld [vmem:[%s6698_s5 + $0x88] ss:$16 sps:$4 sm:$0xff]  }
 0x4c9   :  { %2143 = vmatprep.subr.bf16.mxu0 %v5861_v21  ;;  %2184 = vmatprep.subr.bf16.mxu1 %v5867_v10  ;;  %7187 = vst [vmem:[#allocation51_spill] sm:$0xff] %v5873_v24  ;;  %7188 = vst [vmem:[#allocation52_spill] sm:$0xff] %v5879_v33  ;;  %v5885_v21 = vld [vmem:[%s6698_s5 + $0xa4] ss:$16 sps:$4 sm:$0xff]   ;;  %v5891_v10 = vld [vmem:[%s6698_s5 + $0xac] ss:$16 sps:$4 sm:$0xff]  }
 0x4ca   :  { %7189 = vst [vmem:[#allocation53_spill] sm:$0xff] %v5885_v21  ;;  %7190 = vst [vmem:[#allocation54_spill] sm:$0xff] %v5891_v10 }
 0x4cc   :  { %2144 = vmatpush1.bf16.msra.mxu0 %v5873_v24  ;;  %2185 = vmatpush1.bf16.msra.mxu1 %v5879_v33  ;;  %v5897_v24 = vld [vmem:[%s6698_s5 + $0xa0] ss:$16 sps:$4 sm:$0xff]   ;;  %v5903_v33 = vld [vmem:[%s6698_s5 + $0xa8] ss:$16 sps:$4 sm:$0xff]  }
 0x4cd   :  { %2145 = vmatprep.subr.bf16.mxu0 %v5885_v21  ;;  %2186 = vmatprep.subr.bf16.mxu1 %v5891_v10  ;;  %7191 = vst [vmem:[#allocation55_spill] sm:$0xff] %v5897_v24  ;;  %7192 = vst [vmem:[#allocation56_spill] sm:$0xff] %v5903_v33  ;;  %v5909_v21 = vld [vmem:[%s6698_s5 + $0xc4] ss:$16 sps:$4 sm:$0xff]   ;;  %v5915_v10 = vld [vmem:[%s6698_s5 + $0xcc] ss:$16 sps:$4 sm:$0xff]  }
 0x4ce   :  { %7193 = vst [vmem:[#allocation57_spill] sm:$0xff] %v5909_v21  ;;  %7194 = vst [vmem:[#allocation58_spill] sm:$0xff] %v5915_v10 }
 0x4d0   :  { %2146 = vmatpush1.bf16.msra.mxu0 %v5897_v24  ;;  %2187 = vmatpush1.bf16.msra.mxu1 %v5903_v33  ;;  %v5921_v24 = vld [vmem:[%s6698_s5 + $0xc0] ss:$16 sps:$4 sm:$0xff]   ;;  %v5927_v33 = vld [vmem:[%s6698_s5 + $0xc8] ss:$16 sps:$4 sm:$0xff]  }
 0x4d1   :  { %2147 = vmatprep.subr.bf16.mxu0 %v5909_v21  ;;  %2188 = vmatprep.subr.bf16.mxu1 %v5915_v10  ;;  %7195 = vst [vmem:[#allocation59_spill] sm:$0xff] %v5921_v24  ;;  %7196 = vst [vmem:[#allocation60_spill] sm:$0xff] %v5927_v33  ;;  %v5933_v21 = vld [vmem:[%s6698_s5 + $0xe4] ss:$16 sps:$4 sm:$0xff]   ;;  %v5939_v10 = vld [vmem:[%s6698_s5 + $0xec] ss:$16 sps:$4 sm:$0xff]  }
 0x4d2   :  { %7197 = vst [vmem:[#allocation61_spill] sm:$0xff] %v5933_v21  ;;  %7198 = vst [vmem:[#allocation62_spill] sm:$0xff] %v5939_v10 }
 0x4d4   :  { %2148 = vmatpush1.bf16.msra.mxu0 %v5921_v24  ;;  %2189 = vmatpush1.bf16.msra.mxu1 %v5927_v33  ;;  %v5945_v24 = vld [vmem:[%s6698_s5 + $0xe0] ss:$16 sps:$4 sm:$0xff]   ;;  %v5951_v33 = vld [vmem:[%s6698_s5 + $0xe8] ss:$16 sps:$4 sm:$0xff]  }
 0x4d5   :  { %2149 = vmatprep.subr.bf16.mxu0 %v5933_v21  ;;  %2190 = vmatprep.subr.bf16.mxu1 %v5939_v10  ;;  %7199 = vst [vmem:[#allocation63_spill] sm:$0xff] %v5945_v24  ;;  %7200 = vst [vmem:[#allocation64_spill] sm:$0xff] %v5951_v33 }
 0x4d8   :  { %2150 = vmatpush1.bf16.msra.mxu0 %v5945_v24  ;;  %2191 = vmatpush1.bf16.msra.mxu1 %v5951_v33 }
 0x4d9   :  { %2217 = vmatprep.subr.bf16.mxu0 %v5403_v63  ;;  %2258 = vmatprep.subr.bf16.mxu1 %v5409_v0 }
 0x54c   :  { %v1859_v21 = vpop.f32.mrb[36].mxu0  ;;  %v1900_v10 = vpop.f32.mrb[36].mxu1 }
 0x54d   :  { %v1861_v5 = vpop.f32.mrb[37].mxu0  ;;  %v1902_v55 = vpop.f32.mrb[37].mxu1 }
 0x54e   :  { %v1863_v54 = vpop.f32.mrb[38].mxu0  ;;  %v1904_v51 = vpop.f32.mrb[38].mxu1 }
 0x54f   :  { %v1864_v50 = vpop.f32.mrb[39].mxu0  ;;  %v1905_v47 = vpop.f32.mrb[39].mxu1 }
 0x56e   :  { %v1944_v24 = vpop.f32.mrb[40].mxu0  ;;  %v1985_v40 = vpop.f32.mrb[40].mxu1 }
 0x56f   :  { %v1945_v27 = vadd.f32 %v1944_v24, %v1859_v21  ;;  %v1986_v53 = vadd.f32 %v1985_v40, %v1900_v10  ;;  %v1946_v8 = vpop.f32.mrb[41].mxu0  ;;  %v1987_v23 = vpop.f32.mrb[41].mxu1 }
 0x570   :  { %v1947_v37 = vadd.f32 %v1946_v8, %v1861_v5  ;;  %v1988_v33 = vadd.f32 %v1987_v23, %v1902_v55  ;;  %v1948_v49 = vpop.f32.mrb[42].mxu0  ;;  %v1989_v63 = vpop.f32.mrb[42].mxu1  ;;  %v7201_v5 = vld [vmem:[#allocation7_spill] sm:$0xff] }
 0x571   :  { %v1992_v0 = vadd.f32 %v1945_v27, %v7086_v15  ;;  %v1949_v25 = vpop.f32.mrb[43].mxu0  ;;  %v1990_v14 = vpop.f32.mrb[43].mxu1  ;;  %v1994_v40 = vadd.f32 %v1986_v53, %v7088_v11 }
 0x572   :  { %v1993_v19 = vadd.f32 %v1947_v37, %v5232_v13  ;;  %v1995_v47 = vadd.f32 %v1988_v33, %v7087_v9 }
 0x573   :  { %v3568_v54 = vmul.f32 -1.442695, %v1992_v0 }
 0x574   :  { %v3569_v51 = vmul.f32 -1.442695, %v1993_v19  ;;  %v3570_v50 = vmul.f32 -1.442695, %v1995_v47 }
 0x575   :  { %3942 = vpow2.f32 %v3568_v54 }
 0x576   :  { %3944 = vpow2.f32 %v3569_v51  ;;  %v7202_v51 = vld [vmem:[#allocation8_spill] sm:$0xff] }
 0x577   :  { %3946 = vpow2.f32 %v3570_v50 }
 0x578   :  { %3948 = vtanh.f32 %v1994_v40 }
 0x57f   :  { %v3943_v24 = vpop.eup %3942 }
 0x580   :  { %v3945_v8 = vpop.eup %3944  ;;  %v1999_v23 = vadd.f32 1.0, %v3943_v24 }
 0x581   :  { %v2005_v63 = vadd.f32 1.0, %v3945_v8  ;;  %v3947_v14 = vpop.eup %3946 }
 0x582   :  { %3950 = vrcp.f32 %v1999_v23  ;;  %v3949_v25 = vpop.eup %3948  ;;  %v2012_v37 = vadd.f32 1.0, %v3947_v14 }
 0x583   :  { %3952 = vrcp.f32 %v2005_v63 }
 0x584   :  { %3954 = vrcp.f32 %v2012_v37 }
 0x58c   :  { %v3951_v49 = vpop.eup %3950 }
 0x58d   :  { %v3953_v0 = vpop.eup %3952  ;;  %v2016_v19 = vmul.f32 %v3951_v49, %v3949_v25 }
 0x58e   :  { %v2015_v27 = vmul.f32 %v3953_v0, %v5417_v4  ;;  %v2054_v55 = vpop.f32.mrb[44].mxu0  ;;  %v2095_v33 = vpop.f32.mrb[44].mxu1  ;;  %v7203_v4 = vld [vmem:[#allocation10_spill] sm:$0xff]  ;;  %v7204_v0 = vld [vmem:[#allocation9_spill] sm:$0xff] }
 0x58f   :  { %v2102_v53 = vadd.f32 %v2054_v55, %v7201_v5  ;;  %v2056_v10 = vpop.f32.mrb[45].mxu0  ;;  %v2097_v21 = vpop.f32.mrb[45].mxu1 }
 0x590   :  { %v5962_v54 = vadd.f32 %v2016_v19, %v2015_v27  ;;  %v2103_v47 = vadd.f32 %v2056_v10, %v7202_v51  ;;  %v2058_v50 = vpop.f32.mrb[46].mxu0  ;;  %v2099_v40 = vpop.f32.mrb[46].mxu1  ;;  %v2105_v14 = vadd.f32 %v2097_v21, %v7203_v4  ;;  %v2104_v19 = vadd.f32 %v2095_v33, %v7204_v0 }
 0x591   :  { %v3571_v24 = vmul.f32 -1.442695, %v2102_v53  ;;  %v2059_v8 = vpop.f32.mrb[47].mxu0  ;;  %v2100_v23 = vpop.f32.mrb[47].mxu1 }
 0x592   :  { %v3572_v63 = vmul.f32 -1.442695, %v2103_v47  ;;  %3956 = vtanh.f32 %v5962_v54  ;;  %v3573_v25 = vmul.f32 -1.442695, %v2105_v14  ;;  %v3955_v49 = vpop.eup %3954  ;;  %v7207_v8 = vld [vmem:[#allocation15_spill] sm:$0xff]  ;;  %v7208_v23 = vld [vmem:[#allocation16_spill] sm:$0xff] }
 0x593   :  { %3958 = vpow2.f32 %v3571_v24  ;;  %v7206_v24 = vld [vmem:[#allocation14_spill] sm:$0xff] }
 0x594   :  { %3960 = vpow2.f32 %v3572_v63  ;;  %v7209_v63 = vld [vmem:[#allocation5_spill] sm:$0xff]  ;;  %v7210_v14 = vld [vmem:[#allocation6_spill] sm:$0xff] }
 0x595   :  { %3962 = vpow2.f32 %v3573_v25  ;;  %v7211_v25 = vld [vmem:[#allocation67_spill] sm:$0xff] }
 0x596   :  { %3964 = vtanh.f32 %v2104_v19  ;;  %v7213_v19 = vld [vmem:[#allocation69_spill] sm:$0xff] }
 0x59c   :  { %v3957_v27 = vpop.eup %3956 }
 0x59d   :  { %v3959_v55 = vpop.eup %3958  ;;  %v2019_v10 = vmul.f32 %v3957_v27, %v3955_v49  ;;  %v7212_v49 = vld [vmem:[#allocation68_spill] sm:$0xff]  ;;  %v7214_v27 = vld [vmem:[#allocation70_spill] sm:$0xff] }
 0x59e   :  { %v3961_v50 = vpop.eup %3960  ;;  %v2109_v40 = vadd.f32 1.0, %v3959_v55  ;;  %v7215_v55 = vld [vmem:[#allocation71_spill] sm:$0xff] }
 0x59f   :  { %v2115_v37 = vadd.f32 1.0, %v3961_v50  ;;  %v2134_v53 = vpack.c.bf16 %v2019_v10, %v2019_v10  ;;  %v3963_v33 = vpop.eup %3962  ;;  %v7216_v10 = vld [vmem:[#allocation17_spill] sm:$0xff]  ;;  %v7217_v50 = vld [vmem:[#allocation18_spill] sm:$0xff] }
 0x5a0   :  { %3966 = vrcp.f32 %v2109_v40  ;;  %v2122_v47 = vadd.f32 1.0, %v3963_v33  ;;  %v7218_v40 = vld [vmem:[#allocation19_spill] sm:$0xff]  ;;  %v7221_v33 = vld [vmem:[#allocation22_spill] sm:$0xff] }
 0x5a1   :  { %3968 = vrcp.f32 %v2115_v37  ;;  %2168 = vmatmul.mubr.bf16.vlgmr.msra.gmra.mrb[48].mxu0 %v2134_v53  ;;  %2209 = vmatmul.mubr.bf16.vlgmr.msra.gmra.mrb[48].mxu1 %v2134_v53  ;;  %v7219_v37 = vld [vmem:[#allocation20_spill] sm:$0xff]  ;;  %v7220_v53 = vld [vmem:[#allocation21_spill] sm:$0xff] }
 0x5a2   :  { %2218 = vmatpush1.bf16.msra.mxu0 %v5249_v28  ;;  %2259 = vmatpush1.bf16.msra.mxu1 %v5255_v6  ;;  %v3965_v28 = vpop.eup %3964  ;;  %v2126_v6 = vrot.slane %v5483_v44, 6  ;;  %3970 = vrcp.f32 %v2122_v47  ;;  %v7205_v44 = vld [vmem:[#allocation13_spill] sm:$0xff]  ;;  %v7227_v47 = vld [vmem:[#allocation28_spill] sm:$0xff] }
 0x5a3   :  { %2219 = vmatprep.subr.bf16.mxu0 %v5261_v16  ;;  %2260 = vmatprep.subr.bf16.mxu1 %v5267_v39 }
 0x5a4   :  { %2249 = vmatprep.mubr.bf16.mxu0 %v6985_v31  ;;  %2290 = vmatprep.mubr.bf16.mxu1 %v6985_v31 }
 0x5a6   :  { %2220 = vmatpush1.bf16.msra.mxu0 %v5275_v20  ;;  %2261 = vmatpush1.bf16.msra.mxu1 %v5281_v52 }
 0x5a7   :  { %2221 = vmatprep.subr.bf16.mxu0 %v5435_v26  ;;  %2262 = vmatprep.subr.bf16.mxu1 %v5441_v32 }
 0x5aa   :  { %v3967_v21 = vpop.eup %3966  ;;  %2222 = vmatpush1.bf16.msra.mxu0 %v5447_v12  ;;  %2263 = vmatpush1.bf16.msra.mxu1 %v5453_v41 }
 0x5ab   :  { %v3969_v16 = vpop.eup %3968  ;;  %v2129_v39 = vmul.f32 %v3967_v21, %v3965_v28  ;;  %2223 = vmatprep.subr.bf16.mxu0 %v5459_v7  ;;  %2264 = vmatprep.subr.bf16.mxu1 %v5465_v36  ;;  %v7222_v28 = vld [vmem:[#allocation23_spill] sm:$0xff]  ;;  %v7223_v21 = vld [vmem:[#allocation24_spill] sm:$0xff] }
 0x5ac   :  { %v2128_v20 = vmul.f32 %v3969_v16, %v2126_v6  ;;  %v7224_v6 = vld [vmem:[#allocation25_spill] sm:$0xff]  ;;  %v7225_v16 = vld [vmem:[#allocation26_spill] sm:$0xff] }
 0x5ae   :  { %v5983_v52 = vadd.f32 %v2129_v39, %v2128_v20  ;;  %2224 = vmatpush1.bf16.msra.mxu0 %v5294_v42  ;;  %2265 = vmatpush1.bf16.msra.mxu1 %v5300_v43  ;;  %v3971_v42 = vpop.eup %3970  ;;  %v7226_v39 = vld [vmem:[#allocation27_spill] sm:$0xff]  ;;  %v7228_v20 = vld [vmem:[#allocation29_spill] sm:$0xff] }
 0x5af   :  { %2225 = vmatprep.subr.bf16.mxu0 %v5474_v56  ;;  %2266 = vmatprep.subr.bf16.mxu1 %v5480_v57 }
 0x5b0   :  { %3972 = vtanh.f32 %v5983_v52 }
 0x5b2   :  { %2226 = vmatpush1.bf16.msra.mxu0 %v5310_v45  ;;  %2267 = vmatpush1.bf16.msra.mxu1 %v5316_v46 }
 0x5b3   :  { %2227 = vmatprep.subr.bf16.mxu0 %v5491_v58  ;;  %2268 = vmatprep.subr.bf16.mxu1 %v5497_v59 }
 0x5b6   :  { %2228 = vmatpush1.bf16.msra.mxu0 %v5503_v60  ;;  %2269 = vmatpush1.bf16.msra.mxu1 %v5509_v61 }
 0x5b7   :  { %2229 = vmatprep.subr.bf16.mxu0 %v5515_v62  ;;  %2270 = vmatprep.subr.bf16.mxu1 %v5521_v1 }
 0x5ba   :  { %v3973_v43 = vpop.eup %3972  ;;  %2230 = vmatpush1.bf16.msra.mxu0 %v5527_v3  ;;  %2271 = vmatpush1.bf16.msra.mxu1 %v5533_v22 }
 0x5bb   :  { %2231 = vmatprep.subr.bf16.mxu0 %v5539_v29  ;;  %2272 = vmatprep.subr.bf16.mxu1 %v5545_v30  ;;  %v2132_v45 = vmul.f32 %v3973_v43, %v3971_v42  ;;  %v7229_v42 = vld [vmem:[#allocation30_spill] sm:$0xff]  ;;  %v7230_v43 = vld [vmem:[#allocation31_spill] sm:$0xff] }
 0x5bd   :  { %v2133_v46 = vpack.c.bf16 %v2132_v45, %v2132_v45  ;;  %v7231_v45 = vld [vmem:[#allocation32_spill] sm:$0xff] }
 0x5be   :  { %2232 = vmatpush1.bf16.msra.mxu0 %v5551_v48  ;;  %2273 = vmatpush1.bf16.msra.mxu1 %v5557_v18 }
 0x5bf   :  { %2327 = vmatprep.subr.bf16.mxu0 %v5563_v2  ;;  %2368 = vmatprep.subr.bf16.mxu1 %v5569_v35 }
 0x5c1   :  { %2250 = vmatmul.mubr.bf16.vlgmr.msra.gmra.mrb[52].mxu0 %v2133_v46  ;;  %2291 = vmatmul.mubr.bf16.vlgmr.msra.gmra.mrb[52].mxu1 %v2133_v46 }
 0x5c2   :  { %2328 = vmatpush1.bf16.msra.mxu0 %v5579_v34  ;;  %2369 = vmatpush1.bf16.msra.mxu1 %v5585_v17 }
 0x5c3   :  { %2329 = vmatprep.subr.bf16.mxu0 %v5591_v38  ;;  %2370 = vmatprep.subr.bf16.mxu1 %v7205_v44 }
 0x5c4   :  { %2359 = vmatprep.mubr.bf16.mxu0 %v6985_v31  ;;  %2400 = vmatprep.mubr.bf16.mxu1 %v6985_v31 }
 0x5c6   :  { %2330 = vmatpush1.bf16.msra.mxu0 %v7206_v24  ;;  %2371 = vmatpush1.bf16.msra.mxu1 %v7207_v8 }
 0x5c7   :  { %2331 = vmatprep.subr.bf16.mxu0 %v7208_v23  ;;  %2372 = vmatprep.subr.bf16.mxu1 %v7209_v63 }
 0x5ca   :  { %2332 = vmatpush1.bf16.msra.mxu0 %v7210_v14  ;;  %2373 = vmatpush1.bf16.msra.mxu1 %v7211_v25 }
 0x5cb   :  { %2333 = vmatprep.subr.bf16.mxu0 %v7212_v49  ;;  %2374 = vmatprep.subr.bf16.mxu1 %v7213_v19 }
 0x5ce   :  { %2334 = vmatpush1.bf16.msra.mxu0 %v7214_v27  ;;  %2375 = vmatpush1.bf16.msra.mxu1 %v7215_v55 }
 0x5cf   :  { %2335 = vmatprep.subr.bf16.mxu0 %v7216_v10  ;;  %2376 = vmatprep.subr.bf16.mxu1 %v7217_v50 }
 0x5d2   :  { %2336 = vmatpush1.bf16.msra.mxu0 %v7218_v40  ;;  %2377 = vmatpush1.bf16.msra.mxu1 %v7219_v37 }
 0x5d3   :  { %2337 = vmatprep.subr.bf16.mxu0 %v7220_v53  ;;  %2378 = vmatprep.subr.bf16.mxu1 %v7221_v33  ;;  %v7232_v33 = vld [vmem:[#allocation33_spill] sm:$0xff] }
 0x5d6   :  { %2338 = vmatpush1.bf16.msra.mxu0 %v7222_v28  ;;  %2379 = vmatpush1.bf16.msra.mxu1 %v7223_v21  ;;  %v7233_v28 = vld [vmem:[#allocation34_spill] sm:$0xff] }
 0x5d7   :  { %2339 = vmatprep.subr.bf16.mxu0 %v7224_v6  ;;  %2380 = vmatprep.subr.bf16.mxu1 %v7225_v16  ;;  %v7234_v6 = vld [vmem:[#allocation35_spill] sm:$0xff]  ;;  %v7235_v16 = vld [vmem:[#allocation36_spill] sm:$0xff] }
 0x5da   :  { %2340 = vmatpush1.bf16.msra.mxu0 %v7226_v39  ;;  %2381 = vmatpush1.bf16.msra.mxu1 %v7227_v47  ;;  %v7236_v39 = vld [vmem:[#allocation37_spill] sm:$0xff]  ;;  %v7237_v47 = vld [vmem:[#allocation38_spill] sm:$0xff] }
 0x5db   :  { %2341 = vmatprep.subr.bf16.mxu0 %v7228_v20  ;;  %2382 = vmatprep.subr.bf16.mxu1 %v7229_v42  ;;  %v7247_v42 = vld [vmem:[#allocation48_spill] sm:$0xff]  ;;  %v7248_v20 = vld [vmem:[#allocation49_spill] sm:$0xff] }
 0x5de   :  { %2342 = vmatpush1.bf16.msra.mxu0 %v7230_v43  ;;  %2383 = vmatpush1.bf16.msra.mxu1 %v7231_v45  ;;  %v7238_v43 = vld [vmem:[#allocation39_spill] sm:$0xff]  ;;  %v7239_v45 = vld [vmem:[#allocation40_spill] sm:$0xff] }
 0x5df   :  { %2454 = vmatprep.subr.bf16.mxu0 %v7232_v33  ;;  %2495 = vmatprep.subr.bf16.mxu1 %v7233_v28  ;;  %v7240_v33 = vld [vmem:[#allocation41_spill] sm:$0xff]  ;;  %v7241_v28 = vld [vmem:[#allocation42_spill] sm:$0xff] }
 0x5e1   :  { %2360 = vmatmul.mubr.bf16.vlgmr.msra.gmra.mrb[56].mxu0 %v2133_v46  ;;  %2401 = vmatmul.mubr.bf16.vlgmr.msra.gmra.mrb[56].mxu1 %v2133_v46  ;;  %v7242_v46 = vld [vmem:[#allocation43_spill] sm:$0xff] }
 0x5e2   :  { %2455 = vmatpush1.bf16.msra.mxu0 %v7234_v6  ;;  %2496 = vmatpush1.bf16.msra.mxu1 %v7235_v16  ;;  %v7243_v6 = vld [vmem:[#allocation44_spill] sm:$0xff]  ;;  %v7244_v16 = vld [vmem:[#allocation45_spill] sm:$0xff] }
 0x5e3   :  { %2456 = vmatprep.subr.bf16.mxu0 %v7236_v39  ;;  %2497 = vmatprep.subr.bf16.mxu1 %v7237_v47  ;;  %v7245_v39 = vld [vmem:[#allocation46_spill] sm:$0xff]  ;;  %v7246_v47 = vld [vmem:[#allocation47_spill] sm:$0xff] }
 0x5e4   :  { %2486 = vmatprep.mubr.bf16.mxu0 %v6985_v31  ;;  %2527 = vmatprep.mubr.bf16.mxu1 %v6985_v31 }
 0x5e6   :  { %2457 = vmatpush1.bf16.msra.mxu0 %v7238_v43  ;;  %2498 = vmatpush1.bf16.msra.mxu1 %v7239_v45  ;;  %v7249_v43 = vld [vmem:[#allocation50_spill] sm:$0xff]  ;;  %v7250_v45 = vld [vmem:[#allocation51_spill] sm:$0xff] }
 0x5e7   :  { %2458 = vmatprep.subr.bf16.mxu0 %v7240_v33  ;;  %2499 = vmatprep.subr.bf16.mxu1 %v7241_v28  ;;  %v7251_v33 = vld [vmem:[#allocation52_spill] sm:$0xff]  ;;  %v7252_v28 = vld [vmem:[#allocation53_spill] sm:$0xff] }
 0x5ea   :  { %2459 = vmatpush1.bf16.msra.mxu0 %v7242_v46  ;;  %2500 = vmatpush1.bf16.msra.mxu1 %v7243_v6  ;;  %v7253_v46 = vld [vmem:[#allocation54_spill] sm:$0xff]  ;;  %v7254_v6 = vld [vmem:[#allocation55_spill] sm:$0xff] }
 0x5eb   :  { %2460 = vmatprep.subr.bf16.mxu0 %v7244_v16  ;;  %2501 = vmatprep.subr.bf16.mxu1 %v7245_v39  ;;  %v7255_v16 = vld [vmem:[#allocation56_spill] sm:$0xff]  ;;  %v7256_v39 = vld [vmem:[#allocation57_spill] sm:$0xff] }
 0x5ee   :  { %2461 = vmatpush1.bf16.msra.mxu0 %v7246_v47  ;;  %2502 = vmatpush1.bf16.msra.mxu1 %v7247_v42  ;;  %v7257_v47 = vld [vmem:[#allocation58_spill] sm:$0xff]  ;;  %v7258_v42 = vld [vmem:[#allocation59_spill] sm:$0xff] }
 0x5ef   :  { %2462 = vmatprep.subr.bf16.mxu0 %v7248_v20  ;;  %2503 = vmatprep.subr.bf16.mxu1 %v7249_v43  ;;  %v7259_v20 = vld [vmem:[#allocation60_spill] sm:$0xff]  ;;  %v7260_v43 = vld [vmem:[#allocation61_spill] sm:$0xff] }
 0x5f2   :  { %2463 = vmatpush1.bf16.msra.mxu0 %v7250_v45  ;;  %2504 = vmatpush1.bf16.msra.mxu1 %v7251_v33  ;;  %v7261_v45 = vld [vmem:[#allocation62_spill] sm:$0xff]  ;;  %v7262_v33 = vld [vmem:[#allocation63_spill] sm:$0xff] }
 0x5f3   :  { %2464 = vmatprep.subr.bf16.mxu0 %v7252_v28  ;;  %2505 = vmatprep.subr.bf16.mxu1 %v7253_v46  ;;  %v7263_v28 = vld [vmem:[#allocation64_spill] sm:$0xff]  ;;  %v7264_v46 = vld [vmem:[#allocation11_spill] sm:$0xff] }
 0x5f6   :  { %2465 = vmatpush1.bf16.msra.mxu0 %v7254_v6  ;;  %2506 = vmatpush1.bf16.msra.mxu1 %v7255_v16  ;;  %v7265_v6 = vld [vmem:[#allocation12_spill] sm:$0xff] }
 0x5f7   :  { %2466 = vmatprep.subr.bf16.mxu0 %v7256_v39  ;;  %2507 = vmatprep.subr.bf16.mxu1 %v7257_v47 }
 0x5fa   :  { %2467 = vmatpush1.bf16.msra.mxu0 %v7258_v42  ;;  %2508 = vmatpush1.bf16.msra.mxu1 %v7259_v20 }
 0x5fb   :  { %2468 = vmatprep.subr.bf16.mxu0 %v7260_v43  ;;  %2509 = vmatprep.subr.bf16.mxu1 %v7261_v45 }
 0x5fe   :  { %2469 = vmatpush1.bf16.msra.mxu0 %v7262_v33  ;;  %2510 = vmatpush1.bf16.msra.mxu1 %v7263_v28 }
 0x5ff   :  { %2539 = vmatprep.subr.bf16.mxu0 %v7264_v46  ;;  %2580 = vmatprep.subr.bf16.mxu1 %v7265_v6 }
 0x674   :  { %v2169_v16 = vpop.f32.mrb[48].mxu0  ;;  %v2210_v39 = vpop.f32.mrb[48].mxu1 }
 0x675   :  { %v2171_v21 = vpop.f32.mrb[49].mxu0  ;;  %v2212_v47 = vpop.f32.mrb[49].mxu1 }
 0x676   :  { %v2173_v53 = vpop.f32.mrb[50].mxu0  ;;  %v2214_v42 = vpop.f32.mrb[50].mxu1 }
 0x677   :  { %v2174_v37 = vpop.f32.mrb[51].mxu0  ;;  %v2215_v20 = vpop.f32.mrb[51].mxu1 }
 0x694   :  { %v2251_v40 = vpop.f32.mrb[52].mxu0  ;;  %v2292_v43 = vpop.f32.mrb[52].mxu1 }
 0x695   :  { %v2252_v50 = vadd.f32 %v2251_v40, %v2169_v16  ;;  %v2293_v45 = vadd.f32 %v2292_v43, %v2210_v39  ;;  %v2253_v10 = vpop.f32.mrb[53].mxu0  ;;  %v2294_v33 = vpop.f32.mrb[53].mxu1 }
 0x696   :  { %v2254_v55 = vadd.f32 %v2253_v10, %v2171_v21  ;;  %v2295_v28 = vadd.f32 %v2294_v33, %v2212_v47  ;;  %v2255_v27 = vpop.f32.mrb[54].mxu0  ;;  %v2296_v46 = vpop.f32.mrb[54].mxu1 }
 0x697   :  { %v2299_v6 = vadd.f32 %v2252_v50, %v7086_v15  ;;  %v2256_v19 = vpop.f32.mrb[55].mxu0  ;;  %v2297_v49 = vpop.f32.mrb[55].mxu1  ;;  %v2301_v16 = vadd.f32 %v2293_v45, %v7088_v11 }
 0x698   :  { %v2300_v25 = vadd.f32 %v2254_v55, %v5232_v13  ;;  %v2302_v37 = vadd.f32 %v2295_v28, %v7087_v9 }
 0x699   :  { %v3574_v53 = vmul.f32 -1.442695, %v2299_v6 }
 0x69a   :  { %v3575_v42 = vmul.f32 -1.442695, %v2300_v25  ;;  %v3576_v40 = vmul.f32 -1.442695, %v2302_v37 }
 0x69b   :  { %3974 = vpow2.f32 %v3574_v53 }
 0x69c   :  { %3976 = vpow2.f32 %v3575_v42 }
 0x69d   :  { %3978 = vpow2.f32 %v3576_v40 }
 0x69e   :  { %3980 = vtanh.f32 %v2301_v16 }
 0x6a5   :  { %v3975_v39 = vpop.eup %3974 }
 0x6a6   :  { %v3977_v10 = vpop.eup %3976  ;;  %v2306_v33 = vadd.f32 1.0, %v3975_v39 }
 0x6a7   :  { %v2312_v27 = vadd.f32 1.0, %v3977_v10  ;;  %v3979_v49 = vpop.eup %3978 }
 0x6a8   :  { %3982 = vrcp.f32 %v2306_v33  ;;  %v3981_v19 = vpop.eup %3980  ;;  %v2319_v21 = vadd.f32 1.0, %v3979_v49 }
 0x6a9   :  { %3984 = vrcp.f32 %v2312_v27 }
 0x6aa   :  { %3986 = vrcp.f32 %v2319_v21 }
 0x6b2   :  { %v3983_v55 = vpop.eup %3982 }
 0x6b3   :  { %v3985_v50 = vpop.eup %3984  ;;  %v2323_v25 = vmul.f32 %v3983_v55, %v3981_v19 }
 0x6b4   :  { %v2322_v47 = vmul.f32 %v3985_v50, %v5962_v54  ;;  %v2361_v28 = vpop.f32.mrb[56].mxu0  ;;  %v2402_v20 = vpop.f32.mrb[56].mxu1 }
 0x6b5   :  { %v2413_v43 = vrot.slane %v2361_v28, 6  ;;  %v2363_v45 = vpop.f32.mrb[57].mxu0  ;;  %v2404_v46 = vpop.f32.mrb[57].mxu1  ;;  %v2415_v19 = vrot.slane %v2402_v20, 6  ;;  %v6089_v20 = vld [vmem:[%s6697_s4] ss:$16 sps:$4 sm:$0xff]  }
 0x6b6   :  { %v6079_v6 = vadd.f32 %v2323_v25, %v2322_v47  ;;  %v2414_v53 = vrot.slane %v2363_v45, 6  ;;  %v2365_v42 = vpop.f32.mrb[58].mxu0  ;;  %v2406_v37 = vpop.f32.mrb[58].mxu1  ;;  %v2416_v27 = vrot.slane %v2404_v46, 6  ;;  %v6095_v46 = vld [vmem:[%s6697_s4 + $0x8] ss:$16 sps:$4 sm:$0xff]  }
 0x6b7   :  { %v2421_v40 = vadd.f32 %v2413_v43, %v7201_v5  ;;  %v2366_v16 = vpop.f32.mrb[59].mxu0  ;;  %v2407_v39 = vpop.f32.mrb[59].mxu1  ;;  %v2423_v21 = vadd.f32 %v2415_v19, %v7204_v0  ;;  %v6101_v37 = vld [vmem:[%s6697_s4 + $0x24] ss:$16 sps:$4 sm:$0xff]  }
 0x6b8   :  { %v2422_v10 = vadd.f32 %v2414_v53, %v7202_v51  ;;  %3988 = vtanh.f32 %v6079_v6  ;;  %v2424_v49 = vadd.f32 %v2416_v27, %v7203_v4  ;;  %v3987_v55 = vpop.eup %3986  ;;  %v6115_v16 = vld [vmem:[%s6697_s4 + $0x20] ss:$16 sps:$4 sm:$0xff]   ;;  %v6121_v39 = vld [vmem:[%s6697_s4 + $0x28] ss:$16 sps:$4 sm:$0xff]   ;;  %v2445_v27 = vrot.slane %v5983_v52, 6 }
 0x6b9   :  { %v3577_v54 = vmul.f32 -1.442695, %v2421_v40  ;;  %v6107_v40 = vld [vmem:[%s6697_s4 + $0x2c] ss:$16 sps:$4 sm:$0xff]   ;;  %v7281_v52 = vld [vmem:[#allocation27_spill] sm:$0xff] }
 0x6ba   :  { %v3578_v33 = vmul.f32 -1.442695, %v2422_v10  ;;  %v3579_v25 = vmul.f32 -1.442695, %v2424_v49 }
 0x6bb   :  { %3990 = vpow2.f32 %v3577_v54 }
 0x6bc   :  { %3992 = vpow2.f32 %v3578_v33 }
 0x6bd   :  { %3994 = vpow2.f32 %v3579_v25  ;;  %v7288_v25 = vld [vmem:[#allocation34_spill] sm:$0xff] }
 0x6be   :  { %3996 = vtanh.f32 %v2423_v21  ;;  %v7289_v21 = vld [vmem:[#allocation35_spill] sm:$0xff] }
 0x6c2   :  { %v3989_v50 = vpop.eup %3988 }
 0x6c3   :  { %v2326_v47 = vmul.f32 %v3989_v50, %v3987_v55 }
 0x6c5   :  { %v3991_v28 = vpop.eup %3990  ;;  %v2453_v43 = vpack.c.bf16 %v2326_v47, %v2326_v47  ;;  %v7290_v47 = vld [vmem:[#allocation36_spill] sm:$0xff] }
 0x6c6   :  { %v3993_v45 = vpop.eup %3992  ;;  %v2428_v53 = vadd.f32 1.0, %v3991_v28  ;;  %v7291_v28 = vld [vmem:[#allocation37_spill] sm:$0xff] }
 0x6c7   :  { %v2434_v42 = vadd.f32 1.0, %v3993_v45  ;;  %2487 = vmatmul.mubr.bf16.vlgmr.msra.gmra.mrb[60].mxu0 %v2453_v43  ;;  %2528 = vmatmul.mubr.bf16.vlgmr.msra.gmra.mrb[60].mxu1 %v2453_v43  ;;  %v3995_v10 = vpop.eup %3994  ;;  %v7292_v43 = vld [vmem:[#allocation38_spill] sm:$0xff]  ;;  %v7293_v45 = vld [vmem:[#allocation39_spill] sm:$0xff] }
 0x6c8   :  { %3998 = vrcp.f32 %v2428_v53  ;;  %2540 = vmatpush1.bf16.msra.mxu0 %v6089_v20  ;;  %2581 = vmatpush1.bf16.msra.mxu1 %v6095_v46  ;;  %v3997_v54 = vpop.eup %3996  ;;  %v2441_v55 = vadd.f32 1.0, %v3995_v10  ;;  %v7294_v53 = vld [vmem:[#allocation40_spill] sm:$0xff]  ;;  %v7296_v10 = vld [vmem:[#allocation42_spill] sm:$0xff] }
 0x6c9   :  { %4000 = vrcp.f32 %v2434_v42  ;;  %2541 = vmatprep.subr.bf16.mxu0 %v6101_v37  ;;  %2582 = vmatprep.subr.bf16.mxu1 %v6107_v40  ;;  %v7295_v42 = vld [vmem:[#allocation41_spill] sm:$0xff] }
 0x6ca   :  { %2571 = vmatprep.mubr.bf16.mxu0 %v6985_v31  ;;  %2612 = vmatprep.mubr.bf16.mxu1 %v6985_v31  ;;  %4002 = vrcp.f32 %v2441_v55  ;;  %v7302_v55 = vld [vmem:[#allocation48_spill] sm:$0xff] }
 0x6cc   :  { %2542 = vmatpush1.bf16.msra.mxu0 %v6115_v16  ;;  %2583 = vmatpush1.bf16.msra.mxu1 %v6121_v39 }
 0x6cd   :  { %2543 = vmatprep.subr.bf16.mxu0 %v5435_v26  ;;  %2584 = vmatprep.subr.bf16.mxu1 %v5441_v32  ;;  %v6134_v26 = vld [vmem:[%s6697_s4 + $0x60] ss:$16 sps:$4 sm:$0xff]   ;;  %v6140_v32 = vld [vmem:[%s6697_s4 + $0x68] ss:$16 sps:$4 sm:$0xff]  }
 0x6d0   :  { %2544 = vmatpush1.bf16.msra.mxu0 %v5447_v12  ;;  %2585 = vmatpush1.bf16.msra.mxu1 %v5453_v41  ;;  %v6150_v41 = vld [vmem:[%s6697_s4 + $0x80] ss:$16 sps:$4 sm:$0xff]  }
 0x6d1   :  { %2545 = vmatprep.subr.bf16.mxu0 %v5459_v7  ;;  %2586 = vmatprep.subr.bf16.mxu1 %v5465_v36  ;;  %v6156_v7 = vld [vmem:[%s6697_s4 + $0x88] ss:$16 sps:$4 sm:$0xff]  }
 0x6d2   :  { %v3999_v33 = vpop.eup %3998 }
 0x6d3   :  { %v4001_v49 = vpop.eup %4000  ;;  %v2448_v19 = vmul.f32 %v3999_v33, %v3997_v54  ;;  %v7297_v54 = vld [vmem:[#allocation43_spill] sm:$0xff]  ;;  %v7298_v33 = vld [vmem:[#allocation44_spill] sm:$0xff] }
 0x6d4   :  { %v2447_v50 = vmul.f32 %v4001_v49, %v2445_v27  ;;  %2546 = vmatpush1.bf16.msra.mxu0 %v6134_v26  ;;  %2587 = vmatpush1.bf16.msra.mxu1 %v6140_v32  ;;  %v4003_v36 = vpop.eup %4002  ;;  %v7299_v27 = vld [vmem:[#allocation45_spill] sm:$0xff]  ;;  %v7300_v49 = vld [vmem:[#allocation46_spill] sm:$0xff] }
 0x6d5   :  { %2547 = vmatprep.subr.bf16.mxu0 %v5474_v56  ;;  %2588 = vmatprep.subr.bf16.mxu1 %v5480_v57 }
 0x6d6   :  { %v6145_v12 = vadd.f32 %v2448_v19, %v2447_v50  ;;  %v7301_v19 = vld [vmem:[#allocation47_spill] sm:$0xff]  ;;  %v7303_v50 = vld [vmem:[#allocation49_spill] sm:$0xff] }
 0x6d8   :  { %2548 = vmatpush1.bf16.msra.mxu0 %v6150_v41  ;;  %2589 = vmatpush1.bf16.msra.mxu1 %v6156_v7  ;;  %4004 = vtanh.f32 %v6145_v12 }
 0x6d9   :  { %2549 = vmatprep.subr.bf16.mxu0 %v5491_v58  ;;  %2590 = vmatprep.subr.bf16.mxu1 %v5497_v59 }
 0x6dc   :  { %2550 = vmatpush1.bf16.msra.mxu0 %v5503_v60  ;;  %2591 = vmatpush1.bf16.msra.mxu1 %v5509_v61  ;;  %v7266_v60 = vld [vmem:[#allocation67_spill] sm:$0xff]  ;;  %v7267_v61 = vld [vmem:[#allocation68_spill] sm:$0xff] }
 0x6dd   :  { %2551 = vmatprep.subr.bf16.mxu0 %v5515_v62  ;;  %2592 = vmatprep.subr.bf16.mxu1 %v5521_v1  ;;  %v7268_v62 = vld [vmem:[#allocation69_spill] sm:$0xff]  ;;  %v7269_v1 = vld [vmem:[#allocation70_spill] sm:$0xff] }
 0x6e0   :  { %2552 = vmatpush1.bf16.msra.mxu0 %v5527_v3  ;;  %2593 = vmatpush1.bf16.msra.mxu1 %v5533_v22  ;;  %v7270_v3 = vld [vmem:[#allocation71_spill] sm:$0xff]  ;;  %v7271_v22 = vld [vmem:[#allocation17_spill] sm:$0xff] }
 0x6e1   :  { %2553 = vmatprep.subr.bf16.mxu0 %v5539_v29  ;;  %2594 = vmatprep.subr.bf16.mxu1 %v5545_v30  ;;  %v7272_v29 = vld [vmem:[#allocation18_spill] sm:$0xff]  ;;  %v7273_v30 = vld [vmem:[#allocation19_spill] sm:$0xff] }
 0x6e2   :  { %v4005_v56 = vpop.eup %4004 }
 0x6e3   :  { %v2451_v57 = vmul.f32 %v4005_v56, %v4003_v36  ;;  %v7304_v36 = vld [vmem:[#allocation50_spill] sm:$0xff]  ;;  %v7305_v56 = vld [vmem:[#allocation51_spill] sm:$0xff] }
 0x6e4   :  { %2554 = vmatpush1.bf16.msra.mxu0 %v5551_v48  ;;  %2595 = vmatpush1.bf16.msra.mxu1 %v5557_v18  ;;  %v7274_v48 = vld [vmem:[#allocation20_spill] sm:$0xff]  ;;  %v7275_v18 = vld [vmem:[#allocation21_spill] sm:$0xff] }
 0x6e5   :  { %2649 = vmatprep.subr.bf16.mxu0 %v5563_v2  ;;  %2690 = vmatprep.subr.bf16.mxu1 %v5569_v35  ;;  %v2452_v58 = vpack.c.bf16 %v2451_v57, %v2451_v57  ;;  %v7276_v2 = vld [vmem:[#allocation22_spill] sm:$0xff]  ;;  %v7277_v35 = vld [vmem:[#allocation23_spill] sm:$0xff]  ;;  %v7306_v57 = vld [vmem:[#allocation52_spill] sm:$0xff] }
 0x6e7   :  { %v2537_v59 = vrot.slane %v2452_v58, 1  ;;  %v7307_v58 = vld [vmem:[#allocation53_spill] sm:$0xff] }
 0x6e9   :  { %2572 = vmatmul.mubr.bf16.vlgmr.msra.gmra.mrb[64].mxu0 %v2537_v59  ;;  %2613 = vmatmul.mubr.bf16.vlgmr.msra.gmra.mrb[64].mxu1 %v2537_v59 }
 0x6ea   :  { %2650 = vmatpush1.bf16.msra.mxu0 %v5579_v34  ;;  %2691 = vmatpush1.bf16.msra.mxu1 %v5585_v17  ;;  %v7278_v34 = vld [vmem:[#allocation24_spill] sm:$0xff]  ;;  %v7279_v17 = vld [vmem:[#allocation25_spill] sm:$0xff] }
 0x6eb   :  { %2651 = vmatprep.subr.bf16.mxu0 %v5591_v38  ;;  %2692 = vmatprep.subr.bf16.mxu1 %v7205_v44  ;;  %v7280_v38 = vld [vmem:[#allocation26_spill] sm:$0xff]  ;;  %v7282_v44 = vld [vmem:[#allocation28_spill] sm:$0xff] }
 0x6ec   :  { %2681 = vmatprep.mubr.bf16.mxu0 %v6985_v31  ;;  %2722 = vmatprep.mubr.bf16.mxu1 %v6985_v31 }
 0x6ee   :  { %2652 = vmatpush1.bf16.msra.mxu0 %v7206_v24  ;;  %2693 = vmatpush1.bf16.msra.mxu1 %v7207_v8  ;;  %v7283_v24 = vld [vmem:[#allocation29_spill] sm:$0xff]  ;;  %v7284_v8 = vld [vmem:[#allocation30_spill] sm:$0xff] }
 0x6ef   :  { %2653 = vmatprep.subr.bf16.mxu0 %v7208_v23  ;;  %2694 = vmatprep.subr.bf16.mxu1 %v7209_v63  ;;  %v7285_v23 = vld [vmem:[#allocation31_spill] sm:$0xff]  ;;  %v7286_v63 = vld [vmem:[#allocation32_spill] sm:$0xff] }
 0x6f2   :  { %2654 = vmatpush1.bf16.msra.mxu0 %v7210_v14  ;;  %2695 = vmatpush1.bf16.msra.mxu1 %v7266_v60  ;;  %v7287_v14 = vld [vmem:[#allocation33_spill] sm:$0xff]  ;;  %v7309_v60 = vld [vmem:[#allocation55_spill] sm:$0xff] }
 0x6f3   :  { %2655 = vmatprep.subr.bf16.mxu0 %v7267_v61  ;;  %2696 = vmatprep.subr.bf16.mxu1 %v7268_v62  ;;  %v7310_v61 = vld [vmem:[#allocation56_spill] sm:$0xff]  ;;  %v7311_v62 = vld [vmem:[#allocation57_spill] sm:$0xff] }
 0x6f6   :  { %2656 = vmatpush1.bf16.msra.mxu0 %v7269_v1  ;;  %2697 = vmatpush1.bf16.msra.mxu1 %v7270_v3  ;;  %v7312_v1 = vld [vmem:[#allocation58_spill] sm:$0xff]  ;;  %v7313_v3 = vld [vmem:[#allocation59_spill] sm:$0xff] }
 0x6f7   :  { %2657 = vmatprep.subr.bf16.mxu0 %v7271_v22  ;;  %2698 = vmatprep.subr.bf16.mxu1 %v7272_v29  ;;  %v7314_v22 = vld [vmem:[#allocation60_spill] sm:$0xff]  ;;  %v7315_v29 = vld [vmem:[#allocation61_spill] sm:$0xff] }
 0x6fa   :  { %2658 = vmatpush1.bf16.msra.mxu0 %v7273_v30  ;;  %2699 = vmatpush1.bf16.msra.mxu1 %v7274_v48  ;;  %v7316_v30 = vld [vmem:[#allocation62_spill] sm:$0xff]  ;;  %v7317_v48 = vld [vmem:[#allocation63_spill] sm:$0xff] }
 0x6fb   :  { %2659 = vmatprep.subr.bf16.mxu0 %v7275_v18  ;;  %2700 = vmatprep.subr.bf16.mxu1 %v7276_v2  ;;  %v7318_v18 = vld [vmem:[#allocation64_spill] sm:$0xff]  ;;  %v6243_v2 = vld [vmem:[%s6697_s4 + $0x4] ss:$16 sps:$4 sm:$0xff]  }
 0x6fe   :  { %2660 = vmatpush1.bf16.msra.mxu0 %v7277_v35  ;;  %2701 = vmatpush1.bf16.msra.mxu1 %v7278_v34  ;;  %v6249_v35 = vld [vmem:[%s6697_s4 + $0xc] ss:$16 sps:$4 sm:$0xff]  }
 0x6ff   :  { %2661 = vmatprep.subr.bf16.mxu0 %v7279_v17  ;;  %2702 = vmatprep.subr.bf16.mxu1 %v7280_v38 }
 0x702   :  { %2662 = vmatpush1.bf16.msra.mxu0 %v7281_v52  ;;  %2703 = vmatpush1.bf16.msra.mxu1 %v7282_v44 }
 0x703   :  { %2663 = vmatprep.subr.bf16.mxu0 %v7283_v24  ;;  %2704 = vmatprep.subr.bf16.mxu1 %v7284_v8 }
 0x706   :  { %2664 = vmatpush1.bf16.msra.mxu0 %v7285_v23  ;;  %2705 = vmatpush1.bf16.msra.mxu1 %v7286_v63 }
 0x707   :  { %2776 = vmatprep.subr.bf16.mxu0 %v7287_v14  ;;  %2817 = vmatprep.subr.bf16.mxu1 %v7288_v25 }
 0x709   :  { %2682 = vmatmul.mubr.bf16.vlgmr.msra.gmra.mrb[68].mxu0 %v2537_v59  ;;  %2723 = vmatmul.mubr.bf16.vlgmr.msra.gmra.mrb[68].mxu1 %v2537_v59  ;;  %v7308_v59 = vld [vmem:[#allocation54_spill] sm:$0xff] }
 0x70a   :  { %2777 = vmatpush1.bf16.msra.mxu0 %v7289_v21  ;;  %2818 = vmatpush1.bf16.msra.mxu1 %v7290_v47 }
 0x70b   :  { %2778 = vmatprep.subr.bf16.mxu0 %v7291_v28  ;;  %2819 = vmatprep.subr.bf16.mxu1 %v7292_v43 }
 0x70c   :  { %2808 = vmatprep.mubr.bf16.mxu0 %v6985_v31  ;;  %2849 = vmatprep.mubr.bf16.mxu1 %v6985_v31 }
 0x70e   :  { %2779 = vmatpush1.bf16.msra.mxu0 %v7293_v45  ;;  %2820 = vmatpush1.bf16.msra.mxu1 %v7294_v53 }
 0x70f   :  { %2780 = vmatprep.subr.bf16.mxu0 %v7295_v42  ;;  %2821 = vmatprep.subr.bf16.mxu1 %v7296_v10 }
 0x712   :  { %2781 = vmatpush1.bf16.msra.mxu0 %v7297_v54  ;;  %2822 = vmatpush1.bf16.msra.mxu1 %v7298_v33 }
 0x713   :  { %2782 = vmatprep.subr.bf16.mxu0 %v7299_v27  ;;  %2823 = vmatprep.subr.bf16.mxu1 %v7300_v49 }
 0x716   :  { %2783 = vmatpush1.bf16.msra.mxu0 %v7301_v19  ;;  %2824 = vmatpush1.bf16.msra.mxu1 %v7302_v55 }
 0x717   :  { %2784 = vmatprep.subr.bf16.mxu0 %v7303_v50  ;;  %2825 = vmatprep.subr.bf16.mxu1 %v7304_v36 }
 0x71a   :  { %2785 = vmatpush1.bf16.msra.mxu0 %v7305_v56  ;;  %2826 = vmatpush1.bf16.msra.mxu1 %v7306_v57 }
 0x71b   :  { %2786 = vmatprep.subr.bf16.mxu0 %v7307_v58  ;;  %2827 = vmatprep.subr.bf16.mxu1 %v7308_v59 }
 0x71e   :  { %2787 = vmatpush1.bf16.msra.mxu0 %v7309_v60  ;;  %2828 = vmatpush1.bf16.msra.mxu1 %v7310_v61 }
 0x71f   :  { %2788 = vmatprep.subr.bf16.mxu0 %v7311_v62  ;;  %2829 = vmatprep.subr.bf16.mxu1 %v7312_v1 }
 0x722   :  { %2789 = vmatpush1.bf16.msra.mxu0 %v7313_v3  ;;  %2830 = vmatpush1.bf16.msra.mxu1 %v7314_v22 }
 0x723   :  { %2790 = vmatprep.subr.bf16.mxu0 %v7315_v29  ;;  %2831 = vmatprep.subr.bf16.mxu1 %v7316_v30 }
 0x726   :  { %2791 = vmatpush1.bf16.msra.mxu0 %v7317_v48  ;;  %2832 = vmatpush1.bf16.msra.mxu1 %v7318_v18 }
 0x727   :  { %2861 = vmatprep.subr.bf16.mxu0 %v6243_v2  ;;  %2902 = vmatprep.subr.bf16.mxu1 %v6249_v35 }
 0x79a   :  { %v2488_v34 = vpop.f32.mrb[60].mxu0  ;;  %v2529_v17 = vpop.f32.mrb[60].mxu1 }
 0x79b   :  { %v2490_v38 = vpop.f32.mrb[61].mxu0  ;;  %v2531_v52 = vpop.f32.mrb[61].mxu1 }
 0x79c   :  { %v2492_v44 = vpop.f32.mrb[62].mxu0  ;;  %v2533_v24 = vpop.f32.mrb[62].mxu1 }
 0x79d   :  { %v2493_v8 = vpop.f32.mrb[63].mxu0  ;;  %v2534_v23 = vpop.f32.mrb[63].mxu1 }
 0x7bc   :  { %v2573_v63 = vpop.f32.mrb[64].mxu0  ;;  %v2614_v14 = vpop.f32.mrb[64].mxu1 }
 0x7bd   :  { %v2574_v25 = vadd.f32 %v2573_v63, %v2488_v34  ;;  %v2615_v21 = vadd.f32 %v2614_v14, %v2529_v17  ;;  %v2575_v47 = vpop.f32.mrb[65].mxu0  ;;  %v2616_v28 = vpop.f32.mrb[65].mxu1 }
 0x7be   :  { %v2576_v43 = vadd.f32 %v2575_v47, %v2490_v38  ;;  %v2617_v45 = vadd.f32 %v2616_v28, %v2531_v52  ;;  %v2577_v53 = vpop.f32.mrb[66].mxu0  ;;  %v2618_v42 = vpop.f32.mrb[66].mxu1 }
 0x7bf   :  { %v2621_v10 = vadd.f32 %v2574_v25, %v7086_v15  ;;  %v2578_v54 = vpop.f32.mrb[67].mxu0  ;;  %v2619_v33 = vpop.f32.mrb[67].mxu1  ;;  %v2623_v36 = vadd.f32 %v2615_v21, %v7088_v11 }
 0x7c0   :  { %v2622_v27 = vadd.f32 %v2576_v43, %v5232_v13  ;;  %v2624_v55 = vadd.f32 %v2617_v45, %v7087_v9 }
 0x7c1   :  { %v3580_v49 = vmul.f32 -1.442695, %v2621_v10 }
 0x7c2   :  { %v3581_v19 = vmul.f32 -1.442695, %v2622_v27  ;;  %v3582_v50 = vmul.f32 -1.442695, %v2624_v55  ;;  %v6275_v55 = vld [vmem:[%s6697_s4 + $0x44] ss:$16 sps:$4 sm:$0xff]  }
 0x7c3   :  { %4006 = vpow2.f32 %v3580_v49 }
 0x7c4   :  { %4008 = vpow2.f32 %v3581_v19 }
 0x7c5   :  { %4010 = vpow2.f32 %v3582_v50  ;;  %v6281_v50 = vld [vmem:[%s6697_s4 + $0x4c] ss:$16 sps:$4 sm:$0xff]  }
 0x7c6   :  { %4012 = vtanh.f32 %v2623_v36 }
 0x7cd   :  { %v4007_v56 = vpop.eup %4006 }
 0x7ce   :  { %v4009_v57 = vpop.eup %4008  ;;  %v2628_v58 = vadd.f32 1.0, %v4007_v56  ;;  %v6287_v56 = vld [vmem:[%s6697_s4 + $0x40] ss:$16 sps:$4 sm:$0xff]  }
 0x7cf   :  { %v2634_v59 = vadd.f32 1.0, %v4009_v57  ;;  %v4011_v60 = vpop.eup %4010  ;;  %v6293_v57 = vld [vmem:[%s6697_s4 + $0x48] ss:$16 sps:$4 sm:$0xff]  }
 0x7d0   :  { %4014 = vrcp.f32 %v2628_v58  ;;  %v4013_v61 = vpop.eup %4012  ;;  %v2641_v22 = vadd.f32 1.0, %v4011_v60  ;;  %v6305_v60 = vld [vmem:[%s6697_s4 + $0x6c] ss:$16 sps:$4 sm:$0xff]  }
 0x7d1   :  { %4016 = vrcp.f32 %v2634_v59  ;;  %v6299_v59 = vld [vmem:[%s6697_s4 + $0x64] ss:$16 sps:$4 sm:$0xff]  }
 0x7d2   :  { %4018 = vrcp.f32 %v2641_v22 }
 0x7da   :  { %v4015_v62 = vpop.eup %4014 }
 0x7db   :  { %v4017_v1 = vpop.eup %4016  ;;  %v2645_v3 = vmul.f32 %v4015_v62, %v4013_v61  ;;  %v2767_v62 = vrot.slane %v6145_v12, 6 }
 0x7dc   :  { %v2644_v29 = vmul.f32 %v4017_v1, %v6079_v6  ;;  %v2683_v30 = vpop.f32.mrb[68].mxu0  ;;  %v2724_v48 = vpop.f32.mrb[68].mxu1 }
 0x7dd   :  { %v2735_v18 = vrot.slane %v2683_v30, 4  ;;  %v2685_v34 = vpop.f32.mrb[69].mxu0  ;;  %v2726_v17 = vpop.f32.mrb[69].mxu1  ;;  %v2737_v28 = vrot.slane %v2724_v48, 4  ;;  %v6314_v30 = vld [vmem:[%s6697_s4 + $0x84] ss:$16 sps:$4 sm:$0xff]  }
 0x7de   :  { %v6257_v38 = vadd.f32 %v2645_v3, %v2644_v29  ;;  %v2736_v52 = vrot.slane %v2685_v34, 4  ;;  %v2687_v44 = vpop.f32.mrb[70].mxu0  ;;  %v2728_v24 = vpop.f32.mrb[70].mxu1  ;;  %v2738_v21 = vrot.slane %v2726_v17, 4  ;;  %v6320_v48 = vld [vmem:[%s6697_s4 + $0x8c] ss:$16 sps:$4 sm:$0xff]  }
 0x7df   :  { %v2743_v8 = vadd.f32 %v2735_v18, %v7201_v5  ;;  %v2688_v23 = vpop.f32.mrb[71].mxu0  ;;  %v2729_v63 = vpop.f32.mrb[71].mxu1  ;;  %v2745_v42 = vadd.f32 %v2737_v28, %v7204_v0  ;;  %v6331_v18 = vld [vmem:[%s6697_s4 + $0xa4] ss:$16 sps:$4 sm:$0xff]   ;;  %v6337_v34 = vld [vmem:[%s6697_s4 + $0xac] ss:$16 sps:$4 sm:$0xff]  }
 0x7e0   :  { %v2744_v14 = vadd.f32 %v2736_v52, %v7202_v51  ;;  %4020 = vtanh.f32 %v6257_v38  ;;  %v2746_v47 = vadd.f32 %v2738_v21, %v7203_v4  ;;  %v4019_v43 = vpop.eup %4018  ;;  %v6343_v17 = vld [vmem:[%s6697_s4 + $0xa0] ss:$16 sps:$4 sm:$0xff]   ;;  %v6349_v52 = vld [vmem:[%s6697_s4 + $0xa8] ss:$16 sps:$4 sm:$0xff]   ;;  %v6355_v44 = vld [vmem:[%s6697_s4 + $0xc4] ss:$16 sps:$4 sm:$0xff]  }
 0x7e1   :  { %v3583_v6 = vmul.f32 -1.442695, %v2743_v8  ;;  %v6361_v24 = vld [vmem:[%s6697_s4 + $0xcc] ss:$16 sps:$4 sm:$0xff]   ;;  %v6367_v8 = vld [vmem:[%s6697_s4 + $0xc0] ss:$16 sps:$4 sm:$0xff]  }
 0x7e2   :  { %v3584_v25 = vmul.f32 -1.442695, %v2744_v14  ;;  %v3585_v53 = vmul.f32 -1.442695, %v2746_v47  ;;  %v6373_v23 = vld [vmem:[%s6697_s4 + $0xc8] ss:$16 sps:$4 sm:$0xff]  }
 0x7e3   :  { %4022 = vpow2.f32 %v3583_v6  ;;  %v6379_v14 = vld [vmem:[%s6697_s4 + $0xe4] ss:$16 sps:$4 sm:$0xff]   ;;  %v6385_v6 = vld [vmem:[%s6697_s4 + $0xec] ss:$16 sps:$4 sm:$0xff]   ;;  %v6391_v47 = vld [vmem:[%s6697_s4 + $0xe0] ss:$16 sps:$4 sm:$0xff]  }
 0x7e4   :  { %4024 = vpow2.f32 %v3584_v25  ;;  %v6397_v28 = vld [vmem:[%s6697_s4 + $0xe8] ss:$16 sps:$4 sm:$0xff]  }
 0x7e5   :  { %4026 = vpow2.f32 %v3585_v53 }
 0x7e6   :  { %4028 = vtanh.f32 %v2745_v42 }
 0x7ea   :  { %v4021_v45 = vpop.eup %4020 }
 0x7eb   :  { %v2648_v10 = vmul.f32 %v4021_v45, %v4019_v43  ;;  %v4214_v43 = vld [vmem:[%s6695_s2 + $0x4] ss:$16 sps:$4 sm:$0xff]   ;;  %v4215_v45 = vld [vmem:[%s6695_s2 + $0xc] ss:$16 sps:$4 sm:$0xff]  }
 0x7ed   :  { %v4023_v54 = vpop.eup %4022  ;;  %v2775_v33 = vpack.c.bf16 %v2648_v10, %v2648_v10  ;;  %v4216_v10 = vld [vmem:[%s6695_s2] ss:$16 sps:$4 sm:$0xff]  }
 0x7ee   :  { %v4025_v27 = vpop.eup %4024  ;;  %v2750_v49 = vadd.f32 1.0, %v4023_v54  ;;  %v4217_v54 = vld [vmem:[%s6695_s2 + $0x8] ss:$16 sps:$4 sm:$0xff]  }
 0x7ef   :  { %v2756_v19 = vadd.f32 1.0, %v4025_v27  ;;  %2809 = vmatmul.mubr.bf16.vlgmr.msra.gmra.mrb[72].mxu0 %v2775_v33  ;;  %2850 = vmatmul.mubr.bf16.vlgmr.msra.gmra.mrb[72].mxu1 %v2775_v33  ;;  %v4027_v36 = vpop.eup %4026  ;;  %v4218_v33 = vld [vmem:[%s6695_s2 + $0x24] ss:$16 sps:$4 sm:$0xff]   ;;  %v4219_v27 = vld [vmem:[%s6695_s2 + $0x2c] ss:$16 sps:$4 sm:$0xff]  }
 0x7f0   :  { %4030 = vrcp.f32 %v2750_v49  ;;  %2862 = vmatpush1.bf16.msra.mxu0 %v6089_v20  ;;  %2903 = vmatpush1.bf16.msra.mxu1 %v6095_v46  ;;  %v4029_v58 = vpop.eup %4028  ;;  %v2763_v22 = vadd.f32 1.0, %v4027_v36  ;;  %v4220_v49 = vld [vmem:[%s6695_s2 + $0x20] ss:$16 sps:$4 sm:$0xff]   ;;  %v4222_v36 = vld [vmem:[%s6695_s2 + $0x44] ss:$16 sps:$4 sm:$0xff]  }
 0x7f1   :  { %4032 = vrcp.f32 %v2756_v19  ;;  %2863 = vmatprep.subr.bf16.mxu0 %v6101_v37  ;;  %2904 = vmatprep.subr.bf16.mxu1 %v6107_v40  ;;  %v4221_v19 = vld [vmem:[%s6695_s2 + $0x28] ss:$16 sps:$4 sm:$0xff]  }
 0x7f2   :  { %2893 = vmatprep.mubr.bf16.mxu0 %v6985_v31  ;;  %2934 = vmatprep.mubr.bf16.mxu1 %v6985_v31  ;;  %4034 = vrcp.f32 %v2763_v22  ;;  %v4228_v22 = vld [vmem:[%s6695_s2 + $0x60] ss:$16 sps:$4 sm:$0xff]  }
 0x7f4   :  { %2864 = vmatpush1.bf16.msra.mxu0 %v6115_v16  ;;  %2905 = vmatpush1.bf16.msra.mxu1 %v6121_v39 }
 0x7f5   :  { %2865 = vmatprep.subr.bf16.mxu0 %v6275_v55  ;;  %2906 = vmatprep.subr.bf16.mxu1 %v6281_v50 }
 0x7f8   :  { %2866 = vmatpush1.bf16.msra.mxu0 %v6287_v56  ;;  %2907 = vmatpush1.bf16.msra.mxu1 %v6293_v57 }
 0x7f9   :  { %2867 = vmatprep.subr.bf16.mxu0 %v6299_v59  ;;  %2908 = vmatprep.subr.bf16.mxu1 %v6305_v60 }
 0x7fa   :  { %v4031_v61 = vpop.eup %4030 }
 0x7fb   :  { %v4033_v1 = vpop.eup %4032  ;;  %v2770_v3 = vmul.f32 %v4031_v61, %v4029_v58  ;;  %v4223_v58 = vld [vmem:[%s6695_s2 + $0x4c] ss:$16 sps:$4 sm:$0xff]   ;;  %v4224_v61 = vld [vmem:[%s6695_s2 + $0x40] ss:$16 sps:$4 sm:$0xff]  }
 0x7fc   :  { %v2769_v29 = vmul.f32 %v4033_v1, %v2767_v62  ;;  %2868 = vmatpush1.bf16.msra.mxu0 %v6134_v26  ;;  %2909 = vmatpush1.bf16.msra.mxu1 %v6140_v32  ;;  %v4035_v63 = vpop.eup %4034  ;;  %v4225_v62 = vld [vmem:[%s6695_s2 + $0x48] ss:$16 sps:$4 sm:$0xff]   ;;  %v4226_v1 = vld [vmem:[%s6695_s2 + $0x64] ss:$16 sps:$4 sm:$0xff]  }
 0x7fd   :  { %2869 = vmatprep.subr.bf16.mxu0 %v6314_v30  ;;  %2910 = vmatprep.subr.bf16.mxu1 %v6320_v48 }
 0x7fe   :  { %v6323_v12 = vadd.f32 %v2770_v3, %v2769_v29  ;;  %v4227_v3 = vld [vmem:[%s6695_s2 + $0x6c] ss:$16 sps:$4 sm:$0xff]   ;;  %v4229_v29 = vld [vmem:[%s6695_s2 + $0x68] ss:$16 sps:$4 sm:$0xff]  }
 0x800   :  { %2870 = vmatpush1.bf16.msra.mxu0 %v6150_v41  ;;  %2911 = vmatpush1.bf16.msra.mxu1 %v6156_v7  ;;  %4036 = vtanh.f32 %v6323_v12 }
 0x801   :  { %2871 = vmatprep.subr.bf16.mxu0 %v6331_v18  ;;  %2912 = vmatprep.subr.bf16.mxu1 %v6337_v34 }
 0x804   :  { %2872 = vmatpush1.bf16.msra.mxu0 %v6343_v17  ;;  %2913 = vmatpush1.bf16.msra.mxu1 %v6349_v52 }
 0x805   :  { %2873 = vmatprep.subr.bf16.mxu0 %v6355_v44  ;;  %2914 = vmatprep.subr.bf16.mxu1 %v6361_v24 }
 0x808   :  { %2874 = vmatpush1.bf16.msra.mxu0 %v6367_v8  ;;  %2915 = vmatpush1.bf16.msra.mxu1 %v6373_v23 }
 0x809   :  { %2875 = vmatprep.subr.bf16.mxu0 %v6379_v14  ;;  %2916 = vmatprep.subr.bf16.mxu1 %v6385_v6 }
 0x80a   :  { %v4037_v25 = vpop.eup %4036 }
 0x80b   :  { %v2773_v21 = vmul.f32 %v4037_v25, %v4035_v63  ;;  %v4230_v63 = vld [vmem:[%s6695_s2 + $0x84] ss:$16 sps:$4 sm:$0xff]   ;;  %v4231_v25 = vld [vmem:[%s6695_s2 + $0x8c] ss:$16 sps:$4 sm:$0xff]  }
 0x80c   :  { %2876 = vmatpush1.bf16.msra.mxu0 %v6391_v47  ;;  %2917 = vmatpush1.bf16.msra.mxu1 %v6397_v28 }
 0x80d   :  { %2971 = vmatprep.subr.bf16.mxu0 %v4214_v43  ;;  %3012 = vmatprep.subr.bf16.mxu1 %v4215_v45  ;;  %v2774_v53 = vpack.c.bf16 %v2773_v21, %v2773_v21  ;;  %v4232_v21 = vld [vmem:[%s6695_s2 + $0x80] ss:$16 sps:$4 sm:$0xff]   ;;  %v4233_v43 = vld [vmem:[%s6695_s2 + $0x88] ss:$16 sps:$4 sm:$0xff]   ;;  %v4234_v45 = vld [vmem:[%s6695_s2 + $0xa4] ss:$16 sps:$4 sm:$0xff]  }
 0x80f   :  { %v6406_v42 = vrot.slane %v2774_v53, 2  ;;  %v4235_v53 = vld [vmem:[%s6695_s2 + $0xac] ss:$16 sps:$4 sm:$0xff]  }
 0x811   :  { %2894 = vmatmul.mubr.bf16.vlgmr.msra.gmra.mrb[76].mxu0 %v6406_v42  ;;  %2935 = vmatmul.mubr.bf16.vlgmr.msra.gmra.mrb[76].mxu1 %v6406_v42 }
 0x812   :  { %2972 = vmatpush1.bf16.msra.mxu0 %v4216_v10  ;;  %3013 = vmatpush1.bf16.msra.mxu1 %v4217_v54  ;;  %v4236_v10 = vld [vmem:[%s6695_s2 + $0xa0] ss:$16 sps:$4 sm:$0xff]   ;;  %v4237_v54 = vld [vmem:[%s6695_s2 + $0xa8] ss:$16 sps:$4 sm:$0xff]  }
 0x813   :  { %2973 = vmatprep.subr.bf16.mxu0 %v4218_v33  ;;  %3014 = vmatprep.subr.bf16.mxu1 %v4219_v27  ;;  %v4238_v33 = vld [vmem:[%s6695_s2 + $0xc4] ss:$16 sps:$4 sm:$0xff]   ;;  %v4239_v27 = vld [vmem:[%s6695_s2 + $0xcc] ss:$16 sps:$4 sm:$0xff]  }
 0x814   :  { %3003 = vmatprep.mubr.bf16.mxu0 %v6985_v31  ;;  %3044 = vmatprep.mubr.bf16.mxu1 %v6985_v31 }
 0x816   :  { %2974 = vmatpush1.bf16.msra.mxu0 %v4220_v49  ;;  %3015 = vmatpush1.bf16.msra.mxu1 %v4221_v19  ;;  %v4240_v49 = vld [vmem:[%s6695_s2 + $0xc0] ss:$16 sps:$4 sm:$0xff]   ;;  %v4241_v19 = vld [vmem:[%s6695_s2 + $0xc8] ss:$16 sps:$4 sm:$0xff]  }
 0x817   :  { %2975 = vmatprep.subr.bf16.mxu0 %v4222_v36  ;;  %3016 = vmatprep.subr.bf16.mxu1 %v4223_v58  ;;  %v4242_v36 = vld [vmem:[%s6695_s2 + $0xe4] ss:$16 sps:$4 sm:$0xff]   ;;  %v4243_v58 = vld [vmem:[%s6695_s2 + $0xec] ss:$16 sps:$4 sm:$0xff]  }
 0x81a   :  { %2976 = vmatpush1.bf16.msra.mxu0 %v4224_v61  ;;  %3017 = vmatpush1.bf16.msra.mxu1 %v4225_v62  ;;  %v4244_v61 = vld [vmem:[%s6695_s2 + $0xe0] ss:$16 sps:$4 sm:$0xff]   ;;  %v4245_v62 = vld [vmem:[%s6695_s2 + $0xe8] ss:$16 sps:$4 sm:$0xff]  }
 0x81b   :  { %2977 = vmatprep.subr.bf16.mxu0 %v4226_v1  ;;  %3018 = vmatprep.subr.bf16.mxu1 %v4227_v3  ;;  %v4246_v1 = vld [vmem:[%s6698_s5 + $0x4] ss:$16 sps:$4 sm:$0xff]   ;;  %v4247_v3 = vld [vmem:[%s6698_s5 + $0xc] ss:$16 sps:$4 sm:$0xff]  }
 0x81e   :  { %2978 = vmatpush1.bf16.msra.mxu0 %v4228_v22  ;;  %3019 = vmatpush1.bf16.msra.mxu1 %v4229_v29  ;;  %v4248_v22 = vld [vmem:[%s6698_s5] ss:$16 sps:$4 sm:$0xff]   ;;  %v4249_v29 = vld [vmem:[%s6698_s5 + $0x8] ss:$16 sps:$4 sm:$0xff]  }
 0x81f   :  { %2979 = vmatprep.subr.bf16.mxu0 %v4230_v63  ;;  %3020 = vmatprep.subr.bf16.mxu1 %v4231_v25  ;;  %v4250_v63 = vld [vmem:[%s6698_s5 + $0x24] ss:$16 sps:$4 sm:$0xff]   ;;  %v4251_v25 = vld [vmem:[%s6698_s5 + $0x2c] ss:$16 sps:$4 sm:$0xff]  }
 0x822   :  { %2980 = vmatpush1.bf16.msra.mxu0 %v4232_v21  ;;  %3021 = vmatpush1.bf16.msra.mxu1 %v4233_v43  ;;  %v4253_v21 = vld [vmem:[%s6698_s5 + $0x28] ss:$16 sps:$4 sm:$0xff]   ;;  %v4254_v43 = vld [vmem:[%s6698_s5 + $0x44] ss:$16 sps:$4 sm:$0xff]  }
 0x823   :  { %2981 = vmatprep.subr.bf16.mxu0 %v4234_v45  ;;  %3022 = vmatprep.subr.bf16.mxu1 %v4235_v53  ;;  %v4255_v45 = vld [vmem:[%s6698_s5 + $0x4c] ss:$16 sps:$4 sm:$0xff]   ;;  %v4256_v53 = vld [vmem:[%s6698_s5 + $0x40] ss:$16 sps:$4 sm:$0xff]  }
 0x826   :  { %2982 = vmatpush1.bf16.msra.mxu0 %v4236_v10  ;;  %3023 = vmatpush1.bf16.msra.mxu1 %v4237_v54  ;;  %v4257_v10 = vld [vmem:[%s6698_s5 + $0x48] ss:$16 sps:$4 sm:$0xff]   ;;  %v4258_v54 = vld [vmem:[%s6698_s5 + $0x64] ss:$16 sps:$4 sm:$0xff]  }
 0x827   :  { %2983 = vmatprep.subr.bf16.mxu0 %v4238_v33  ;;  %3024 = vmatprep.subr.bf16.mxu1 %v4239_v27  ;;  %v4259_v33 = vld [vmem:[%s6698_s5 + $0x6c] ss:$16 sps:$4 sm:$0xff]   ;;  %v4260_v27 = vld [vmem:[%s6698_s5 + $0x60] ss:$16 sps:$4 sm:$0xff]  }
 0x82a   :  { %2984 = vmatpush1.bf16.msra.mxu0 %v4240_v49  ;;  %3025 = vmatpush1.bf16.msra.mxu1 %v4241_v19  ;;  %v4261_v49 = vld [vmem:[%s6698_s5 + $0x68] ss:$16 sps:$4 sm:$0xff]   ;;  %v4262_v19 = vld [vmem:[%s6698_s5 + $0x84] ss:$16 sps:$4 sm:$0xff]  }
 0x82b   :  { %2985 = vmatprep.subr.bf16.mxu0 %v4242_v36  ;;  %3026 = vmatprep.subr.bf16.mxu1 %v4243_v58  ;;  %v4263_v36 = vld [vmem:[%s6698_s5 + $0x8c] ss:$16 sps:$4 sm:$0xff]   ;;  %v4264_v58 = vld [vmem:[%s6698_s5 + $0x80] ss:$16 sps:$4 sm:$0xff]  }
 0x82e   :  { %2986 = vmatpush1.bf16.msra.mxu0 %v4244_v61  ;;  %3027 = vmatpush1.bf16.msra.mxu1 %v4245_v62  ;;  %v4265_v61 = vld [vmem:[%s6698_s5 + $0x88] ss:$16 sps:$4 sm:$0xff]   ;;  %v4266_v62 = vld [vmem:[%s6698_s5 + $0xa4] ss:$16 sps:$4 sm:$0xff]  }
 0x82f   :  { %3098 = vmatprep.subr.bf16.mxu0 %v4246_v1  ;;  %3139 = vmatprep.subr.bf16.mxu1 %v4247_v3  ;;  %v4267_v1 = vld [vmem:[%s6698_s5 + $0xac] ss:$16 sps:$4 sm:$0xff]   ;;  %v4268_v3 = vld [vmem:[%s6698_s5 + $0xa0] ss:$16 sps:$4 sm:$0xff]  }
 0x831   :  { %3004 = vmatmul.mubr.bf16.vlgmr.msra.gmra.mrb[80].mxu0 %v6406_v42  ;;  %3045 = vmatmul.mubr.bf16.vlgmr.msra.gmra.mrb[80].mxu1 %v6406_v42  ;;  %v4252_v42 = vld [vmem:[%s6698_s5 + $0x20] ss:$16 sps:$4 sm:$0xff]  }
 0x832   :  { %3099 = vmatpush1.bf16.msra.mxu0 %v4248_v22  ;;  %3140 = vmatpush1.bf16.msra.mxu1 %v4249_v29  ;;  %v4269_v22 = vld [vmem:[%s6698_s5 + $0xa8] ss:$16 sps:$4 sm:$0xff]   ;;  %v4270_v29 = vld [vmem:[%s6698_s5 + $0xc4] ss:$16 sps:$4 sm:$0xff]  }
 0x833   :  { %3100 = vmatprep.subr.bf16.mxu0 %v4250_v63  ;;  %3141 = vmatprep.subr.bf16.mxu1 %v4251_v25  ;;  %v4271_v63 = vld [vmem:[%s6698_s5 + $0xcc] ss:$16 sps:$4 sm:$0xff]   ;;  %v4272_v25 = vld [vmem:[%s6698_s5 + $0xc0] ss:$16 sps:$4 sm:$0xff]  }
 0x834   :  { %3130 = vmatprep.mubr.bf16.mxu0 %v6985_v31  ;;  %3171 = vmatprep.mubr.bf16.mxu1 %v6985_v31 }
 0x836   :  { %3101 = vmatpush1.bf16.msra.mxu0 %v4252_v42  ;;  %3142 = vmatpush1.bf16.msra.mxu1 %v4253_v21  ;;  %v4273_v42 = vld [vmem:[%s6698_s5 + $0xc8] ss:$16 sps:$4 sm:$0xff]   ;;  %v4274_v21 = vld [vmem:[%s6698_s5 + $0xe4] ss:$16 sps:$4 sm:$0xff]  }
 0x837   :  { %3102 = vmatprep.subr.bf16.mxu0 %v4254_v43  ;;  %3143 = vmatprep.subr.bf16.mxu1 %v4255_v45  ;;  %v4275_v43 = vld [vmem:[%s6698_s5 + $0xec] ss:$16 sps:$4 sm:$0xff]   ;;  %v4276_v45 = vld [vmem:[%s6698_s5 + $0xe0] ss:$16 sps:$4 sm:$0xff]  }
 0x83a   :  { %3103 = vmatpush1.bf16.msra.mxu0 %v4256_v53  ;;  %3144 = vmatpush1.bf16.msra.mxu1 %v4257_v10  ;;  %v4277_v53 = vld [vmem:[%s6698_s5 + $0xe8] ss:$16 sps:$4 sm:$0xff]  }
 0x83b   :  { %3104 = vmatprep.subr.bf16.mxu0 %v4258_v54  ;;  %3145 = vmatprep.subr.bf16.mxu1 %v4259_v33 }
 0x83e   :  { %3105 = vmatpush1.bf16.msra.mxu0 %v4260_v27  ;;  %3146 = vmatpush1.bf16.msra.mxu1 %v4261_v49 }
 0x83f   :  { %3106 = vmatprep.subr.bf16.mxu0 %v4262_v19  ;;  %3147 = vmatprep.subr.bf16.mxu1 %v4263_v36 }
 0x842   :  { %3107 = vmatpush1.bf16.msra.mxu0 %v4264_v58  ;;  %3148 = vmatpush1.bf16.msra.mxu1 %v4265_v61 }
 0x843   :  { %3108 = vmatprep.subr.bf16.mxu0 %v4266_v62  ;;  %3149 = vmatprep.subr.bf16.mxu1 %v4267_v1 }
 0x846   :  { %3109 = vmatpush1.bf16.msra.mxu0 %v4268_v3  ;;  %3150 = vmatpush1.bf16.msra.mxu1 %v4269_v22 }
 0x847   :  { %3110 = vmatprep.subr.bf16.mxu0 %v4270_v29  ;;  %3151 = vmatprep.subr.bf16.mxu1 %v4271_v63 }
 0x84a   :  { %3111 = vmatpush1.bf16.msra.mxu0 %v4272_v25  ;;  %3152 = vmatpush1.bf16.msra.mxu1 %v4273_v42 }
 0x84b   :  { %3112 = vmatprep.subr.bf16.mxu0 %v4274_v21  ;;  %3153 = vmatprep.subr.bf16.mxu1 %v4275_v43 }
 0x84e   :  { %3113 = vmatpush1.bf16.msra.mxu0 %v4276_v45  ;;  %3154 = vmatpush1.bf16.msra.mxu1 %v4277_v53 }
 0x84f   :  { %3183 = vmatprep.subr.bf16.mxu0 %v6243_v2  ;;  %3224 = vmatprep.subr.bf16.mxu1 %v6249_v35 }
 0x8c2   :  { %v2810_v10 = vpop.f32.mrb[72].mxu0  ;;  %v2851_v54 = vpop.f32.mrb[72].mxu1 }
 0x8c3   :  { %v2812_v33 = vpop.f32.mrb[73].mxu0  ;;  %v2853_v27 = vpop.f32.mrb[73].mxu1 }
 0x8c4   :  { %v2814_v49 = vpop.f32.mrb[74].mxu0  ;;  %v2855_v19 = vpop.f32.mrb[74].mxu1 }
 0x8c5   :  { %v2815_v36 = vpop.f32.mrb[75].mxu0  ;;  %v2856_v58 = vpop.f32.mrb[75].mxu1 }
 0x8e4   :  { %v2895_v61 = vpop.f32.mrb[76].mxu0  ;;  %v2936_v62 = vpop.f32.mrb[76].mxu1 }
 0x8e5   :  { %v2896_v1 = vadd.f32 %v2895_v61, %v2810_v10  ;;  %v2937_v3 = vadd.f32 %v2936_v62, %v2851_v54  ;;  %v2897_v22 = vpop.f32.mrb[77].mxu0  ;;  %v2938_v29 = vpop.f32.mrb[77].mxu1 }
 0x8e6   :  { %v2898_v63 = vadd.f32 %v2897_v22, %v2812_v33  ;;  %v2939_v25 = vadd.f32 %v2938_v29, %v2853_v27  ;;  %v2899_v42 = vpop.f32.mrb[78].mxu0  ;;  %v2940_v2 = vpop.f32.mrb[78].mxu1 }
 0x8e7   :  { %v2943_v35 = vadd.f32 %v2896_v1, %v7086_v15  ;;  %v2900_v21 = vpop.f32.mrb[79].mxu0  ;;  %v2941_v43 = vpop.f32.mrb[79].mxu1  ;;  %v2945_v54 = vadd.f32 %v2937_v3, %v7088_v11 }
 0x8e8   :  { %v2944_v45 = vadd.f32 %v2898_v63, %v5232_v13  ;;  %v2946_v19 = vadd.f32 %v2939_v25, %v7087_v9 }
 0x8e9   :  { %v3586_v53 = vmul.f32 -1.442695, %v2943_v35 }
 0x8ea   :  { %v3587_v49 = vmul.f32 -1.442695, %v2944_v45  ;;  %v3588_v10 = vmul.f32 -1.442695, %v2946_v19 }
 0x8eb   :  { %4038 = vpow2.f32 %v3586_v53 }
 0x8ec   :  { %4040 = vpow2.f32 %v3587_v49 }
 0x8ed   :  { %4042 = vpow2.f32 %v3588_v10 }
 0x8ee   :  { %4044 = vtanh.f32 %v2945_v54 }
 0x8f5   :  { %v4039_v36 = vpop.eup %4038 }
 0x8f6   :  { %v4041_v33 = vpop.eup %4040  ;;  %v2950_v27 = vadd.f32 1.0, %v4039_v36 }
 0x8f7   :  { %v2956_v58 = vadd.f32 1.0, %v4041_v33  ;;  %v4043_v61 = vpop.eup %4042 }
 0x8f8   :  { %4046 = vrcp.f32 %v2950_v27  ;;  %v4045_v62 = vpop.eup %4044  ;;  %v2963_v63 = vadd.f32 1.0, %v4043_v61 }
 0x8f9   :  { %4048 = vrcp.f32 %v2956_v58 }
 0x8fa   :  { %4050 = vrcp.f32 %v2963_v63 }
 0x902   :  { %v4047_v1 = vpop.eup %4046 }
 0x903   :  { %v4049_v22 = vpop.eup %4048  ;;  %v2967_v29 = vmul.f32 %v4047_v1, %v4045_v62 }
 0x904   :  { %v2966_v42 = vmul.f32 %v4049_v22, %v6257_v38  ;;  %v3005_v25 = vpop.f32.mrb[80].mxu0  ;;  %v3046_v2 = vpop.f32.mrb[80].mxu1 }
 0x905   :  { %v3057_v35 = vrot.slane %v3005_v25, 2  ;;  %v3007_v3 = vpop.f32.mrb[81].mxu0  ;;  %v3048_v21 = vpop.f32.mrb[81].mxu1  ;;  %v3059_v61 = vrot.slane %v3046_v2, 2 }
 0x906   :  { %v6609_v43 = vadd.f32 %v2967_v29, %v2966_v42  ;;  %v3058_v45 = vrot.slane %v3007_v3, 2  ;;  %v3009_v53 = vpop.f32.mrb[82].mxu0  ;;  %v3050_v49 = vpop.f32.mrb[82].mxu1  ;;  %v3060_v27 = vrot.slane %v3048_v21, 2 }
 0x907   :  { %v3065_v19 = vadd.f32 %v3057_v35, %v7201_v5  ;;  %v3010_v10 = vpop.f32.mrb[83].mxu0  ;;  %v3051_v54 = vpop.f32.mrb[83].mxu1  ;;  %v3067_v29 = vadd.f32 %v3059_v61, %v7204_v0 }
 0x908   :  { %v3066_v36 = vadd.f32 %v3058_v45, %v7202_v51  ;;  %4052 = vtanh.f32 %v6609_v43  ;;  %v3068_v58 = vadd.f32 %v3060_v27, %v7203_v4  ;;  %v4051_v62 = vpop.eup %4050 }
 0x909   :  { %v3589_v38 = vmul.f32 -1.442695, %v3065_v19 }
 0x90a   :  { %v3590_v33 = vmul.f32 -1.442695, %v3066_v36  ;;  %v3591_v22 = vmul.f32 -1.442695, %v3068_v58 }
 0x90b   :  { %4054 = vpow2.f32 %v3589_v38 }
 0x90c   :  { %4056 = vpow2.f32 %v3590_v33 }
 0x90d   :  { %4058 = vpow2.f32 %v3591_v22 }
 0x90e   :  { %4060 = vtanh.f32 %v3067_v29 }
 0x912   :  { %v4053_v1 = vpop.eup %4052 }
 0x913   :  { %v2970_v5 = vmul.f32 %v4053_v1, %v4051_v62 }
 0x915   :  { %v4055_v63 = vpop.eup %4054  ;;  %v3097_v42 = vpack.c.bf16 %v2970_v5, %v2970_v5 }
 0x916   :  { %v4057_v25 = vpop.eup %4056  ;;  %v3072_v51 = vadd.f32 1.0, %v4055_v63 }
 0x917   :  { %v3078_v35 = vadd.f32 1.0, %v4057_v25  ;;  %3131 = vmatmul.mubr.bf16.vlgmr.msra.gmra.mrb[84].mxu0 %v3097_v42  ;;  %3172 = vmatmul.mubr.bf16.vlgmr.msra.gmra.mrb[84].mxu1 %v3097_v42  ;;  %v4059_v4 = vpop.eup %4058 }
 0x918   :  { %4062 = vrcp.f32 %v3072_v51  ;;  %3184 = vmatpush1.bf16.msra.mxu0 %v6089_v20  ;;  %3225 = vmatpush1.bf16.msra.mxu1 %v6095_v46  ;;  %v4061_v0 = vpop.eup %4060 }
 0x919   :  { %4064 = vrcp.f32 %v3078_v35  ;;  %3185 = vmatprep.subr.bf16.mxu0 %v6101_v37  ;;  %3226 = vmatprep.subr.bf16.mxu1 %v6107_v40  ;;  %v3085_v40 = vadd.f32 1.0, %v4059_v4 }
 0x91a   :  { %3215 = vmatprep.mubr.bf16.mxu0 %v6985_v31  ;;  %3256 = vmatprep.mubr.bf16.mxu1 %v6985_v31  ;;  %v3089_v31 = vrot.slane %v6323_v12, 6  ;;  %v3836_v12 = vld [vmem:[%s6700_s7 + $0x30] sm:$0xff]  }
 0x91b   :  { %4066 = vrcp.f32 %v3085_v40 }
 0x91c   :  { %3186 = vmatpush1.bf16.msra.mxu0 %v6115_v16  ;;  %3227 = vmatpush1.bf16.msra.mxu1 %v6121_v39 }
 0x91d   :  { %3187 = vmatprep.subr.bf16.mxu0 %v6275_v55  ;;  %3228 = vmatprep.subr.bf16.mxu1 %v6281_v50  ;;  %v3830_v50 = vld [vmem:[%s6700_s7] sm:$0xff]  }
 0x920   :  { %3188 = vmatpush1.bf16.msra.mxu0 %v6287_v56  ;;  %3229 = vmatpush1.bf16.msra.mxu1 %v6293_v57  ;;  %v4303_v56 = vmov 0.0   ;;  %v3831_v57 = vld [vmem:[%s6700_s7 + $0x8] sm:$0xff]  }
 0x921   :  { %3189 = vmatprep.subr.bf16.mxu0 %v6299_v59  ;;  %3230 = vmatprep.subr.bf16.mxu1 %v6305_v60  ;;  %v3832_v59 = vld [vmem:[%s6700_s7 + $0x10] sm:$0xff]   ;;  %v3833_v60 = vld [vmem:[%s6700_s7 + $0x18] sm:$0xff]  }
 0x922   :  { %v4063_v20 = vpop.eup %4062 }
 0x923   :  { %v4065_v46 = vpop.eup %4064  ;;  %v3092_v37 = vmul.f32 %v4063_v20, %v4061_v0 }
 0x924   :  { %v3091_v16 = vmul.f32 %v4065_v46, %v3089_v31  ;;  %3190 = vmatpush1.bf16.msra.mxu0 %v6134_v26  ;;  %3231 = vmatpush1.bf16.msra.mxu1 %v6140_v32  ;;  %v3595_v31 = vld [vmem:[%s6701_s8] ss:$0 sm:$0xff] }
 0x925   :  { %3191 = vmatprep.subr.bf16.mxu0 %v6314_v30  ;;  %3232 = vmatprep.subr.bf16.mxu1 %v6320_v48  ;;  %v4067_v26 = vpop.eup %4066  ;;  %v3834_v30 = vld [vmem:[%s6700_s7 + $0x20] sm:$0xff]   ;;  %v3835_v48 = vld [vmem:[%s6700_s7 + $0x28] sm:$0xff]  }
 0x926   :  { %v3093_v39 = vadd.f32 %v3092_v37, %v3091_v16 }
 0x928   :  { %3192 = vmatpush1.bf16.msra.mxu0 %v6150_v41  ;;  %3233 = vmatpush1.bf16.msra.mxu1 %v6156_v7  ;;  %4068 = vtanh.f32 %v3093_v39 }
 0x929   :  { %3193 = vmatprep.subr.bf16.mxu0 %v6331_v18  ;;  %3234 = vmatprep.subr.bf16.mxu1 %v6337_v34  ;;  %v3837_v18 = vld [vmem:[%s6700_s7 + $0x38] sm:$0xff]  }
 0x92c   :  { %3194 = vmatpush1.bf16.msra.mxu0 %v6343_v17  ;;  %3235 = vmatpush1.bf16.msra.mxu1 %v6349_v52 }
 0x92d   :  { %3195 = vmatprep.subr.bf16.mxu0 %v6355_v44  ;;  %3236 = vmatprep.subr.bf16.mxu1 %v6361_v24 }
 0x930   :  { %3196 = vmatpush1.bf16.msra.mxu0 %v6367_v8  ;;  %3237 = vmatpush1.bf16.msra.mxu1 %v6373_v23 }
 0x931   :  { %3197 = vmatprep.subr.bf16.mxu0 %v6379_v14  ;;  %3238 = vmatprep.subr.bf16.mxu1 %v6385_v6 }
 0x932   :  { %v4069_v32 = vpop.eup %4068 }
 0x933   :  { %v3095_v41 = vmul.f32 %v4069_v32, %v4067_v26 }
 0x934   :  { %3198 = vmatpush1.bf16.msra.mxu0 %v6391_v47  ;;  %3239 = vmatpush1.bf16.msra.mxu1 %v6397_v28 }
 0x935   :  { %v3096_v7 = vpack.c.bf16 %v3095_v41, %v3095_v41  ;;  %3613 = vmatprep.subr.bf16.mxu0 %v4303_v56 }
 0x937   :  { %v3181_v55 = vrot.slane %v3096_v7, 3 }
 0x939   :  { %3216 = vmatmul.mubr.bf16.vlgmr.msra.gmra.mrb[88].mxu0 %v3181_v55  ;;  %3257 = vmatmul.mubr.bf16.vlgmr.msra.gmra.mrb[88].mxu1 %v3181_v55 }
 0x93a   :  { %3614 = vmatpush3.bf16.msra.mxu0 %v3830_v50  ;;  %3629 = vmatprep.mubr.msk.bf16.mxu0 %vm4304_vm0, %v4303_v56 }
 0x93b   :  { %3615 = vmatprep.subr.bf16.mxu0 %v4303_v56 }
 0x93e   :  { %3616 = vmatpush3.bf16.msra.mxu0 %v3831_v57 }
 0x93f   :  { %3617 = vmatprep.subr.bf16.mxu0 %v4303_v56 }
 0x942   :  { %3618 = vmatpush3.bf16.msra.mxu0 %v3832_v59 }
 0x943   :  { %3619 = vmatprep.subr.bf16.mxu0 %v4303_v56 }
 0x946   :  { %3620 = vmatpush3.bf16.msra.mxu0 %v3833_v60 }
 0x947   :  { %3621 = vmatprep.subr.bf16.mxu0 %v4303_v56 }
 0x94a   :  { %3622 = vmatpush3.bf16.msra.mxu0 %v3834_v30 }
 0x94b   :  { %3623 = vmatprep.subr.bf16.mxu0 %v4303_v56 }
 0x94e   :  { %3624 = vmatpush3.bf16.msra.mxu0 %v3835_v48 }
 0x94f   :  { %3625 = vmatprep.subr.bf16.mxu0 %v4303_v56 }
 0x952   :  { %3626 = vmatpush3.bf16.msra.mxu0 %v3836_v12 }
 0x953   :  { %3627 = vmatprep.subr.bf16.mxu0 %v4303_v56 }
 0x956   :  { %3628 = vmatpush3.bf16.msra.mxu0 %v3837_v18 }
 0x9ea   :  { %v3132_v34 = vpop.f32.mrb[84].mxu0  ;;  %v3173_v17 = vpop.f32.mrb[84].mxu1 }
 0x9eb   :  { %v3134_v52 = vpop.f32.mrb[85].mxu0  ;;  %v3175_v44 = vpop.f32.mrb[85].mxu1 }
 0x9ec   :  { %v3136_v24 = vpop.f32.mrb[86].mxu0  ;;  %v3177_v8 = vpop.f32.mrb[86].mxu1 }
 0x9ed   :  { %v3137_v23 = vpop.f32.mrb[87].mxu0  ;;  %v3178_v14 = vpop.f32.mrb[87].mxu1 }
 0xa0c   :  { %v3217_v6 = vpop.f32.mrb[88].mxu0  ;;  %v3258_v47 = vpop.f32.mrb[88].mxu1 }
 0xa0d   :  { %v3218_v28 = vadd.f32 %v3217_v6, %v3132_v34  ;;  %v3259_v2 = vadd.f32 %v3258_v47, %v3173_v17  ;;  %v3219_v3 = vpop.f32.mrb[89].mxu0  ;;  %v3260_v21 = vpop.f32.mrb[89].mxu1 }
 0xa0e   :  { %v3220_v45 = vadd.f32 %v3219_v3, %v3134_v52  ;;  %v3261_v53 = vadd.f32 %v3260_v21, %v3175_v44  ;;  %v3221_v49 = vpop.f32.mrb[90].mxu0  ;;  %v3262_v19 = vpop.f32.mrb[90].mxu1 }
 0xa0f   :  { %v3265_v10 = vadd.f32 %v3218_v28, %v7086_v15  ;;  %v3222_v54 = vpop.f32.mrb[91].mxu0  ;;  %v3263_v36 = vpop.f32.mrb[91].mxu1  ;;  %v3267_v62 = vadd.f32 %v3259_v2, %v7088_v11 }
 0xa10   :  { %v3266_v38 = vadd.f32 %v3220_v45, %v5232_v13  ;;  %v3268_v58 = vadd.f32 %v3261_v53, %v7087_v9 }
 0xa11   :  { %v3592_v33 = vmul.f32 -1.442695, %v3265_v10 }
 0xa12   :  { %v3593_v27 = vmul.f32 -1.442695, %v3266_v38  ;;  %v3594_v61 = vmul.f32 -1.442695, %v3268_v58 }
 0xa13   :  { %4070 = vpow2.f32 %v3592_v33 }
 0xa14   :  { %4072 = vpow2.f32 %v3593_v27 }
 0xa15   :  { %4074 = vpow2.f32 %v3594_v61 }
 0xa16   :  { %4076 = vtanh.f32 %v3267_v62 }
 0xa1d   :  { %v4071_v1 = vpop.eup %4070 }
 0xa1e   :  { %v4073_v22 = vpop.eup %4072  ;;  %v3272_v29 = vadd.f32 1.0, %v4071_v1 }
 0xa1f   :  { %v3278_v5 = vadd.f32 1.0, %v4073_v22  ;;  %v4075_v15 = vpop.eup %4074 }
 0xa20   :  { %4078 = vrcp.f32 %v3272_v29  ;;  %v4077_v63 = vpop.eup %4076  ;;  %v3285_v51 = vadd.f32 1.0, %v4075_v15 }
 0xa21   :  { %4080 = vrcp.f32 %v3278_v5 }
 0xa22   :  { %4082 = vrcp.f32 %v3285_v51 }
 0xa2a   :  { %v4079_v13 = vpop.eup %4078 }
 0xa2b   :  { %v4081_v42 = vpop.eup %4080  ;;  %v3289_v25 = vmul.f32 %v4079_v13, %v4077_v63 }
 0xa2c   :  { %v3288_v35 = vmul.f32 %v4081_v42, %v6609_v43  ;;  %v4083_v11 = vpop.eup %4082 }
 0xa2e   :  { %v3290_v9 = vadd.f32 %v3289_v25, %v3288_v35 }
 0xa30   :  { %4084 = vtanh.f32 %v3290_v9 }
 0xa3a   :  { %v4085_v4 = vpop.eup %4084 }
 0xa3b   :  { %v3292_v0 = vmul.f32 %v4085_v4, %v4083_v11 }
 0xa3d   :  { %v3293_v20 = vpack.c.bf16 %v3292_v0, %v3292_v0 }
 0xa3f   :  { %3630 = vmatmul.mubr.bf16.vlgmr.msra.gmra.mrb[92].mxu0 %v3293_v20 }
 0xb12   :  { %v3399_v46 = vpop.f32.mrb[92].mxu0 }
 0xb13   :  { %v3400_v37 = vadd.f32 %v3595_v31, %v3399_v46  ;;  %v3631_v40 = vpop.f32.mrb[93].mxu0 }
 0xb14   :  { %v3402_v16 = vpop.f32.mrb[94].mxu0 }
 0xb15   :  { %3405 = vst [vmem:[#allocation2] sm:$0x3] %v3400_v37  ;;  %v3632_v43 = vpop.f32.mrb[95].mxu0 }
 0xb16   :  { %4289 = shalt.err (!%p4286_p4)
}
 0xb17   :  { %s4290_s8 = scalar_lea.hbm %s6702_s9, 32 }
 0xb18   :  { %p4291_p5 = scmp.ne.s32.totalorder %s6702_s9, %s4290_s8  ;;  %p4294_p6 = scmp.lt.u32.totalorder %s4290_s8, %s6702_s9 }
 0xb1a   :  { %p4296_p7 = pnand %p4294_p6, %p4291_p5 }
 0xb1c   :  { %4299 = shalt.err (!%p4296_p7)
}
 0xb1d   :  { %3415 = dma.vmem_to_hbm [thread:$0]  %s3413_s11, 32, %s6702_s9, [#allocation3]  }
 0xb1e   :  { %4300 = dma.done.wait [#allocation3], 32  }
 0xb1f   :  { %4301 = vsyncadd [#allocation3], 4294967264 }
 0xb20   :  { %3419 = vsyncpa [#allocation3], 1 }

</bundles_post_ra>
